<compile_context>
chip_gen: v7x
topology: tpu7x:2x2x1
jax: 0.10.0
libtpu: 0.0.40
codegen_flags: <defaults>
</compile_context>

<pallas_src>
import numpy as np

import jax
import jax.numpy as jnp
from jax import lax
from jax.experimental import pallas as pl
from jax.experimental.pallas import tpu as pltpu

BT = 8  # images per grid step (multiple of 8 so every row slice is tile-aligned)


def _round_up(x, m):
    return (x + m - 1) // m * m


# ------------------------------ fused kernel --------------------------------

def _net_kernel(xr_ref, bw1_ref, b1r_ref, bw2_ref, b2r_ref,
                w1f_ref, b1f_ref, w2f_ref, b2f_ref, out_ref):
    """Whole MNIST Net forward for one BT-image batch tile, entirely in VMEM.

    xr_ref : (2, 14, BT, 28)  row-parity-split input, xr[p,i,b,:] = x[b, 2i+p, :]
    bw1_ref: (2, 140, 128)    banded conv1 weights (one per pool column offset dx)
    bw2_ref: (2, 640, 128)    banded conv2 weights
    w1f_ref: (512, 64), w2f_ref: (64, 10)  FC weights (lane-padded / permuted)
    """
    f32 = jnp.float32
    bf16 = jnp.bfloat16

    # ---- conv1 (1->10, k5) + 2x2 maxpool + ReLU as a banded MXU matmul. ----
    # LHS row group (dy, py1) holds raw input rows 2*py1 + dy + kh, kh = 0..4,
    # concatenated along lanes (K = 5*28 = 140).
    groups = []
    for dy in (0, 1):
        for py in range(12):
            pieces = []
            for kh in range(5):
                s = dy + kh                                     # input row = 2*py + s
                pieces.append(xr_ref[s % 2, py + s // 2])       # (BT, 28)
            groups.append(jnp.concatenate(pieces, axis=-1))     # (BT, 140)
    lhs1 = jnp.concatenate(groups, axis=0).astype(bf16)         # (24*BT, 140)

    half = 12 * BT
    cand1 = []
    for dx in (0, 1):
        o = jnp.dot(lhs1, bw1_ref[dx], preferred_element_type=f32)  # (24*BT, 128)
        cand1.append(jnp.maximum(o[:half], o[half:]))           # max over dy
    a1 = jnp.maximum(jnp.maximum(cand1[0], cand1[1]) + b1r_ref[...], 0.0)
    # a1: (12*BT, 128); row = py1*BT + b, lane = ci*12 + px1 (lanes 120.. = 0)

    # ---- conv2 (10->20, k5) + 2x2 maxpool + ReLU, same banded-matmul form. --
    groups2 = []
    for dy in (0, 1):
        for py in range(4):
            pieces = []
            for kh in range(5):
                r = 2 * py + dy + kh                            # a1 row in [0, 12)
                pieces.append(a1[r * BT:(r + 1) * BT, :])       # (BT, 128)
            groups2.append(jnp.concatenate(pieces, axis=-1))    # (BT, 640)
    lhs2 = jnp.concatenate(groups2, axis=0).astype(bf16)        # (8*BT, 640)

    half2 = 4 * BT
    cand2 = []
    for dx in (0, 1):
        o = jnp.dot(lhs2, bw2_ref[dx], preferred_element_type=f32)  # (8*BT, 128)
        cand2.append(jnp.maximum(o[:half2], o[half2:]))         # max over dy
    h2 = jnp.maximum(jnp.maximum(cand2[0], cand2[1]) + b2r_ref[...], 0.0)
    # h2: (4*BT, 128); row = py2*BT + b, lane = co*4 + px2 (lanes 80.. = 0)
    # TODO(synk): Dropout2d(p=0.5) after conv2 is identity (eval/inference mode).

    # ---- flatten + fc1 + ReLU + fc2 + log_softmax ---------------------------
    # PyTorch's NCHW .view(-1, 320) ordering is absorbed into w1f's row perm.
    feats = jnp.concatenate([h2[p * BT:(p + 1) * BT, :] for p in range(4)],
                            axis=-1).astype(bf16)               # (BT, 512)
    h = jnp.dot(feats, w1f_ref[...], preferred_element_type=f32) + b1f_ref[...]
    h = jnp.maximum(h, 0.0)                                     # (BT, 64)
    # TODO(synk): F.dropout between fc1 and fc2 is identity (eval/inference mode).
    logits = jnp.dot(h.astype(bf16), w2f_ref[...],
                     preferred_element_type=f32) + b2f_ref[...]  # (BT, 10)
    m = jnp.max(logits, axis=-1, keepdims=True)
    z = logits - m
    lse = jnp.log(jnp.sum(jnp.exp(z), axis=-1, keepdims=True))
    out_ref[...] = (z - lse).astype(out_ref.dtype)


# --------------------------- weight pre-packing ------------------------------

def prepare_net_params(params):
    """Pack PyTorch-layout params into banded / lane-dense kernel operands.

    Runs once per parameter set, not per forward pass."""
    bf16 = jnp.bfloat16
    w1 = params["conv1_w"].astype(jnp.float32)   # (10, 1, 5, 5)
    b1 = params["conv1_b"].astype(jnp.float32)   # (10,)
    w2 = params["conv2_w"].astype(jnp.float32)   # (20, 10, 5, 5)
    b2 = params["conv2_b"].astype(jnp.float32)   # (20,)
    fw1 = params["fc1_w"].astype(jnp.float32)    # (50, 320)
    fb1 = params["fc1_b"].astype(jnp.float32)
    fw2 = params["fc2_w"].astype(jnp.float32)    # (10, 50)
    fb2 = params["fc2_b"].astype(jnp.float32)

    # conv1 banded: bw1[dx, kh*28 + u, ci*12 + px1] = w1[ci, 0, kh, u - 2*px1 - dx]
    dxg = np.arange(2).reshape(2, 1, 1, 1, 1)
    khg = np.arange(5).reshape(1, 5, 1, 1, 1)
    ug = np.arange(28).reshape(1, 1, 28, 1, 1)
    cig = np.arange(10).reshape(1, 1, 1, 10, 1)
    pxg = np.arange(12).reshape(1, 1, 1, 1, 12)
    kw = ug - 2 * pxg - dxg
    vals = w1[:, 0][cig, khg, np.clip(kw, 0, 4)]                 # (2,5,28,10,12)
    bw1 = jnp.where((kw >= 0) & (kw < 5), vals, 0.0).reshape(2, 140, 120)
    bw1 = jnp.pad(bw1, ((0, 0), (0, 0), (0, 8))).astype(bf16)    # (2, 140, 128)
    b1r = jnp.pad(jnp.repeat(b1, 12), (0, 8)).reshape(1, 128)

    # conv2 banded: bw2[dx, kh*128 + ci*12 + px1, co*4 + px2]
    #               = w2[co, ci, kh, px1 - 2*px2 - dx]
    dxg = np.arange(2).reshape(2, 1, 1, 1, 1, 1)
    khg = np.arange(5).reshape(1, 5, 1, 1, 1, 1)
    cig = np.arange(10).reshape(1, 1, 10, 1, 1, 1)
    p1g = np.arange(12).reshape(1, 1, 1, 12, 1, 1)
    cog = np.arange(20).reshape(1, 1, 1, 1, 20, 1)
    p2g = np.arange(4).reshape(1, 1, 1, 1, 1, 4)
    kw = p1g - 2 * p2g - dxg
    vals = w2[cog, cig, khg, np.clip(kw, 0, 4)]                  # (2,5,10,12,20,4)
    bw2 = jnp.where((kw >= 0) & (kw < 5), vals, 0.0).reshape(2, 5, 120, 80)
    bw2 = jnp.pad(bw2, ((0, 0), (0, 0), (0, 8), (0, 48)))        # (2, 5, 128, 128)
    bw2 = bw2.reshape(2, 640, 128).astype(bf16)
    b2r = jnp.pad(jnp.repeat(b2, 4), (0, 48)).reshape(1, 128)

    # fc1: permute input rows to the kernel flatten order
    # (kernel lane = py2*128 + co*4 + px2; PyTorch feature = co*16 + py2*4 + px2)
    py2 = np.arange(4).reshape(4, 1, 1)
    co = np.arange(20).reshape(1, 20, 1)
    px2 = np.arange(4).reshape(1, 1, 4)
    f_pt = (co * 16 + py2 * 4 + px2).reshape(320)
    w1f = jnp.pad(fw1[:, f_pt].T, ((0, 0), (0, 14)))             # (320, 64)
    w1f = jnp.pad(w1f.reshape(4, 80, 64), ((0, 0), (0, 48), (0, 0)))
    w1f = w1f.reshape(512, 64).astype(bf16)
    b1f = jnp.pad(fb1, (0, 14)).reshape(1, 64)

    w2f = jnp.pad(fw2.T, ((0, 14), (0, 0))).astype(bf16)         # (64, 10)
    b2f = fb2.reshape(1, 10)

    return dict(bw1=bw1, b1r=b1r, bw2=bw2, b2r=b2r,
                w1f=w1f, b1f=b1f, w2f=w2f, b2f=b2f)


# --------------------------------- forward -----------------------------------

def net_forward(x, packed):
    """Fused Pallas forward of the MNIST Net (inference / eval mode)."""
    N = x.shape[0]
    assert x.shape[1:] == (1, 28, 28), x.shape
    npad = _round_up(max(N, BT), BT)
    x2 = x.reshape(N, 28, 28).astype(jnp.float32)
    if npad != N:
        x2 = jnp.pad(x2, ((0, npad - N), (0, 0), (0, 0)))
    # Row-parity split with batch on sublanes: xr[p, i, b, :] = x[b, 2i+p, :].
    xr = jnp.transpose(x2.reshape(npad, 14, 2, 28), (2, 1, 0, 3))  # (2,14,npad,28)

    out = pl.pallas_call(
        _net_kernel,
        out_shape=jax.ShapeDtypeStruct((npad, 10), jnp.float32),
        grid=(npad // BT,),
        in_specs=[
            pl.BlockSpec((2, 14, BT, 28), lambda i: (0, 0, i, 0)),   # input tile
            pl.BlockSpec((2, 140, 128), lambda i: (0, 0, 0)),        # bw1
            pl.BlockSpec((1, 128), lambda i: (0, 0)),                # b1r
            pl.BlockSpec((2, 640, 128), lambda i: (0, 0, 0)),        # bw2
            pl.BlockSpec((1, 128), lambda i: (0, 0)),                # b2r
            pl.BlockSpec((512, 64), lambda i: (0, 0)),               # w1f
            pl.BlockSpec((1, 64), lambda i: (0, 0)),                 # b1f
            pl.BlockSpec((64, 10), lambda i: (0, 0)),                # w2f
            pl.BlockSpec((1, 10), lambda i: (0, 0)),                 # b2f
        ],
        out_specs=pl.BlockSpec((BT, 10), lambda i: (i, 0)),
        compiler_params=pltpu.CompilerParams(
            dimension_semantics=("parallel",)),
    )(xr, packed["bw1"], packed["b1r"], packed["bw2"], packed["b2r"],
      packed["w1f"], packed["b1f"], packed["w2f"], packed["b2f"])
    return out[:N]


# ---------------------- pure-JAX reference (for checking) --------------------

def net_forward_reference(x, params):
    dn = ("NCHW", "OIHW", "NCHW")
    y = lax.conv_general_dilated(x, params["conv1_w"], (1, 1), "VALID",
                                 dimension_numbers=dn,
                                 precision=lax.Precision.HIGHEST)
    y = y + params["conv1_b"].reshape(1, -1, 1, 1)
    y = lax.reduce_window(y, -jnp.inf, lax.max, (1, 1, 2, 2), (1, 1, 2, 2), "VALID")
    y = jnp.maximum(y, 0.0)
    y = lax.conv_general_dilated(y, params["conv2_w"], (1, 1), "VALID",
                                 dimension_numbers=dn,
                                 precision=lax.Precision.HIGHEST)
    y = y + params["conv2_b"].reshape(1, -1, 1, 1)
    y = lax.reduce_window(y, -jnp.inf, lax.max, (1, 1, 2, 2), (1, 1, 2, 2), "VALID")
    y = jnp.maximum(y, 0.0)
    y = y.reshape(y.shape[0], -1)
    y = jnp.maximum(jnp.dot(y, params["fc1_w"].T,
                            precision=lax.Precision.HIGHEST) + params["fc1_b"], 0.0)
    y = jnp.dot(y, params["fc2_w"].T,
                precision=lax.Precision.HIGHEST) + params["fc2_b"]
    return jax.nn.log_softmax(y, axis=1)


# --------------------------- deterministic params ----------------------------

def init_params(key):
    ks = jax.random.split(key, 8)

    def u(k, shape, fan_in):
        bound = 1.0 / jnp.sqrt(jnp.float32(fan_in))
        return jax.random.uniform(k, shape, jnp.float32, -bound, bound)

    return {
        "conv1_w": u(ks[0], (10, 1, 5, 5), 1 * 5 * 5),
        "conv1_b": u(ks[1], (10,), 1 * 5 * 5),
        "conv2_w": u(ks[2], (20, 10, 5, 5), 10 * 5 * 5),
        "conv2_b": u(ks[3], (20,), 10 * 5 * 5),
        "fc1_w":   u(ks[4], (50, 320), 320),
        "fc1_b":   u(ks[5], (50,), 320),
        "fc2_w":   u(ks[6], (10, 50), 50),
        "fc2_b":   u(ks[7], (10,), 50),
    }


if __name__ == "__main__":
    key = jax.random.PRNGKey(0)
    pkey, xkey = jax.random.split(key)
    params = init_params(pkey)
    # 28x28 single-channel input (so the flatten is 320 = 20 ch * 4 * 4);
    # batch 16 -> two "parallel" grid tiles of 8 images.
    x = jax.random.normal(xkey, (16, 1, 28, 28), dtype=jnp.float32)

    packed = prepare_net_params(params)          # one-time weight packing
    out = jax.block_until_ready(jax.jit(net_forward)(x, packed))

    assert out.shape == (16, 10), out.shape
    # log_softmax rows must (approximately) exp-sum to 1.
    assert bool(jnp.allclose(jnp.exp(out).sum(axis=1), 1.0, atol=1e-4))
    # Check against a pure-JAX/XLA f32 reference of the same module
    # (kernel matmuls run bf16 x bf16 -> f32, hence the looser tolerance).
    ref = jax.block_until_ready(jax.jit(net_forward_reference)(x, params))
    max_err = float(jnp.max(jnp.abs(out - ref)))
    assert bool(jnp.allclose(out, ref, atol=5e-2, rtol=5e-2)), max_err
    print("KERNEL_OK")
</pallas_src>

<mosaic_0001>
module attributes {stable_mosaic.version = 11 : i64} {
  func.func @_net_kernel(%arg0: i32, %arg1: memref<2x14x8x28xf32, #tpu.memory_space<vmem>>, %arg2: memref<2x140x128xbf16, #tpu.memory_space<vmem>>, %arg3: memref<1x128xf32, #tpu.memory_space<vmem>>, %arg4: memref<2x640x128xbf16, #tpu.memory_space<vmem>>, %arg5: memref<1x128xf32, #tpu.memory_space<vmem>>, %arg6: memref<512x64xbf16, #tpu.memory_space<vmem>>, %arg7: memref<1x64xf32, #tpu.memory_space<vmem>>, %arg8: memref<64x10xbf16, #tpu.memory_space<vmem>>, %arg9: memref<1x10xf32, #tpu.memory_space<vmem>>, %arg10: memref<8x10xf32, #tpu.memory_space<vmem>>) attributes {dimension_semantics = [#tpu.dimension_semantics<parallel>], iteration_bounds = array<i64: 2>, scalar_prefetch = 0 : i64, scratch_operands = 0 : i64, tpu.core_type = #tpu.core_type<tc>, window_params = [{transform_indices = @transform_0, window_bounds = array<i64: 2, 14, 8, 28>}, {pipeline_mode = #tpu.pipeline_mode<synchronous>, transform_indices = @transform_1, window_bounds = array<i64: 2, 140, 128>}, {pipeline_mode = #tpu.pipeline_mode<synchronous>, transform_indices = @transform_2, window_bounds = array<i64: 1, 128>}, {pipeline_mode = #tpu.pipeline_mode<synchronous>, transform_indices = @transform_3, window_bounds = array<i64: 2, 640, 128>}, {pipeline_mode = #tpu.pipeline_mode<synchronous>, transform_indices = @transform_4, window_bounds = array<i64: 1, 128>}, {pipeline_mode = #tpu.pipeline_mode<synchronous>, transform_indices = @transform_5, window_bounds = array<i64: 512, 64>}, {pipeline_mode = #tpu.pipeline_mode<synchronous>, transform_indices = @transform_6, window_bounds = array<i64: 1, 64>}, {pipeline_mode = #tpu.pipeline_mode<synchronous>, transform_indices = @transform_7, window_bounds = array<i64: 64, 10>}, {pipeline_mode = #tpu.pipeline_mode<synchronous>, transform_indices = @transform_8, window_bounds = array<i64: 1, 10>}, {transform_indices = @transform_9, window_bounds = array<i64: 8, 10>}]} {
    %c0 = arith.constant 0 : index
    %c0_0 = arith.constant 0 : index
    %c0_1 = arith.constant 0 : index
    %c0_2 = arith.constant 0 : index
    %0 = vector.load %arg1[%c0, %c0_0, %c0_1, %c0_2] : memref<2x14x8x28xf32, #tpu.memory_space<vmem>>, vector<1x1x8x28xf32>
    %1 = vector.shape_cast %0 : vector<1x1x8x28xf32> to vector<8x28xf32>
    %c1 = arith.constant 1 : index
    %c0_3 = arith.constant 0 : index
    %c0_4 = arith.constant 0 : index
    %c0_5 = arith.constant 0 : index
    %2 = vector.load %arg1[%c1, %c0_3, %c0_4, %c0_5] : memref<2x14x8x28xf32, #tpu.memory_space<vmem>>, vector<1x1x8x28xf32>
    %3 = vector.shape_cast %2 : vector<1x1x8x28xf32> to vector<8x28xf32>
    %c0_6 = arith.constant 0 : index
    %c1_7 = arith.constant 1 : index
    %c0_8 = arith.constant 0 : index
    %c0_9 = arith.constant 0 : index
    %4 = vector.load %arg1[%c0_6, %c1_7, %c0_8, %c0_9] : memref<2x14x8x28xf32, #tpu.memory_space<vmem>>, vector<1x1x8x28xf32>
    %5 = vector.shape_cast %4 : vector<1x1x8x28xf32> to vector<8x28xf32>
    %c1_10 = arith.constant 1 : index
    %c1_11 = arith.constant 1 : index
    %c0_12 = arith.constant 0 : index
    %c0_13 = arith.constant 0 : index
    %6 = vector.load %arg1[%c1_10, %c1_11, %c0_12, %c0_13] : memref<2x14x8x28xf32, #tpu.memory_space<vmem>>, vector<1x1x8x28xf32>
    %7 = vector.shape_cast %6 : vector<1x1x8x28xf32> to vector<8x28xf32>
    %c0_14 = arith.constant 0 : index
    %c2 = arith.constant 2 : index
    %c0_15 = arith.constant 0 : index
    %c0_16 = arith.constant 0 : index
    %8 = vector.load %arg1[%c0_14, %c2, %c0_15, %c0_16] : memref<2x14x8x28xf32, #tpu.memory_space<vmem>>, vector<1x1x8x28xf32>
    %9 = vector.shape_cast %8 : vector<1x1x8x28xf32> to vector<8x28xf32>
    %10 = tpu.concatenate %1, %3, %5, %7, %9 in 1 : vector<8x28xf32>, vector<8x28xf32>, vector<8x28xf32>, vector<8x28xf32>, vector<8x28xf32> -> vector<8x140xf32>
    %c0_17 = arith.constant 0 : index
    %c1_18 = arith.constant 1 : index
    %c0_19 = arith.constant 0 : index
    %c0_20 = arith.constant 0 : index
    %11 = vector.load %arg1[%c0_17, %c1_18, %c0_19, %c0_20] : memref<2x14x8x28xf32, #tpu.memory_space<vmem>>, vector<1x1x8x28xf32>
    %12 = vector.shape_cast %11 : vector<1x1x8x28xf32> to vector<8x28xf32>
    %c1_21 = arith.constant 1 : index
    %c1_22 = arith.constant 1 : index
    %c0_23 = arith.constant 0 : index
    %c0_24 = arith.constant 0 : index
    %13 = vector.load %arg1[%c1_21, %c1_22, %c0_23, %c0_24] : memref<2x14x8x28xf32, #tpu.memory_space<vmem>>, vector<1x1x8x28xf32>
    %14 = vector.shape_cast %13 : vector<1x1x8x28xf32> to vector<8x28xf32>
    %c0_25 = arith.constant 0 : index
    %c2_26 = arith.constant 2 : index
    %c0_27 = arith.constant 0 : index
    %c0_28 = arith.constant 0 : index
    %15 = vector.load %arg1[%c0_25, %c2_26, %c0_27, %c0_28] : memref<2x14x8x28xf32, #tpu.memory_space<vmem>>, vector<1x1x8x28xf32>
    %16 = vector.shape_cast %15 : vector<1x1x8x28xf32> to vector<8x28xf32>
    %c1_29 = arith.constant 1 : index
    %c2_30 = arith.constant 2 : index
    %c0_31 = arith.constant 0 : index
    %c0_32 = arith.constant 0 : index
    %17 = vector.load %arg1[%c1_29, %c2_30, %c0_31, %c0_32] : memref<2x14x8x28xf32, #tpu.memory_space<vmem>>, vector<1x1x8x28xf32>
    %18 = vector.shape_cast %17 : vector<1x1x8x28xf32> to vector<8x28xf32>
    %c0_33 = arith.constant 0 : index
    %c3 = arith.constant 3 : index
    %c0_34 = arith.constant 0 : index
    %c0_35 = arith.constant 0 : index
    %19 = vector.load %arg1[%c0_33, %c3, %c0_34, %c0_35] : memref<2x14x8x28xf32, #tpu.memory_space<vmem>>, vector<1x1x8x28xf32>
    %20 = vector.shape_cast %19 : vector<1x1x8x28xf32> to vector<8x28xf32>
    %21 = tpu.concatenate %12, %14, %16, %18, %20 in 1 : vector<8x28xf32>, vector<8x28xf32>, vector<8x28xf32>, vector<8x28xf32>, vector<8x28xf32> -> vector<8x140xf32>
    %c0_36 = arith.constant 0 : index
    %c2_37 = arith.constant 2 : index
    %c0_38 = arith.constant 0 : index
    %c0_39 = arith.constant 0 : index
    %22 = vector.load %arg1[%c0_36, %c2_37, %c0_38, %c0_39] : memref<2x14x8x28xf32, #tpu.memory_space<vmem>>, vector<1x1x8x28xf32>
    %23 = vector.shape_cast %22 : vector<1x1x8x28xf32> to vector<8x28xf32>
    %c1_40 = arith.constant 1 : index
    %c2_41 = arith.constant 2 : index
    %c0_42 = arith.constant 0 : index
    %c0_43 = arith.constant 0 : index
    %24 = vector.load %arg1[%c1_40, %c2_41, %c0_42, %c0_43] : memref<2x14x8x28xf32, #tpu.memory_space<vmem>>, vector<1x1x8x28xf32>
    %25 = vector.shape_cast %24 : vector<1x1x8x28xf32> to vector<8x28xf32>
    %c0_44 = arith.constant 0 : index
    %c3_45 = arith.constant 3 : index
    %c0_46 = arith.constant 0 : index
    %c0_47 = arith.constant 0 : index
    %26 = vector.load %arg1[%c0_44, %c3_45, %c0_46, %c0_47] : memref<2x14x8x28xf32, #tpu.memory_space<vmem>>, vector<1x1x8x28xf32>
    %27 = vector.shape_cast %26 : vector<1x1x8x28xf32> to vector<8x28xf32>
    %c1_48 = arith.constant 1 : index
    %c3_49 = arith.constant 3 : index
    %c0_50 = arith.constant 0 : index
    %c0_51 = arith.constant 0 : index
    %28 = vector.load %arg1[%c1_48, %c3_49, %c0_50, %c0_51] : memref<2x14x8x28xf32, #tpu.memory_space<vmem>>, vector<1x1x8x28xf32>
    %29 = vector.shape_cast %28 : vector<1x1x8x28xf32> to vector<8x28xf32>
    %c0_52 = arith.constant 0 : index
    %c4 = arith.constant 4 : index
    %c0_53 = arith.constant 0 : index
    %c0_54 = arith.constant 0 : index
    %30 = vector.load %arg1[%c0_52, %c4, %c0_53, %c0_54] : memref<2x14x8x28xf32, #tpu.memory_space<vmem>>, vector<1x1x8x28xf32>
    %31 = vector.shape_cast %30 : vector<1x1x8x28xf32> to vector<8x28xf32>
    %32 = tpu.concatenate %23, %25, %27, %29, %31 in 1 : vector<8x28xf32>, vector<8x28xf32>, vector<8x28xf32>, vector<8x28xf32>, vector<8x28xf32> -> vector<8x140xf32>
    %c0_55 = arith.constant 0 : index
    %c3_56 = arith.constant 3 : index
    %c0_57 = arith.constant 0 : index
    %c0_58 = arith.constant 0 : index
    %33 = vector.load %arg1[%c0_55, %c3_56, %c0_57, %c0_58] : memref<2x14x8x28xf32, #tpu.memory_space<vmem>>, vector<1x1x8x28xf32>
    %34 = vector.shape_cast %33 : vector<1x1x8x28xf32> to vector<8x28xf32>
    %c1_59 = arith.constant 1 : index
    %c3_60 = arith.constant 3 : index
    %c0_61 = arith.constant 0 : index
    %c0_62 = arith.constant 0 : index
    %35 = vector.load %arg1[%c1_59, %c3_60, %c0_61, %c0_62] : memref<2x14x8x28xf32, #tpu.memory_space<vmem>>, vector<1x1x8x28xf32>
    %36 = vector.shape_cast %35 : vector<1x1x8x28xf32> to vector<8x28xf32>
    %c0_63 = arith.constant 0 : index
    %c4_64 = arith.constant 4 : index
    %c0_65 = arith.constant 0 : index
    %c0_66 = arith.constant 0 : index
    %37 = vector.load %arg1[%c0_63, %c4_64, %c0_65, %c0_66] : memref<2x14x8x28xf32, #tpu.memory_space<vmem>>, vector<1x1x8x28xf32>
    %38 = vector.shape_cast %37 : vector<1x1x8x28xf32> to vector<8x28xf32>
    %c1_67 = arith.constant 1 : index
    %c4_68 = arith.constant 4 : index
    %c0_69 = arith.constant 0 : index
    %c0_70 = arith.constant 0 : index
    %39 = vector.load %arg1[%c1_67, %c4_68, %c0_69, %c0_70] : memref<2x14x8x28xf32, #tpu.memory_space<vmem>>, vector<1x1x8x28xf32>
    %40 = vector.shape_cast %39 : vector<1x1x8x28xf32> to vector<8x28xf32>
    %c0_71 = arith.constant 0 : index
    %c5 = arith.constant 5 : index
    %c0_72 = arith.constant 0 : index
    %c0_73 = arith.constant 0 : index
    %41 = vector.load %arg1[%c0_71, %c5, %c0_72, %c0_73] : memref<2x14x8x28xf32, #tpu.memory_space<vmem>>, vector<1x1x8x28xf32>
    %42 = vector.shape_cast %41 : vector<1x1x8x28xf32> to vector<8x28xf32>
    %43 = tpu.concatenate %34, %36, %38, %40, %42 in 1 : vector<8x28xf32>, vector<8x28xf32>, vector<8x28xf32>, vector<8x28xf32>, vector<8x28xf32> -> vector<8x140xf32>
    %c0_74 = arith.constant 0 : index
    %c4_75 = arith.constant 4 : index
    %c0_76 = arith.constant 0 : index
    %c0_77 = arith.constant 0 : index
    %44 = vector.load %arg1[%c0_74, %c4_75, %c0_76, %c0_77] : memref<2x14x8x28xf32, #tpu.memory_space<vmem>>, vector<1x1x8x28xf32>
    %45 = vector.shape_cast %44 : vector<1x1x8x28xf32> to vector<8x28xf32>
    %c1_78 = arith.constant 1 : index
    %c4_79 = arith.constant 4 : index
    %c0_80 = arith.constant 0 : index
    %c0_81 = arith.constant 0 : index
    %46 = vector.load %arg1[%c1_78, %c4_79, %c0_80, %c0_81] : memref<2x14x8x28xf32, #tpu.memory_space<vmem>>, vector<1x1x8x28xf32>
    %47 = vector.shape_cast %46 : vector<1x1x8x28xf32> to vector<8x28xf32>
    %c0_82 = arith.constant 0 : index
    %c5_83 = arith.constant 5 : index
    %c0_84 = arith.constant 0 : index
    %c0_85 = arith.constant 0 : index
    %48 = vector.load %arg1[%c0_82, %c5_83, %c0_84, %c0_85] : memref<2x14x8x28xf32, #tpu.memory_space<vmem>>, vector<1x1x8x28xf32>
    %49 = vector.shape_cast %48 : vector<1x1x8x28xf32> to vector<8x28xf32>
    %c1_86 = arith.constant 1 : index
    %c5_87 = arith.constant 5 : index
    %c0_88 = arith.constant 0 : index
    %c0_89 = arith.constant 0 : index
    %50 = vector.load %arg1[%c1_86, %c5_87, %c0_88, %c0_89] : memref<2x14x8x28xf32, #tpu.memory_space<vmem>>, vector<1x1x8x28xf32>
    %51 = vector.shape_cast %50 : vector<1x1x8x28xf32> to vector<8x28xf32>
    %c0_90 = arith.constant 0 : index
    %c6 = arith.constant 6 : index
    %c0_91 = arith.constant 0 : index
    %c0_92 = arith.constant 0 : index
    %52 = vector.load %arg1[%c0_90, %c6, %c0_91, %c0_92] : memref<2x14x8x28xf32, #tpu.memory_space<vmem>>, vector<1x1x8x28xf32>
    %53 = vector.shape_cast %52 : vector<1x1x8x28xf32> to vector<8x28xf32>
    %54 = tpu.concatenate %45, %47, %49, %51, %53 in 1 : vector<8x28xf32>, vector<8x28xf32>, vector<8x28xf32>, vector<8x28xf32>, vector<8x28xf32> -> vector<8x140xf32>
    %c0_93 = arith.constant 0 : index
    %c5_94 = arith.constant 5 : index
    %c0_95 = arith.constant 0 : index
    %c0_96 = arith.constant 0 : index
    %55 = vector.load %arg1[%c0_93, %c5_94, %c0_95, %c0_96] : memref<2x14x8x28xf32, #tpu.memory_space<vmem>>, vector<1x1x8x28xf32>
    %56 = vector.shape_cast %55 : vector<1x1x8x28xf32> to vector<8x28xf32>
    %c1_97 = arith.constant 1 : index
    %c5_98 = arith.constant 5 : index
    %c0_99 = arith.constant 0 : index
    %c0_100 = arith.constant 0 : index
    %57 = vector.load %arg1[%c1_97, %c5_98, %c0_99, %c0_100] : memref<2x14x8x28xf32, #tpu.memory_space<vmem>>, vector<1x1x8x28xf32>
    %58 = vector.shape_cast %57 : vector<1x1x8x28xf32> to vector<8x28xf32>
    %c0_101 = arith.constant 0 : index
    %c6_102 = arith.constant 6 : index
    %c0_103 = arith.constant 0 : index
    %c0_104 = arith.constant 0 : index
    %59 = vector.load %arg1[%c0_101, %c6_102, %c0_103, %c0_104] : memref<2x14x8x28xf32, #tpu.memory_space<vmem>>, vector<1x1x8x28xf32>
    %60 = vector.shape_cast %59 : vector<1x1x8x28xf32> to vector<8x28xf32>
    %c1_105 = arith.constant 1 : index
    %c6_106 = arith.constant 6 : index
    %c0_107 = arith.constant 0 : index
    %c0_108 = arith.constant 0 : index
    %61 = vector.load %arg1[%c1_105, %c6_106, %c0_107, %c0_108] : memref<2x14x8x28xf32, #tpu.memory_space<vmem>>, vector<1x1x8x28xf32>
    %62 = vector.shape_cast %61 : vector<1x1x8x28xf32> to vector<8x28xf32>
    %c0_109 = arith.constant 0 : index
    %c7 = arith.constant 7 : index
    %c0_110 = arith.constant 0 : index
    %c0_111 = arith.constant 0 : index
    %63 = vector.load %arg1[%c0_109, %c7, %c0_110, %c0_111] : memref<2x14x8x28xf32, #tpu.memory_space<vmem>>, vector<1x1x8x28xf32>
    %64 = vector.shape_cast %63 : vector<1x1x8x28xf32> to vector<8x28xf32>
    %65 = tpu.concatenate %56, %58, %60, %62, %64 in 1 : vector<8x28xf32>, vector<8x28xf32>, vector<8x28xf32>, vector<8x28xf32>, vector<8x28xf32> -> vector<8x140xf32>
    %c0_112 = arith.constant 0 : index
    %c6_113 = arith.constant 6 : index
    %c0_114 = arith.constant 0 : index
    %c0_115 = arith.constant 0 : index
    %66 = vector.load %arg1[%c0_112, %c6_113, %c0_114, %c0_115] : memref<2x14x8x28xf32, #tpu.memory_space<vmem>>, vector<1x1x8x28xf32>
    %67 = vector.shape_cast %66 : vector<1x1x8x28xf32> to vector<8x28xf32>
    %c1_116 = arith.constant 1 : index
    %c6_117 = arith.constant 6 : index
    %c0_118 = arith.constant 0 : index
    %c0_119 = arith.constant 0 : index
    %68 = vector.load %arg1[%c1_116, %c6_117, %c0_118, %c0_119] : memref<2x14x8x28xf32, #tpu.memory_space<vmem>>, vector<1x1x8x28xf32>
    %69 = vector.shape_cast %68 : vector<1x1x8x28xf32> to vector<8x28xf32>
    %c0_120 = arith.constant 0 : index
    %c7_121 = arith.constant 7 : index
    %c0_122 = arith.constant 0 : index
    %c0_123 = arith.constant 0 : index
    %70 = vector.load %arg1[%c0_120, %c7_121, %c0_122, %c0_123] : memref<2x14x8x28xf32, #tpu.memory_space<vmem>>, vector<1x1x8x28xf32>
    %71 = vector.shape_cast %70 : vector<1x1x8x28xf32> to vector<8x28xf32>
    %c1_124 = arith.constant 1 : index
    %c7_125 = arith.constant 7 : index
    %c0_126 = arith.constant 0 : index
    %c0_127 = arith.constant 0 : index
    %72 = vector.load %arg1[%c1_124, %c7_125, %c0_126, %c0_127] : memref<2x14x8x28xf32, #tpu.memory_space<vmem>>, vector<1x1x8x28xf32>
    %73 = vector.shape_cast %72 : vector<1x1x8x28xf32> to vector<8x28xf32>
    %c0_128 = arith.constant 0 : index
    %c8 = arith.constant 8 : index
    %c0_129 = arith.constant 0 : index
    %c0_130 = arith.constant 0 : index
    %74 = vector.load %arg1[%c0_128, %c8, %c0_129, %c0_130] : memref<2x14x8x28xf32, #tpu.memory_space<vmem>>, vector<1x1x8x28xf32>
    %75 = vector.shape_cast %74 : vector<1x1x8x28xf32> to vector<8x28xf32>
    %76 = tpu.concatenate %67, %69, %71, %73, %75 in 1 : vector<8x28xf32>, vector<8x28xf32>, vector<8x28xf32>, vector<8x28xf32>, vector<8x28xf32> -> vector<8x140xf32>
    %c0_131 = arith.constant 0 : index
    %c7_132 = arith.constant 7 : index
    %c0_133 = arith.constant 0 : index
    %c0_134 = arith.constant 0 : index
    %77 = vector.load %arg1[%c0_131, %c7_132, %c0_133, %c0_134] : memref<2x14x8x28xf32, #tpu.memory_space<vmem>>, vector<1x1x8x28xf32>
    %78 = vector.shape_cast %77 : vector<1x1x8x28xf32> to vector<8x28xf32>
    %c1_135 = arith.constant 1 : index
    %c7_136 = arith.constant 7 : index
    %c0_137 = arith.constant 0 : index
    %c0_138 = arith.constant 0 : index
    %79 = vector.load %arg1[%c1_135, %c7_136, %c0_137, %c0_138] : memref<2x14x8x28xf32, #tpu.memory_space<vmem>>, vector<1x1x8x28xf32>
    %80 = vector.shape_cast %79 : vector<1x1x8x28xf32> to vector<8x28xf32>
    %c0_139 = arith.constant 0 : index
    %c8_140 = arith.constant 8 : index
    %c0_141 = arith.constant 0 : index
    %c0_142 = arith.constant 0 : index
    %81 = vector.load %arg1[%c0_139, %c8_140, %c0_141, %c0_142] : memref<2x14x8x28xf32, #tpu.memory_space<vmem>>, vector<1x1x8x28xf32>
    %82 = vector.shape_cast %81 : vector<1x1x8x28xf32> to vector<8x28xf32>
    %c1_143 = arith.constant 1 : index
    %c8_144 = arith.constant 8 : index
    %c0_145 = arith.constant 0 : index
    %c0_146 = arith.constant 0 : index
    %83 = vector.load %arg1[%c1_143, %c8_144, %c0_145, %c0_146] : memref<2x14x8x28xf32, #tpu.memory_space<vmem>>, vector<1x1x8x28xf32>
    %84 = vector.shape_cast %83 : vector<1x1x8x28xf32> to vector<8x28xf32>
    %c0_147 = arith.constant 0 : index
    %c9 = arith.constant 9 : index
    %c0_148 = arith.constant 0 : index
    %c0_149 = arith.constant 0 : index
    %85 = vector.load %arg1[%c0_147, %c9, %c0_148, %c0_149] : memref<2x14x8x28xf32, #tpu.memory_space<vmem>>, vector<1x1x8x28xf32>
    %86 = vector.shape_cast %85 : vector<1x1x8x28xf32> to vector<8x28xf32>
    %87 = tpu.concatenate %78, %80, %82, %84, %86 in 1 : vector<8x28xf32>, vector<8x28xf32>, vector<8x28xf32>, vector<8x28xf32>, vector<8x28xf32> -> vector<8x140xf32>
    %c0_150 = arith.constant 0 : index
    %c8_151 = arith.constant 8 : index
    %c0_152 = arith.constant 0 : index
    %c0_153 = arith.constant 0 : index
    %88 = vector.load %arg1[%c0_150, %c8_151, %c0_152, %c0_153] : memref<2x14x8x28xf32, #tpu.memory_space<vmem>>, vector<1x1x8x28xf32>
    %89 = vector.shape_cast %88 : vector<1x1x8x28xf32> to vector<8x28xf32>
    %c1_154 = arith.constant 1 : index
    %c8_155 = arith.constant 8 : index
    %c0_156 = arith.constant 0 : index
    %c0_157 = arith.constant 0 : index
    %90 = vector.load %arg1[%c1_154, %c8_155, %c0_156, %c0_157] : memref<2x14x8x28xf32, #tpu.memory_space<vmem>>, vector<1x1x8x28xf32>
    %91 = vector.shape_cast %90 : vector<1x1x8x28xf32> to vector<8x28xf32>
    %c0_158 = arith.constant 0 : index
    %c9_159 = arith.constant 9 : index
    %c0_160 = arith.constant 0 : index
    %c0_161 = arith.constant 0 : index
    %92 = vector.load %arg1[%c0_158, %c9_159, %c0_160, %c0_161] : memref<2x14x8x28xf32, #tpu.memory_space<vmem>>, vector<1x1x8x28xf32>
    %93 = vector.shape_cast %92 : vector<1x1x8x28xf32> to vector<8x28xf32>
    %c1_162 = arith.constant 1 : index
    %c9_163 = arith.constant 9 : index
    %c0_164 = arith.constant 0 : index
    %c0_165 = arith.constant 0 : index
    %94 = vector.load %arg1[%c1_162, %c9_163, %c0_164, %c0_165] : memref<2x14x8x28xf32, #tpu.memory_space<vmem>>, vector<1x1x8x28xf32>
    %95 = vector.shape_cast %94 : vector<1x1x8x28xf32> to vector<8x28xf32>
    %c0_166 = arith.constant 0 : index
    %c10 = arith.constant 10 : index
    %c0_167 = arith.constant 0 : index
    %c0_168 = arith.constant 0 : index
    %96 = vector.load %arg1[%c0_166, %c10, %c0_167, %c0_168] : memref<2x14x8x28xf32, #tpu.memory_space<vmem>>, vector<1x1x8x28xf32>
    %97 = vector.shape_cast %96 : vector<1x1x8x28xf32> to vector<8x28xf32>
    %98 = tpu.concatenate %89, %91, %93, %95, %97 in 1 : vector<8x28xf32>, vector<8x28xf32>, vector<8x28xf32>, vector<8x28xf32>, vector<8x28xf32> -> vector<8x140xf32>
    %c0_169 = arith.constant 0 : index
    %c9_170 = arith.constant 9 : index
    %c0_171 = arith.constant 0 : index
    %c0_172 = arith.constant 0 : index
    %99 = vector.load %arg1[%c0_169, %c9_170, %c0_171, %c0_172] : memref<2x14x8x28xf32, #tpu.memory_space<vmem>>, vector<1x1x8x28xf32>
    %100 = vector.shape_cast %99 : vector<1x1x8x28xf32> to vector<8x28xf32>
    %c1_173 = arith.constant 1 : index
    %c9_174 = arith.constant 9 : index
    %c0_175 = arith.constant 0 : index
    %c0_176 = arith.constant 0 : index
    %101 = vector.load %arg1[%c1_173, %c9_174, %c0_175, %c0_176] : memref<2x14x8x28xf32, #tpu.memory_space<vmem>>, vector<1x1x8x28xf32>
    %102 = vector.shape_cast %101 : vector<1x1x8x28xf32> to vector<8x28xf32>
    %c0_177 = arith.constant 0 : index
    %c10_178 = arith.constant 10 : index
    %c0_179 = arith.constant 0 : index
    %c0_180 = arith.constant 0 : index
    %103 = vector.load %arg1[%c0_177, %c10_178, %c0_179, %c0_180] : memref<2x14x8x28xf32, #tpu.memory_space<vmem>>, vector<1x1x8x28xf32>
    %104 = vector.shape_cast %103 : vector<1x1x8x28xf32> to vector<8x28xf32>
    %c1_181 = arith.constant 1 : index
    %c10_182 = arith.constant 10 : index
    %c0_183 = arith.constant 0 : index
    %c0_184 = arith.constant 0 : index
    %105 = vector.load %arg1[%c1_181, %c10_182, %c0_183, %c0_184] : memref<2x14x8x28xf32, #tpu.memory_space<vmem>>, vector<1x1x8x28xf32>
    %106 = vector.shape_cast %105 : vector<1x1x8x28xf32> to vector<8x28xf32>
    %c0_185 = arith.constant 0 : index
    %c11 = arith.constant 11 : index
    %c0_186 = arith.constant 0 : index
    %c0_187 = arith.constant 0 : index
    %107 = vector.load %arg1[%c0_185, %c11, %c0_186, %c0_187] : memref<2x14x8x28xf32, #tpu.memory_space<vmem>>, vector<1x1x8x28xf32>
    %108 = vector.shape_cast %107 : vector<1x1x8x28xf32> to vector<8x28xf32>
    %109 = tpu.concatenate %100, %102, %104, %106, %108 in 1 : vector<8x28xf32>, vector<8x28xf32>, vector<8x28xf32>, vector<8x28xf32>, vector<8x28xf32> -> vector<8x140xf32>
    %c0_188 = arith.constant 0 : index
    %c10_189 = arith.constant 10 : index
    %c0_190 = arith.constant 0 : index
    %c0_191 = arith.constant 0 : index
    %110 = vector.load %arg1[%c0_188, %c10_189, %c0_190, %c0_191] : memref<2x14x8x28xf32, #tpu.memory_space<vmem>>, vector<1x1x8x28xf32>
    %111 = vector.shape_cast %110 : vector<1x1x8x28xf32> to vector<8x28xf32>
    %c1_192 = arith.constant 1 : index
    %c10_193 = arith.constant 10 : index
    %c0_194 = arith.constant 0 : index
    %c0_195 = arith.constant 0 : index
    %112 = vector.load %arg1[%c1_192, %c10_193, %c0_194, %c0_195] : memref<2x14x8x28xf32, #tpu.memory_space<vmem>>, vector<1x1x8x28xf32>
    %113 = vector.shape_cast %112 : vector<1x1x8x28xf32> to vector<8x28xf32>
    %c0_196 = arith.constant 0 : index
    %c11_197 = arith.constant 11 : index
    %c0_198 = arith.constant 0 : index
    %c0_199 = arith.constant 0 : index
    %114 = vector.load %arg1[%c0_196, %c11_197, %c0_198, %c0_199] : memref<2x14x8x28xf32, #tpu.memory_space<vmem>>, vector<1x1x8x28xf32>
    %115 = vector.shape_cast %114 : vector<1x1x8x28xf32> to vector<8x28xf32>
    %c1_200 = arith.constant 1 : index
    %c11_201 = arith.constant 11 : index
    %c0_202 = arith.constant 0 : index
    %c0_203 = arith.constant 0 : index
    %116 = vector.load %arg1[%c1_200, %c11_201, %c0_202, %c0_203] : memref<2x14x8x28xf32, #tpu.memory_space<vmem>>, vector<1x1x8x28xf32>
    %117 = vector.shape_cast %116 : vector<1x1x8x28xf32> to vector<8x28xf32>
    %c0_204 = arith.constant 0 : index
    %c12 = arith.constant 12 : index
    %c0_205 = arith.constant 0 : index
    %c0_206 = arith.constant 0 : index
    %118 = vector.load %arg1[%c0_204, %c12, %c0_205, %c0_206] : memref<2x14x8x28xf32, #tpu.memory_space<vmem>>, vector<1x1x8x28xf32>
    %119 = vector.shape_cast %118 : vector<1x1x8x28xf32> to vector<8x28xf32>
    %120 = tpu.concatenate %111, %113, %115, %117, %119 in 1 : vector<8x28xf32>, vector<8x28xf32>, vector<8x28xf32>, vector<8x28xf32>, vector<8x28xf32> -> vector<8x140xf32>
    %c0_207 = arith.constant 0 : index
    %c11_208 = arith.constant 11 : index
    %c0_209 = arith.constant 0 : index
    %c0_210 = arith.constant 0 : index
    %121 = vector.load %arg1[%c0_207, %c11_208, %c0_209, %c0_210] : memref<2x14x8x28xf32, #tpu.memory_space<vmem>>, vector<1x1x8x28xf32>
    %122 = vector.shape_cast %121 : vector<1x1x8x28xf32> to vector<8x28xf32>
    %c1_211 = arith.constant 1 : index
    %c11_212 = arith.constant 11 : index
    %c0_213 = arith.constant 0 : index
    %c0_214 = arith.constant 0 : index
    %123 = vector.load %arg1[%c1_211, %c11_212, %c0_213, %c0_214] : memref<2x14x8x28xf32, #tpu.memory_space<vmem>>, vector<1x1x8x28xf32>
    %124 = vector.shape_cast %123 : vector<1x1x8x28xf32> to vector<8x28xf32>
    %c0_215 = arith.constant 0 : index
    %c12_216 = arith.constant 12 : index
    %c0_217 = arith.constant 0 : index
    %c0_218 = arith.constant 0 : index
    %125 = vector.load %arg1[%c0_215, %c12_216, %c0_217, %c0_218] : memref<2x14x8x28xf32, #tpu.memory_space<vmem>>, vector<1x1x8x28xf32>
    %126 = vector.shape_cast %125 : vector<1x1x8x28xf32> to vector<8x28xf32>
    %c1_219 = arith.constant 1 : index
    %c12_220 = arith.constant 12 : index
    %c0_221 = arith.constant 0 : index
    %c0_222 = arith.constant 0 : index
    %127 = vector.load %arg1[%c1_219, %c12_220, %c0_221, %c0_222] : memref<2x14x8x28xf32, #tpu.memory_space<vmem>>, vector<1x1x8x28xf32>
    %128 = vector.shape_cast %127 : vector<1x1x8x28xf32> to vector<8x28xf32>
    %c0_223 = arith.constant 0 : index
    %c13 = arith.constant 13 : index
    %c0_224 = arith.constant 0 : index
    %c0_225 = arith.constant 0 : index
    %129 = vector.load %arg1[%c0_223, %c13, %c0_224, %c0_225] : memref<2x14x8x28xf32, #tpu.memory_space<vmem>>, vector<1x1x8x28xf32>
    %130 = vector.shape_cast %129 : vector<1x1x8x28xf32> to vector<8x28xf32>
    %131 = tpu.concatenate %122, %124, %126, %128, %130 in 1 : vector<8x28xf32>, vector<8x28xf32>, vector<8x28xf32>, vector<8x28xf32>, vector<8x28xf32> -> vector<8x140xf32>
    %c1_226 = arith.constant 1 : index
    %c0_227 = arith.constant 0 : index
    %c0_228 = arith.constant 0 : index
    %c0_229 = arith.constant 0 : index
    %132 = vector.load %arg1[%c1_226, %c0_227, %c0_228, %c0_229] : memref<2x14x8x28xf32, #tpu.memory_space<vmem>>, vector<1x1x8x28xf32>
    %133 = vector.shape_cast %132 : vector<1x1x8x28xf32> to vector<8x28xf32>
    %c0_230 = arith.constant 0 : index
    %c1_231 = arith.constant 1 : index
    %c0_232 = arith.constant 0 : index
    %c0_233 = arith.constant 0 : index
    %134 = vector.load %arg1[%c0_230, %c1_231, %c0_232, %c0_233] : memref<2x14x8x28xf32, #tpu.memory_space<vmem>>, vector<1x1x8x28xf32>
    %135 = vector.shape_cast %134 : vector<1x1x8x28xf32> to vector<8x28xf32>
    %c1_234 = arith.constant 1 : index
    %c1_235 = arith.constant 1 : index
    %c0_236 = arith.constant 0 : index
    %c0_237 = arith.constant 0 : index
    %136 = vector.load %arg1[%c1_234, %c1_235, %c0_236, %c0_237] : memref<2x14x8x28xf32, #tpu.memory_space<vmem>>, vector<1x1x8x28xf32>
    %137 = vector.shape_cast %136 : vector<1x1x8x28xf32> to vector<8x28xf32>
    %c0_238 = arith.constant 0 : index
    %c2_239 = arith.constant 2 : index
    %c0_240 = arith.constant 0 : index
    %c0_241 = arith.constant 0 : index
    %138 = vector.load %arg1[%c0_238, %c2_239, %c0_240, %c0_241] : memref<2x14x8x28xf32, #tpu.memory_space<vmem>>, vector<1x1x8x28xf32>
    %139 = vector.shape_cast %138 : vector<1x1x8x28xf32> to vector<8x28xf32>
    %c1_242 = arith.constant 1 : index
    %c2_243 = arith.constant 2 : index
    %c0_244 = arith.constant 0 : index
    %c0_245 = arith.constant 0 : index
    %140 = vector.load %arg1[%c1_242, %c2_243, %c0_244, %c0_245] : memref<2x14x8x28xf32, #tpu.memory_space<vmem>>, vector<1x1x8x28xf32>
    %141 = vector.shape_cast %140 : vector<1x1x8x28xf32> to vector<8x28xf32>
    %142 = tpu.concatenate %133, %135, %137, %139, %141 in 1 : vector<8x28xf32>, vector<8x28xf32>, vector<8x28xf32>, vector<8x28xf32>, vector<8x28xf32> -> vector<8x140xf32>
    %c1_246 = arith.constant 1 : index
    %c1_247 = arith.constant 1 : index
    %c0_248 = arith.constant 0 : index
    %c0_249 = arith.constant 0 : index
    %143 = vector.load %arg1[%c1_246, %c1_247, %c0_248, %c0_249] : memref<2x14x8x28xf32, #tpu.memory_space<vmem>>, vector<1x1x8x28xf32>
    %144 = vector.shape_cast %143 : vector<1x1x8x28xf32> to vector<8x28xf32>
    %c0_250 = arith.constant 0 : index
    %c2_251 = arith.constant 2 : index
    %c0_252 = arith.constant 0 : index
    %c0_253 = arith.constant 0 : index
    %145 = vector.load %arg1[%c0_250, %c2_251, %c0_252, %c0_253] : memref<2x14x8x28xf32, #tpu.memory_space<vmem>>, vector<1x1x8x28xf32>
    %146 = vector.shape_cast %145 : vector<1x1x8x28xf32> to vector<8x28xf32>
    %c1_254 = arith.constant 1 : index
    %c2_255 = arith.constant 2 : index
    %c0_256 = arith.constant 0 : index
    %c0_257 = arith.constant 0 : index
    %147 = vector.load %arg1[%c1_254, %c2_255, %c0_256, %c0_257] : memref<2x14x8x28xf32, #tpu.memory_space<vmem>>, vector<1x1x8x28xf32>
    %148 = vector.shape_cast %147 : vector<1x1x8x28xf32> to vector<8x28xf32>
    %c0_258 = arith.constant 0 : index
    %c3_259 = arith.constant 3 : index
    %c0_260 = arith.constant 0 : index
    %c0_261 = arith.constant 0 : index
    %149 = vector.load %arg1[%c0_258, %c3_259, %c0_260, %c0_261] : memref<2x14x8x28xf32, #tpu.memory_space<vmem>>, vector<1x1x8x28xf32>
    %150 = vector.shape_cast %149 : vector<1x1x8x28xf32> to vector<8x28xf32>
    %c1_262 = arith.constant 1 : index
    %c3_263 = arith.constant 3 : index
    %c0_264 = arith.constant 0 : index
    %c0_265 = arith.constant 0 : index
    %151 = vector.load %arg1[%c1_262, %c3_263, %c0_264, %c0_265] : memref<2x14x8x28xf32, #tpu.memory_space<vmem>>, vector<1x1x8x28xf32>
    %152 = vector.shape_cast %151 : vector<1x1x8x28xf32> to vector<8x28xf32>
    %153 = tpu.concatenate %144, %146, %148, %150, %152 in 1 : vector<8x28xf32>, vector<8x28xf32>, vector<8x28xf32>, vector<8x28xf32>, vector<8x28xf32> -> vector<8x140xf32>
    %c1_266 = arith.constant 1 : index
    %c2_267 = arith.constant 2 : index
    %c0_268 = arith.constant 0 : index
    %c0_269 = arith.constant 0 : index
    %154 = vector.load %arg1[%c1_266, %c2_267, %c0_268, %c0_269] : memref<2x14x8x28xf32, #tpu.memory_space<vmem>>, vector<1x1x8x28xf32>
    %155 = vector.shape_cast %154 : vector<1x1x8x28xf32> to vector<8x28xf32>
    %c0_270 = arith.constant 0 : index
    %c3_271 = arith.constant 3 : index
    %c0_272 = arith.constant 0 : index
    %c0_273 = arith.constant 0 : index
    %156 = vector.load %arg1[%c0_270, %c3_271, %c0_272, %c0_273] : memref<2x14x8x28xf32, #tpu.memory_space<vmem>>, vector<1x1x8x28xf32>
    %157 = vector.shape_cast %156 : vector<1x1x8x28xf32> to vector<8x28xf32>
    %c1_274 = arith.constant 1 : index
    %c3_275 = arith.constant 3 : index
    %c0_276 = arith.constant 0 : index
    %c0_277 = arith.constant 0 : index
    %158 = vector.load %arg1[%c1_274, %c3_275, %c0_276, %c0_277] : memref<2x14x8x28xf32, #tpu.memory_space<vmem>>, vector<1x1x8x28xf32>
    %159 = vector.shape_cast %158 : vector<1x1x8x28xf32> to vector<8x28xf32>
    %c0_278 = arith.constant 0 : index
    %c4_279 = arith.constant 4 : index
    %c0_280 = arith.constant 0 : index
    %c0_281 = arith.constant 0 : index
    %160 = vector.load %arg1[%c0_278, %c4_279, %c0_280, %c0_281] : memref<2x14x8x28xf32, #tpu.memory_space<vmem>>, vector<1x1x8x28xf32>
    %161 = vector.shape_cast %160 : vector<1x1x8x28xf32> to vector<8x28xf32>
    %c1_282 = arith.constant 1 : index
    %c4_283 = arith.constant 4 : index
    %c0_284 = arith.constant 0 : index
    %c0_285 = arith.constant 0 : index
    %162 = vector.load %arg1[%c1_282, %c4_283, %c0_284, %c0_285] : memref<2x14x8x28xf32, #tpu.memory_space<vmem>>, vector<1x1x8x28xf32>
    %163 = vector.shape_cast %162 : vector<1x1x8x28xf32> to vector<8x28xf32>
    %164 = tpu.concatenate %155, %157, %159, %161, %163 in 1 : vector<8x28xf32>, vector<8x28xf32>, vector<8x28xf32>, vector<8x28xf32>, vector<8x28xf32> -> vector<8x140xf32>
    %c1_286 = arith.constant 1 : index
    %c3_287 = arith.constant 3 : index
    %c0_288 = arith.constant 0 : index
    %c0_289 = arith.constant 0 : index
    %165 = vector.load %arg1[%c1_286, %c3_287, %c0_288, %c0_289] : memref<2x14x8x28xf32, #tpu.memory_space<vmem>>, vector<1x1x8x28xf32>
    %166 = vector.shape_cast %165 : vector<1x1x8x28xf32> to vector<8x28xf32>
    %c0_290 = arith.constant 0 : index
    %c4_291 = arith.constant 4 : index
    %c0_292 = arith.constant 0 : index
    %c0_293 = arith.constant 0 : index
    %167 = vector.load %arg1[%c0_290, %c4_291, %c0_292, %c0_293] : memref<2x14x8x28xf32, #tpu.memory_space<vmem>>, vector<1x1x8x28xf32>
    %168 = vector.shape_cast %167 : vector<1x1x8x28xf32> to vector<8x28xf32>
    %c1_294 = arith.constant 1 : index
    %c4_295 = arith.constant 4 : index
    %c0_296 = arith.constant 0 : index
    %c0_297 = arith.constant 0 : index
    %169 = vector.load %arg1[%c1_294, %c4_295, %c0_296, %c0_297] : memref<2x14x8x28xf32, #tpu.memory_space<vmem>>, vector<1x1x8x28xf32>
    %170 = vector.shape_cast %169 : vector<1x1x8x28xf32> to vector<8x28xf32>
    %c0_298 = arith.constant 0 : index
    %c5_299 = arith.constant 5 : index
    %c0_300 = arith.constant 0 : index
    %c0_301 = arith.constant 0 : index
    %171 = vector.load %arg1[%c0_298, %c5_299, %c0_300, %c0_301] : memref<2x14x8x28xf32, #tpu.memory_space<vmem>>, vector<1x1x8x28xf32>
    %172 = vector.shape_cast %171 : vector<1x1x8x28xf32> to vector<8x28xf32>
    %c1_302 = arith.constant 1 : index
    %c5_303 = arith.constant 5 : index
    %c0_304 = arith.constant 0 : index
    %c0_305 = arith.constant 0 : index
    %173 = vector.load %arg1[%c1_302, %c5_303, %c0_304, %c0_305] : memref<2x14x8x28xf32, #tpu.memory_space<vmem>>, vector<1x1x8x28xf32>
    %174 = vector.shape_cast %173 : vector<1x1x8x28xf32> to vector<8x28xf32>
    %175 = tpu.concatenate %166, %168, %170, %172, %174 in 1 : vector<8x28xf32>, vector<8x28xf32>, vector<8x28xf32>, vector<8x28xf32>, vector<8x28xf32> -> vector<8x140xf32>
    %c1_306 = arith.constant 1 : index
    %c4_307 = arith.constant 4 : index
    %c0_308 = arith.constant 0 : index
    %c0_309 = arith.constant 0 : index
    %176 = vector.load %arg1[%c1_306, %c4_307, %c0_308, %c0_309] : memref<2x14x8x28xf32, #tpu.memory_space<vmem>>, vector<1x1x8x28xf32>
    %177 = vector.shape_cast %176 : vector<1x1x8x28xf32> to vector<8x28xf32>
    %c0_310 = arith.constant 0 : index
    %c5_311 = arith.constant 5 : index
    %c0_312 = arith.constant 0 : index
    %c0_313 = arith.constant 0 : index
    %178 = vector.load %arg1[%c0_310, %c5_311, %c0_312, %c0_313] : memref<2x14x8x28xf32, #tpu.memory_space<vmem>>, vector<1x1x8x28xf32>
    %179 = vector.shape_cast %178 : vector<1x1x8x28xf32> to vector<8x28xf32>
    %c1_314 = arith.constant 1 : index
    %c5_315 = arith.constant 5 : index
    %c0_316 = arith.constant 0 : index
    %c0_317 = arith.constant 0 : index
    %180 = vector.load %arg1[%c1_314, %c5_315, %c0_316, %c0_317] : memref<2x14x8x28xf32, #tpu.memory_space<vmem>>, vector<1x1x8x28xf32>
    %181 = vector.shape_cast %180 : vector<1x1x8x28xf32> to vector<8x28xf32>
    %c0_318 = arith.constant 0 : index
    %c6_319 = arith.constant 6 : index
    %c0_320 = arith.constant 0 : index
    %c0_321 = arith.constant 0 : index
    %182 = vector.load %arg1[%c0_318, %c6_319, %c0_320, %c0_321] : memref<2x14x8x28xf32, #tpu.memory_space<vmem>>, vector<1x1x8x28xf32>
    %183 = vector.shape_cast %182 : vector<1x1x8x28xf32> to vector<8x28xf32>
    %c1_322 = arith.constant 1 : index
    %c6_323 = arith.constant 6 : index
    %c0_324 = arith.constant 0 : index
    %c0_325 = arith.constant 0 : index
    %184 = vector.load %arg1[%c1_322, %c6_323, %c0_324, %c0_325] : memref<2x14x8x28xf32, #tpu.memory_space<vmem>>, vector<1x1x8x28xf32>
    %185 = vector.shape_cast %184 : vector<1x1x8x28xf32> to vector<8x28xf32>
    %186 = tpu.concatenate %177, %179, %181, %183, %185 in 1 : vector<8x28xf32>, vector<8x28xf32>, vector<8x28xf32>, vector<8x28xf32>, vector<8x28xf32> -> vector<8x140xf32>
    %c1_326 = arith.constant 1 : index
    %c5_327 = arith.constant 5 : index
    %c0_328 = arith.constant 0 : index
    %c0_329 = arith.constant 0 : index
    %187 = vector.load %arg1[%c1_326, %c5_327, %c0_328, %c0_329] : memref<2x14x8x28xf32, #tpu.memory_space<vmem>>, vector<1x1x8x28xf32>
    %188 = vector.shape_cast %187 : vector<1x1x8x28xf32> to vector<8x28xf32>
    %c0_330 = arith.constant 0 : index
    %c6_331 = arith.constant 6 : index
    %c0_332 = arith.constant 0 : index
    %c0_333 = arith.constant 0 : index
    %189 = vector.load %arg1[%c0_330, %c6_331, %c0_332, %c0_333] : memref<2x14x8x28xf32, #tpu.memory_space<vmem>>, vector<1x1x8x28xf32>
    %190 = vector.shape_cast %189 : vector<1x1x8x28xf32> to vector<8x28xf32>
    %c1_334 = arith.constant 1 : index
    %c6_335 = arith.constant 6 : index
    %c0_336 = arith.constant 0 : index
    %c0_337 = arith.constant 0 : index
    %191 = vector.load %arg1[%c1_334, %c6_335, %c0_336, %c0_337] : memref<2x14x8x28xf32, #tpu.memory_space<vmem>>, vector<1x1x8x28xf32>
    %192 = vector.shape_cast %191 : vector<1x1x8x28xf32> to vector<8x28xf32>
    %c0_338 = arith.constant 0 : index
    %c7_339 = arith.constant 7 : index
    %c0_340 = arith.constant 0 : index
    %c0_341 = arith.constant 0 : index
    %193 = vector.load %arg1[%c0_338, %c7_339, %c0_340, %c0_341] : memref<2x14x8x28xf32, #tpu.memory_space<vmem>>, vector<1x1x8x28xf32>
    %194 = vector.shape_cast %193 : vector<1x1x8x28xf32> to vector<8x28xf32>
    %c1_342 = arith.constant 1 : index
    %c7_343 = arith.constant 7 : index
    %c0_344 = arith.constant 0 : index
    %c0_345 = arith.constant 0 : index
    %195 = vector.load %arg1[%c1_342, %c7_343, %c0_344, %c0_345] : memref<2x14x8x28xf32, #tpu.memory_space<vmem>>, vector<1x1x8x28xf32>
    %196 = vector.shape_cast %195 : vector<1x1x8x28xf32> to vector<8x28xf32>
    %197 = tpu.concatenate %188, %190, %192, %194, %196 in 1 : vector<8x28xf32>, vector<8x28xf32>, vector<8x28xf32>, vector<8x28xf32>, vector<8x28xf32> -> vector<8x140xf32>
    %c1_346 = arith.constant 1 : index
    %c6_347 = arith.constant 6 : index
    %c0_348 = arith.constant 0 : index
    %c0_349 = arith.constant 0 : index
    %198 = vector.load %arg1[%c1_346, %c6_347, %c0_348, %c0_349] : memref<2x14x8x28xf32, #tpu.memory_space<vmem>>, vector<1x1x8x28xf32>
    %199 = vector.shape_cast %198 : vector<1x1x8x28xf32> to vector<8x28xf32>
    %c0_350 = arith.constant 0 : index
    %c7_351 = arith.constant 7 : index
    %c0_352 = arith.constant 0 : index
    %c0_353 = arith.constant 0 : index
    %200 = vector.load %arg1[%c0_350, %c7_351, %c0_352, %c0_353] : memref<2x14x8x28xf32, #tpu.memory_space<vmem>>, vector<1x1x8x28xf32>
    %201 = vector.shape_cast %200 : vector<1x1x8x28xf32> to vector<8x28xf32>
    %c1_354 = arith.constant 1 : index
    %c7_355 = arith.constant 7 : index
    %c0_356 = arith.constant 0 : index
    %c0_357 = arith.constant 0 : index
    %202 = vector.load %arg1[%c1_354, %c7_355, %c0_356, %c0_357] : memref<2x14x8x28xf32, #tpu.memory_space<vmem>>, vector<1x1x8x28xf32>
    %203 = vector.shape_cast %202 : vector<1x1x8x28xf32> to vector<8x28xf32>
    %c0_358 = arith.constant 0 : index
    %c8_359 = arith.constant 8 : index
    %c0_360 = arith.constant 0 : index
    %c0_361 = arith.constant 0 : index
    %204 = vector.load %arg1[%c0_358, %c8_359, %c0_360, %c0_361] : memref<2x14x8x28xf32, #tpu.memory_space<vmem>>, vector<1x1x8x28xf32>
    %205 = vector.shape_cast %204 : vector<1x1x8x28xf32> to vector<8x28xf32>
    %c1_362 = arith.constant 1 : index
    %c8_363 = arith.constant 8 : index
    %c0_364 = arith.constant 0 : index
    %c0_365 = arith.constant 0 : index
    %206 = vector.load %arg1[%c1_362, %c8_363, %c0_364, %c0_365] : memref<2x14x8x28xf32, #tpu.memory_space<vmem>>, vector<1x1x8x28xf32>
    %207 = vector.shape_cast %206 : vector<1x1x8x28xf32> to vector<8x28xf32>
    %208 = tpu.concatenate %199, %201, %203, %205, %207 in 1 : vector<8x28xf32>, vector<8x28xf32>, vector<8x28xf32>, vector<8x28xf32>, vector<8x28xf32> -> vector<8x140xf32>
    %c1_366 = arith.constant 1 : index
    %c7_367 = arith.constant 7 : index
    %c0_368 = arith.constant 0 : index
    %c0_369 = arith.constant 0 : index
    %209 = vector.load %arg1[%c1_366, %c7_367, %c0_368, %c0_369] : memref<2x14x8x28xf32, #tpu.memory_space<vmem>>, vector<1x1x8x28xf32>
    %210 = vector.shape_cast %209 : vector<1x1x8x28xf32> to vector<8x28xf32>
    %c0_370 = arith.constant 0 : index
    %c8_371 = arith.constant 8 : index
    %c0_372 = arith.constant 0 : index
    %c0_373 = arith.constant 0 : index
    %211 = vector.load %arg1[%c0_370, %c8_371, %c0_372, %c0_373] : memref<2x14x8x28xf32, #tpu.memory_space<vmem>>, vector<1x1x8x28xf32>
    %212 = vector.shape_cast %211 : vector<1x1x8x28xf32> to vector<8x28xf32>
    %c1_374 = arith.constant 1 : index
    %c8_375 = arith.constant 8 : index
    %c0_376 = arith.constant 0 : index
    %c0_377 = arith.constant 0 : index
    %213 = vector.load %arg1[%c1_374, %c8_375, %c0_376, %c0_377] : memref<2x14x8x28xf32, #tpu.memory_space<vmem>>, vector<1x1x8x28xf32>
    %214 = vector.shape_cast %213 : vector<1x1x8x28xf32> to vector<8x28xf32>
    %c0_378 = arith.constant 0 : index
    %c9_379 = arith.constant 9 : index
    %c0_380 = arith.constant 0 : index
    %c0_381 = arith.constant 0 : index
    %215 = vector.load %arg1[%c0_378, %c9_379, %c0_380, %c0_381] : memref<2x14x8x28xf32, #tpu.memory_space<vmem>>, vector<1x1x8x28xf32>
    %216 = vector.shape_cast %215 : vector<1x1x8x28xf32> to vector<8x28xf32>
    %c1_382 = arith.constant 1 : index
    %c9_383 = arith.constant 9 : index
    %c0_384 = arith.constant 0 : index
    %c0_385 = arith.constant 0 : index
    %217 = vector.load %arg1[%c1_382, %c9_383, %c0_384, %c0_385] : memref<2x14x8x28xf32, #tpu.memory_space<vmem>>, vector<1x1x8x28xf32>
    %218 = vector.shape_cast %217 : vector<1x1x8x28xf32> to vector<8x28xf32>
    %219 = tpu.concatenate %210, %212, %214, %216, %218 in 1 : vector<8x28xf32>, vector<8x28xf32>, vector<8x28xf32>, vector<8x28xf32>, vector<8x28xf32> -> vector<8x140xf32>
    %c1_386 = arith.constant 1 : index
    %c8_387 = arith.constant 8 : index
    %c0_388 = arith.constant 0 : index
    %c0_389 = arith.constant 0 : index
    %220 = vector.load %arg1[%c1_386, %c8_387, %c0_388, %c0_389] : memref<2x14x8x28xf32, #tpu.memory_space<vmem>>, vector<1x1x8x28xf32>
    %221 = vector.shape_cast %220 : vector<1x1x8x28xf32> to vector<8x28xf32>
    %c0_390 = arith.constant 0 : index
    %c9_391 = arith.constant 9 : index
    %c0_392 = arith.constant 0 : index
    %c0_393 = arith.constant 0 : index
    %222 = vector.load %arg1[%c0_390, %c9_391, %c0_392, %c0_393] : memref<2x14x8x28xf32, #tpu.memory_space<vmem>>, vector<1x1x8x28xf32>
    %223 = vector.shape_cast %222 : vector<1x1x8x28xf32> to vector<8x28xf32>
    %c1_394 = arith.constant 1 : index
    %c9_395 = arith.constant 9 : index
    %c0_396 = arith.constant 0 : index
    %c0_397 = arith.constant 0 : index
    %224 = vector.load %arg1[%c1_394, %c9_395, %c0_396, %c0_397] : memref<2x14x8x28xf32, #tpu.memory_space<vmem>>, vector<1x1x8x28xf32>
    %225 = vector.shape_cast %224 : vector<1x1x8x28xf32> to vector<8x28xf32>
    %c0_398 = arith.constant 0 : index
    %c10_399 = arith.constant 10 : index
    %c0_400 = arith.constant 0 : index
    %c0_401 = arith.constant 0 : index
    %226 = vector.load %arg1[%c0_398, %c10_399, %c0_400, %c0_401] : memref<2x14x8x28xf32, #tpu.memory_space<vmem>>, vector<1x1x8x28xf32>
    %227 = vector.shape_cast %226 : vector<1x1x8x28xf32> to vector<8x28xf32>
    %c1_402 = arith.constant 1 : index
    %c10_403 = arith.constant 10 : index
    %c0_404 = arith.constant 0 : index
    %c0_405 = arith.constant 0 : index
    %228 = vector.load %arg1[%c1_402, %c10_403, %c0_404, %c0_405] : memref<2x14x8x28xf32, #tpu.memory_space<vmem>>, vector<1x1x8x28xf32>
    %229 = vector.shape_cast %228 : vector<1x1x8x28xf32> to vector<8x28xf32>
    %230 = tpu.concatenate %221, %223, %225, %227, %229 in 1 : vector<8x28xf32>, vector<8x28xf32>, vector<8x28xf32>, vector<8x28xf32>, vector<8x28xf32> -> vector<8x140xf32>
    %c1_406 = arith.constant 1 : index
    %c9_407 = arith.constant 9 : index
    %c0_408 = arith.constant 0 : index
    %c0_409 = arith.constant 0 : index
    %231 = vector.load %arg1[%c1_406, %c9_407, %c0_408, %c0_409] : memref<2x14x8x28xf32, #tpu.memory_space<vmem>>, vector<1x1x8x28xf32>
    %232 = vector.shape_cast %231 : vector<1x1x8x28xf32> to vector<8x28xf32>
    %c0_410 = arith.constant 0 : index
    %c10_411 = arith.constant 10 : index
    %c0_412 = arith.constant 0 : index
    %c0_413 = arith.constant 0 : index
    %233 = vector.load %arg1[%c0_410, %c10_411, %c0_412, %c0_413] : memref<2x14x8x28xf32, #tpu.memory_space<vmem>>, vector<1x1x8x28xf32>
    %234 = vector.shape_cast %233 : vector<1x1x8x28xf32> to vector<8x28xf32>
    %c1_414 = arith.constant 1 : index
    %c10_415 = arith.constant 10 : index
    %c0_416 = arith.constant 0 : index
    %c0_417 = arith.constant 0 : index
    %235 = vector.load %arg1[%c1_414, %c10_415, %c0_416, %c0_417] : memref<2x14x8x28xf32, #tpu.memory_space<vmem>>, vector<1x1x8x28xf32>
    %236 = vector.shape_cast %235 : vector<1x1x8x28xf32> to vector<8x28xf32>
    %c0_418 = arith.constant 0 : index
    %c11_419 = arith.constant 11 : index
    %c0_420 = arith.constant 0 : index
    %c0_421 = arith.constant 0 : index
    %237 = vector.load %arg1[%c0_418, %c11_419, %c0_420, %c0_421] : memref<2x14x8x28xf32, #tpu.memory_space<vmem>>, vector<1x1x8x28xf32>
    %238 = vector.shape_cast %237 : vector<1x1x8x28xf32> to vector<8x28xf32>
    %c1_422 = arith.constant 1 : index
    %c11_423 = arith.constant 11 : index
    %c0_424 = arith.constant 0 : index
    %c0_425 = arith.constant 0 : index
    %239 = vector.load %arg1[%c1_422, %c11_423, %c0_424, %c0_425] : memref<2x14x8x28xf32, #tpu.memory_space<vmem>>, vector<1x1x8x28xf32>
    %240 = vector.shape_cast %239 : vector<1x1x8x28xf32> to vector<8x28xf32>
    %241 = tpu.concatenate %232, %234, %236, %238, %240 in 1 : vector<8x28xf32>, vector<8x28xf32>, vector<8x28xf32>, vector<8x28xf32>, vector<8x28xf32> -> vector<8x140xf32>
    %c1_426 = arith.constant 1 : index
    %c10_427 = arith.constant 10 : index
    %c0_428 = arith.constant 0 : index
    %c0_429 = arith.constant 0 : index
    %242 = vector.load %arg1[%c1_426, %c10_427, %c0_428, %c0_429] : memref<2x14x8x28xf32, #tpu.memory_space<vmem>>, vector<1x1x8x28xf32>
    %243 = vector.shape_cast %242 : vector<1x1x8x28xf32> to vector<8x28xf32>
    %c0_430 = arith.constant 0 : index
    %c11_431 = arith.constant 11 : index
    %c0_432 = arith.constant 0 : index
    %c0_433 = arith.constant 0 : index
    %244 = vector.load %arg1[%c0_430, %c11_431, %c0_432, %c0_433] : memref<2x14x8x28xf32, #tpu.memory_space<vmem>>, vector<1x1x8x28xf32>
    %245 = vector.shape_cast %244 : vector<1x1x8x28xf32> to vector<8x28xf32>
    %c1_434 = arith.constant 1 : index
    %c11_435 = arith.constant 11 : index
    %c0_436 = arith.constant 0 : index
    %c0_437 = arith.constant 0 : index
    %246 = vector.load %arg1[%c1_434, %c11_435, %c0_436, %c0_437] : memref<2x14x8x28xf32, #tpu.memory_space<vmem>>, vector<1x1x8x28xf32>
    %247 = vector.shape_cast %246 : vector<1x1x8x28xf32> to vector<8x28xf32>
    %c0_438 = arith.constant 0 : index
    %c12_439 = arith.constant 12 : index
    %c0_440 = arith.constant 0 : index
    %c0_441 = arith.constant 0 : index
    %248 = vector.load %arg1[%c0_438, %c12_439, %c0_440, %c0_441] : memref<2x14x8x28xf32, #tpu.memory_space<vmem>>, vector<1x1x8x28xf32>
    %249 = vector.shape_cast %248 : vector<1x1x8x28xf32> to vector<8x28xf32>
    %c1_442 = arith.constant 1 : index
    %c12_443 = arith.constant 12 : index
    %c0_444 = arith.constant 0 : index
    %c0_445 = arith.constant 0 : index
    %250 = vector.load %arg1[%c1_442, %c12_443, %c0_444, %c0_445] : memref<2x14x8x28xf32, #tpu.memory_space<vmem>>, vector<1x1x8x28xf32>
    %251 = vector.shape_cast %250 : vector<1x1x8x28xf32> to vector<8x28xf32>
    %252 = tpu.concatenate %243, %245, %247, %249, %251 in 1 : vector<8x28xf32>, vector<8x28xf32>, vector<8x28xf32>, vector<8x28xf32>, vector<8x28xf32> -> vector<8x140xf32>
    %c1_446 = arith.constant 1 : index
    %c11_447 = arith.constant 11 : index
    %c0_448 = arith.constant 0 : index
    %c0_449 = arith.constant 0 : index
    %253 = vector.load %arg1[%c1_446, %c11_447, %c0_448, %c0_449] : memref<2x14x8x28xf32, #tpu.memory_space<vmem>>, vector<1x1x8x28xf32>
    %254 = vector.shape_cast %253 : vector<1x1x8x28xf32> to vector<8x28xf32>
    %c0_450 = arith.constant 0 : index
    %c12_451 = arith.constant 12 : index
    %c0_452 = arith.constant 0 : index
    %c0_453 = arith.constant 0 : index
    %255 = vector.load %arg1[%c0_450, %c12_451, %c0_452, %c0_453] : memref<2x14x8x28xf32, #tpu.memory_space<vmem>>, vector<1x1x8x28xf32>
    %256 = vector.shape_cast %255 : vector<1x1x8x28xf32> to vector<8x28xf32>
    %c1_454 = arith.constant 1 : index
    %c12_455 = arith.constant 12 : index
    %c0_456 = arith.constant 0 : index
    %c0_457 = arith.constant 0 : index
    %257 = vector.load %arg1[%c1_454, %c12_455, %c0_456, %c0_457] : memref<2x14x8x28xf32, #tpu.memory_space<vmem>>, vector<1x1x8x28xf32>
    %258 = vector.shape_cast %257 : vector<1x1x8x28xf32> to vector<8x28xf32>
    %c0_458 = arith.constant 0 : index
    %c13_459 = arith.constant 13 : index
    %c0_460 = arith.constant 0 : index
    %c0_461 = arith.constant 0 : index
    %259 = vector.load %arg1[%c0_458, %c13_459, %c0_460, %c0_461] : memref<2x14x8x28xf32, #tpu.memory_space<vmem>>, vector<1x1x8x28xf32>
    %260 = vector.shape_cast %259 : vector<1x1x8x28xf32> to vector<8x28xf32>
    %c1_462 = arith.constant 1 : index
    %c13_463 = arith.constant 13 : index
    %c0_464 = arith.constant 0 : index
    %c0_465 = arith.constant 0 : index
    %261 = vector.load %arg1[%c1_462, %c13_463, %c0_464, %c0_465] : memref<2x14x8x28xf32, #tpu.memory_space<vmem>>, vector<1x1x8x28xf32>
    %262 = vector.shape_cast %261 : vector<1x1x8x28xf32> to vector<8x28xf32>
    %263 = tpu.concatenate %254, %256, %258, %260, %262 in 1 : vector<8x28xf32>, vector<8x28xf32>, vector<8x28xf32>, vector<8x28xf32>, vector<8x28xf32> -> vector<8x140xf32>
    %264 = tpu.concatenate %10, %21, %32, %43, %54, %65, %76, %87, %98, %109, %120, %131, %142, %153, %164, %175 in 0 : vector<8x140xf32>, vector<8x140xf32>, vector<8x140xf32>, vector<8x140xf32>, vector<8x140xf32>, vector<8x140xf32>, vector<8x140xf32>, vector<8x140xf32>, vector<8x140xf32>, vector<8x140xf32>, vector<8x140xf32>, vector<8x140xf32>, vector<8x140xf32>, vector<8x140xf32>, vector<8x140xf32>, vector<8x140xf32> -> vector<128x140xf32>
    %265 = tpu.concatenate %186, %197, %208, %219, %230, %241, %252, %263 in 0 : vector<8x140xf32>, vector<8x140xf32>, vector<8x140xf32>, vector<8x140xf32>, vector<8x140xf32>, vector<8x140xf32>, vector<8x140xf32>, vector<8x140xf32> -> vector<64x140xf32>
    %266 = tpu.concatenate %264, %265 in 0 : vector<128x140xf32>, vector<64x140xf32> -> vector<192x140xf32>
    %267 = arith.truncf %266 : vector<192x140xf32> to vector<192x140xbf16>
    %c0_466 = arith.constant 0 : index
    %c0_467 = arith.constant 0 : index
    %c0_468 = arith.constant 0 : index
    %268 = vector.load %arg2[%c0_466, %c0_467, %c0_468] : memref<2x140x128xbf16, #tpu.memory_space<vmem>>, vector<1x140x128xbf16>
    %269 = vector.shape_cast %268 : vector<1x140x128xbf16> to vector<140x128xbf16>
    %cst = arith.constant dense<0.000000e+00> : vector<192x128xf32>
    %270 = tpu.matmul %267, %269, %cst {dimension_numbers = #tpu.dot_dimension_numbers<[1], [0], [0], [1], [0, 0, 1, 1], [], []>} : vector<192x140xbf16>, vector<140x128xbf16>, vector<192x128xf32> -> vector<192x128xf32>
    %271 = vector.extract_strided_slice %270 {offsets = [0, 0], sizes = [96, 128], strides = [1, 1]} : vector<192x128xf32> to vector<96x128xf32>
    %272 = vector.extract_strided_slice %270 {offsets = [96, 0], sizes = [96, 128], strides = [1, 1]} : vector<192x128xf32> to vector<96x128xf32>
    %273 = arith.maximumf %271, %272 : vector<96x128xf32>
    %c1_469 = arith.constant 1 : index
    %c0_470 = arith.constant 0 : index
    %c0_471 = arith.constant 0 : index
    %274 = vector.load %arg2[%c1_469, %c0_470, %c0_471] : memref<2x140x128xbf16, #tpu.memory_space<vmem>>, vector<1x140x128xbf16>
    %275 = vector.shape_cast %274 : vector<1x140x128xbf16> to vector<140x128xbf16>
    %cst_472 = arith.constant dense<0.000000e+00> : vector<192x128xf32>
    %276 = tpu.matmul %267, %275, %cst_472 {dimension_numbers = #tpu.dot_dimension_numbers<[1], [0], [0], [1], [0, 0, 1, 1], [], []>} : vector<192x140xbf16>, vector<140x128xbf16>, vector<192x128xf32> -> vector<192x128xf32>
    %277 = vector.extract_strided_slice %276 {offsets = [0, 0], sizes = [96, 128], strides = [1, 1]} : vector<192x128xf32> to vector<96x128xf32>
    %278 = vector.extract_strided_slice %276 {offsets = [96, 0], sizes = [96, 128], strides = [1, 1]} : vector<192x128xf32> to vector<96x128xf32>
    %279 = arith.maximumf %277, %278 : vector<96x128xf32>
    %280 = arith.maximumf %273, %279 : vector<96x128xf32>
    %c0_473 = arith.constant 0 : index
    %c0_474 = arith.constant 0 : index
    %281 = vector.load %arg3[%c0_473, %c0_474] : memref<1x128xf32, #tpu.memory_space<vmem>>, vector<1x128xf32>
    %282 = vector.broadcast %281 : vector<1x128xf32> to vector<96x128xf32>
    %283 = arith.addf %280, %282 : vector<96x128xf32>
    %cst_475 = arith.constant 0.000000e+00 : f32
    %284 = vector.broadcast %cst_475 : f32 to vector<96x128xf32>
    %285 = arith.maximumf %283, %284 : vector<96x128xf32>
    %286 = vector.extract_strided_slice %285 {offsets = [0, 0], sizes = [8, 128], strides = [1, 1]} : vector<96x128xf32> to vector<8x128xf32>
    %287 = vector.extract_strided_slice %285 {offsets = [8, 0], sizes = [8, 128], strides = [1, 1]} : vector<96x128xf32> to vector<8x128xf32>
    %288 = vector.extract_strided_slice %285 {offsets = [16, 0], sizes = [8, 128], strides = [1, 1]} : vector<96x128xf32> to vector<8x128xf32>
    %289 = vector.extract_strided_slice %285 {offsets = [24, 0], sizes = [8, 128], strides = [1, 1]} : vector<96x128xf32> to vector<8x128xf32>
    %290 = vector.extract_strided_slice %285 {offsets = [32, 0], sizes = [8, 128], strides = [1, 1]} : vector<96x128xf32> to vector<8x128xf32>
    %291 = tpu.concatenate %286, %287, %288, %289, %290 in 1 : vector<8x128xf32>, vector<8x128xf32>, vector<8x128xf32>, vector<8x128xf32>, vector<8x128xf32> -> vector<8x640xf32>
    %292 = vector.extract_strided_slice %285 {offsets = [16, 0], sizes = [8, 128], strides = [1, 1]} : vector<96x128xf32> to vector<8x128xf32>
    %293 = vector.extract_strided_slice %285 {offsets = [24, 0], sizes = [8, 128], strides = [1, 1]} : vector<96x128xf32> to vector<8x128xf32>
    %294 = vector.extract_strided_slice %285 {offsets = [32, 0], sizes = [8, 128], strides = [1, 1]} : vector<96x128xf32> to vector<8x128xf32>
    %295 = vector.extract_strided_slice %285 {offsets = [40, 0], sizes = [8, 128], strides = [1, 1]} : vector<96x128xf32> to vector<8x128xf32>
    %296 = vector.extract_strided_slice %285 {offsets = [48, 0], sizes = [8, 128], strides = [1, 1]} : vector<96x128xf32> to vector<8x128xf32>
    %297 = tpu.concatenate %292, %293, %294, %295, %296 in 1 : vector<8x128xf32>, vector<8x128xf32>, vector<8x128xf32>, vector<8x128xf32>, vector<8x128xf32> -> vector<8x640xf32>
    %298 = vector.extract_strided_slice %285 {offsets = [32, 0], sizes = [8, 128], strides = [1, 1]} : vector<96x128xf32> to vector<8x128xf32>
    %299 = vector.extract_strided_slice %285 {offsets = [40, 0], sizes = [8, 128], strides = [1, 1]} : vector<96x128xf32> to vector<8x128xf32>
    %300 = vector.extract_strided_slice %285 {offsets = [48, 0], sizes = [8, 128], strides = [1, 1]} : vector<96x128xf32> to vector<8x128xf32>
    %301 = vector.extract_strided_slice %285 {offsets = [56, 0], sizes = [8, 128], strides = [1, 1]} : vector<96x128xf32> to vector<8x128xf32>
    %302 = vector.extract_strided_slice %285 {offsets = [64, 0], sizes = [8, 128], strides = [1, 1]} : vector<96x128xf32> to vector<8x128xf32>
    %303 = tpu.concatenate %298, %299, %300, %301, %302 in 1 : vector<8x128xf32>, vector<8x128xf32>, vector<8x128xf32>, vector<8x128xf32>, vector<8x128xf32> -> vector<8x640xf32>
    %304 = vector.extract_strided_slice %285 {offsets = [48, 0], sizes = [8, 128], strides = [1, 1]} : vector<96x128xf32> to vector<8x128xf32>
    %305 = vector.extract_strided_slice %285 {offsets = [56, 0], sizes = [8, 128], strides = [1, 1]} : vector<96x128xf32> to vector<8x128xf32>
    %306 = vector.extract_strided_slice %285 {offsets = [64, 0], sizes = [8, 128], strides = [1, 1]} : vector<96x128xf32> to vector<8x128xf32>
    %307 = vector.extract_strided_slice %285 {offsets = [72, 0], sizes = [8, 128], strides = [1, 1]} : vector<96x128xf32> to vector<8x128xf32>
    %308 = vector.extract_strided_slice %285 {offsets = [80, 0], sizes = [8, 128], strides = [1, 1]} : vector<96x128xf32> to vector<8x128xf32>
    %309 = tpu.concatenate %304, %305, %306, %307, %308 in 1 : vector<8x128xf32>, vector<8x128xf32>, vector<8x128xf32>, vector<8x128xf32>, vector<8x128xf32> -> vector<8x640xf32>
    %310 = vector.extract_strided_slice %285 {offsets = [8, 0], sizes = [8, 128], strides = [1, 1]} : vector<96x128xf32> to vector<8x128xf32>
    %311 = vector.extract_strided_slice %285 {offsets = [16, 0], sizes = [8, 128], strides = [1, 1]} : vector<96x128xf32> to vector<8x128xf32>
    %312 = vector.extract_strided_slice %285 {offsets = [24, 0], sizes = [8, 128], strides = [1, 1]} : vector<96x128xf32> to vector<8x128xf32>
    %313 = vector.extract_strided_slice %285 {offsets = [32, 0], sizes = [8, 128], strides = [1, 1]} : vector<96x128xf32> to vector<8x128xf32>
    %314 = vector.extract_strided_slice %285 {offsets = [40, 0], sizes = [8, 128], strides = [1, 1]} : vector<96x128xf32> to vector<8x128xf32>
    %315 = tpu.concatenate %310, %311, %312, %313, %314 in 1 : vector<8x128xf32>, vector<8x128xf32>, vector<8x128xf32>, vector<8x128xf32>, vector<8x128xf32> -> vector<8x640xf32>
    %316 = vector.extract_strided_slice %285 {offsets = [24, 0], sizes = [8, 128], strides = [1, 1]} : vector<96x128xf32> to vector<8x128xf32>
    %317 = vector.extract_strided_slice %285 {offsets = [32, 0], sizes = [8, 128], strides = [1, 1]} : vector<96x128xf32> to vector<8x128xf32>
    %318 = vector.extract_strided_slice %285 {offsets = [40, 0], sizes = [8, 128], strides = [1, 1]} : vector<96x128xf32> to vector<8x128xf32>
    %319 = vector.extract_strided_slice %285 {offsets = [48, 0], sizes = [8, 128], strides = [1, 1]} : vector<96x128xf32> to vector<8x128xf32>
    %320 = vector.extract_strided_slice %285 {offsets = [56, 0], sizes = [8, 128], strides = [1, 1]} : vector<96x128xf32> to vector<8x128xf32>
    %321 = tpu.concatenate %316, %317, %318, %319, %320 in 1 : vector<8x128xf32>, vector<8x128xf32>, vector<8x128xf32>, vector<8x128xf32>, vector<8x128xf32> -> vector<8x640xf32>
    %322 = vector.extract_strided_slice %285 {offsets = [40, 0], sizes = [8, 128], strides = [1, 1]} : vector<96x128xf32> to vector<8x128xf32>
    %323 = vector.extract_strided_slice %285 {offsets = [48, 0], sizes = [8, 128], strides = [1, 1]} : vector<96x128xf32> to vector<8x128xf32>
    %324 = vector.extract_strided_slice %285 {offsets = [56, 0], sizes = [8, 128], strides = [1, 1]} : vector<96x128xf32> to vector<8x128xf32>
    %325 = vector.extract_strided_slice %285 {offsets = [64, 0], sizes = [8, 128], strides = [1, 1]} : vector<96x128xf32> to vector<8x128xf32>
    %326 = vector.extract_strided_slice %285 {offsets = [72, 0], sizes = [8, 128], strides = [1, 1]} : vector<96x128xf32> to vector<8x128xf32>
    %327 = tpu.concatenate %322, %323, %324, %325, %326 in 1 : vector<8x128xf32>, vector<8x128xf32>, vector<8x128xf32>, vector<8x128xf32>, vector<8x128xf32> -> vector<8x640xf32>
    %328 = vector.extract_strided_slice %285 {offsets = [56, 0], sizes = [8, 128], strides = [1, 1]} : vector<96x128xf32> to vector<8x128xf32>
    %329 = vector.extract_strided_slice %285 {offsets = [64, 0], sizes = [8, 128], strides = [1, 1]} : vector<96x128xf32> to vector<8x128xf32>
    %330 = vector.extract_strided_slice %285 {offsets = [72, 0], sizes = [8, 128], strides = [1, 1]} : vector<96x128xf32> to vector<8x128xf32>
    %331 = vector.extract_strided_slice %285 {offsets = [80, 0], sizes = [8, 128], strides = [1, 1]} : vector<96x128xf32> to vector<8x128xf32>
    %332 = vector.extract_strided_slice %285 {offsets = [88, 0], sizes = [8, 128], strides = [1, 1]} : vector<96x128xf32> to vector<8x128xf32>
    %333 = tpu.concatenate %328, %329, %330, %331, %332 in 1 : vector<8x128xf32>, vector<8x128xf32>, vector<8x128xf32>, vector<8x128xf32>, vector<8x128xf32> -> vector<8x640xf32>
    %334 = tpu.concatenate %291, %297, %303, %309, %315, %321, %327, %333 in 0 : vector<8x640xf32>, vector<8x640xf32>, vector<8x640xf32>, vector<8x640xf32>, vector<8x640xf32>, vector<8x640xf32>, vector<8x640xf32>, vector<8x640xf32> -> vector<64x640xf32>
    %335 = arith.truncf %334 : vector<64x640xf32> to vector<64x640xbf16>
    %c0_476 = arith.constant 0 : index
    %c0_477 = arith.constant 0 : index
    %c0_478 = arith.constant 0 : index
    %336 = vector.load %arg4[%c0_476, %c0_477, %c0_478] : memref<2x640x128xbf16, #tpu.memory_space<vmem>>, vector<1x640x128xbf16>
    %337 = vector.shape_cast %336 : vector<1x640x128xbf16> to vector<640x128xbf16>
    %cst_479 = arith.constant dense<0.000000e+00> : vector<64x128xf32>
    %338 = tpu.matmul %335, %337, %cst_479 {dimension_numbers = #tpu.dot_dimension_numbers<[1], [0], [0], [1], [0, 0, 1, 1], [], []>} : vector<64x640xbf16>, vector<640x128xbf16>, vector<64x128xf32> -> vector<64x128xf32>
    %339 = vector.extract_strided_slice %338 {offsets = [0, 0], sizes = [32, 128], strides = [1, 1]} : vector<64x128xf32> to vector<32x128xf32>
    %340 = vector.extract_strided_slice %338 {offsets = [32, 0], sizes = [32, 128], strides = [1, 1]} : vector<64x128xf32> to vector<32x128xf32>
    %341 = arith.maximumf %339, %340 : vector<32x128xf32>
    %c1_480 = arith.constant 1 : index
    %c0_481 = arith.constant 0 : index
    %c0_482 = arith.constant 0 : index
    %342 = vector.load %arg4[%c1_480, %c0_481, %c0_482] : memref<2x640x128xbf16, #tpu.memory_space<vmem>>, vector<1x640x128xbf16>
    %343 = vector.shape_cast %342 : vector<1x640x128xbf16> to vector<640x128xbf16>
    %cst_483 = arith.constant dense<0.000000e+00> : vector<64x128xf32>
    %344 = tpu.matmul %335, %343, %cst_483 {dimension_numbers = #tpu.dot_dimension_numbers<[1], [0], [0], [1], [0, 0, 1, 1], [], []>} : vector<64x640xbf16>, vector<640x128xbf16>, vector<64x128xf32> -> vector<64x128xf32>
    %345 = vector.extract_strided_slice %344 {offsets = [0, 0], sizes = [32, 128], strides = [1, 1]} : vector<64x128xf32> to vector<32x128xf32>
    %346 = vector.extract_strided_slice %344 {offsets = [32, 0], sizes = [32, 128], strides = [1, 1]} : vector<64x128xf32> to vector<32x128xf32>
    %347 = arith.maximumf %345, %346 : vector<32x128xf32>
    %348 = arith.maximumf %341, %347 : vector<32x128xf32>
    %c0_484 = arith.constant 0 : index
    %c0_485 = arith.constant 0 : index
    %349 = vector.load %arg5[%c0_484, %c0_485] : memref<1x128xf32, #tpu.memory_space<vmem>>, vector<1x128xf32>
    %350 = vector.broadcast %349 : vector<1x128xf32> to vector<32x128xf32>
    %351 = arith.addf %348, %350 : vector<32x128xf32>
    %cst_486 = arith.constant 0.000000e+00 : f32
    %352 = vector.broadcast %cst_486 : f32 to vector<32x128xf32>
    %353 = arith.maximumf %351, %352 : vector<32x128xf32>
    %354 = vector.extract_strided_slice %353 {offsets = [0, 0], sizes = [8, 128], strides = [1, 1]} : vector<32x128xf32> to vector<8x128xf32>
    %355 = vector.extract_strided_slice %353 {offsets = [8, 0], sizes = [8, 128], strides = [1, 1]} : vector<32x128xf32> to vector<8x128xf32>
    %356 = vector.extract_strided_slice %353 {offsets = [16, 0], sizes = [8, 128], strides = [1, 1]} : vector<32x128xf32> to vector<8x128xf32>
    %357 = vector.extract_strided_slice %353 {offsets = [24, 0], sizes = [8, 128], strides = [1, 1]} : vector<32x128xf32> to vector<8x128xf32>
    %358 = tpu.concatenate %354, %355, %356, %357 in 1 : vector<8x128xf32>, vector<8x128xf32>, vector<8x128xf32>, vector<8x128xf32> -> vector<8x512xf32>
    %359 = arith.truncf %358 : vector<8x512xf32> to vector<8x512xbf16>
    %c0_487 = arith.constant 0 : index
    %c0_488 = arith.constant 0 : index
    %360 = vector.load %arg6[%c0_487, %c0_488] : memref<512x64xbf16, #tpu.memory_space<vmem>>, vector<512x64xbf16>
    %cst_489 = arith.constant dense<0.000000e+00> : vector<8x64xf32>
    %361 = tpu.matmul %359, %360, %cst_489 {dimension_numbers = #tpu.dot_dimension_numbers<[1], [0], [0], [1], [0, 0, 1, 1], [], []>} : vector<8x512xbf16>, vector<512x64xbf16>, vector<8x64xf32> -> vector<8x64xf32>
    %c0_490 = arith.constant 0 : index
    %c0_491 = arith.constant 0 : index
    %362 = vector.load %arg7[%c0_490, %c0_491] : memref<1x64xf32, #tpu.memory_space<vmem>>, vector<1x64xf32>
    %363 = vector.broadcast %362 : vector<1x64xf32> to vector<8x64xf32>
    %364 = arith.addf %361, %363 : vector<8x64xf32>
    %cst_492 = arith.constant 0.000000e+00 : f32
    %365 = vector.broadcast %cst_492 : f32 to vector<8x64xf32>
    %366 = arith.maximumf %364, %365 : vector<8x64xf32>
    %367 = arith.truncf %366 : vector<8x64xf32> to vector<8x64xbf16>
    %c0_493 = arith.constant 0 : index
    %c0_494 = arith.constant 0 : index
    %368 = vector.load %arg8[%c0_493, %c0_494] : memref<64x10xbf16, #tpu.memory_space<vmem>>, vector<64x10xbf16>
    %cst_495 = arith.constant dense<0.000000e+00> : vector<8x10xf32>
    %369 = tpu.matmul %367, %368, %cst_495 {dimension_numbers = #tpu.dot_dimension_numbers<[1], [0], [0], [1], [0, 0, 1, 1], [], []>} : vector<8x64xbf16>, vector<64x10xbf16>, vector<8x10xf32> -> vector<8x10xf32>
    %c0_496 = arith.constant 0 : index
    %c0_497 = arith.constant 0 : index
    %370 = vector.load %arg9[%c0_496, %c0_497] : memref<1x10xf32, #tpu.memory_space<vmem>>, vector<1x10xf32>
    %371 = vector.broadcast %370 : vector<1x10xf32> to vector<8x10xf32>
    %372 = arith.addf %369, %371 : vector<8x10xf32>
    %cst_498 = arith.constant dense<0xFF800000> : vector<8xf32>
    %373 = vector.multi_reduction <maximumf>, %372, %cst_498 [1] : vector<8x10xf32> to vector<8xf32>
    %374 = vector.shape_cast %373 : vector<8xf32> to vector<8x1xf32>
    %375 = vector.broadcast %374 : vector<8x1xf32> to vector<8x10xf32>
    %376 = arith.subf %372, %375 : vector<8x10xf32>
    %377 = math.exp %376 : vector<8x10xf32>
    %cst_499 = arith.constant dense<0.000000e+00> : vector<8xf32>
    %378 = vector.multi_reduction <add>, %377, %cst_499 [1] : vector<8x10xf32> to vector<8xf32>
    %379 = vector.shape_cast %378 : vector<8xf32> to vector<8x1xf32>
    %380 = math.log %379 : vector<8x1xf32>
    %381 = vector.broadcast %380 : vector<8x1xf32> to vector<8x10xf32>
    %382 = arith.subf %376, %381 : vector<8x10xf32>
    %c0_500 = arith.constant 0 : index
    %c0_501 = arith.constant 0 : index
    %383 = vector.load %arg10[%c0_500, %c0_501] : memref<8x10xf32, #tpu.memory_space<vmem>>, vector<8x10xf32>
    tpu.vector_store %arg10[%c0_500, %c0_501], %382 {strides = array<i32>} : memref<8x10xf32, #tpu.memory_space<vmem>>, vector<8x10xf32>,
    return
  }
  func.func @transform_0(%arg0: i32) -> (i32, i32, i32, i32) {
    %c0_i32 = arith.constant 0 : i32
    %c0_i32_0 = arith.constant 0 : i32
    %c0_i32_1 = arith.constant 0 : i32
    %c0_i32_2 = arith.constant 0 : i32
    return %c0_i32, %c0_i32_0, %arg0, %c0_i32_1 : i32, i32, i32, i32
  }
  func.func @transform_1(%arg0: i32) -> (i32, i32, i32) {
    %c0_i32 = arith.constant 0 : i32
    %c0_i32_0 = arith.constant 0 : i32
    %c0_i32_1 = arith.constant 0 : i32
    %c0_i32_2 = arith.constant 0 : i32
    return %c0_i32, %c0_i32_0, %c0_i32_1 : i32, i32, i32
  }
  func.func @transform_2(%arg0: i32) -> (i32, i32) {
    %c0_i32 = arith.constant 0 : i32
    %c0_i32_0 = arith.constant 0 : i32
    %c0_i32_1 = arith.constant 0 : i32
    return %c0_i32, %c0_i32_0 : i32, i32
  }
  func.func @transform_3(%arg0: i32) -> (i32, i32, i32) {
    %c0_i32 = arith.constant 0 : i32
    %c0_i32_0 = arith.constant 0 : i32
    %c0_i32_1 = arith.constant 0 : i32
    %c0_i32_2 = arith.constant 0 : i32
    return %c0_i32, %c0_i32_0, %c0_i32_1 : i32, i32, i32
  }
  func.func @transform_4(%arg0: i32) -> (i32, i32) {
    %c0_i32 = arith.constant 0 : i32
    %c0_i32_0 = arith.constant 0 : i32
    %c0_i32_1 = arith.constant 0 : i32
    return %c0_i32, %c0_i32_0 : i32, i32
  }
  func.func @transform_5(%arg0: i32) -> (i32, i32) {
    %c0_i32 = arith.constant 0 : i32
    %c0_i32_0 = arith.constant 0 : i32
    %c0_i32_1 = arith.constant 0 : i32
    return %c0_i32, %c0_i32_0 : i32, i32
  }
  func.func @transform_6(%arg0: i32) -> (i32, i32) {
    %c0_i32 = arith.constant 0 : i32
    %c0_i32_0 = arith.constant 0 : i32
    %c0_i32_1 = arith.constant 0 : i32
    return %c0_i32, %c0_i32_0 : i32, i32
  }
  func.func @transform_7(%arg0: i32) -> (i32, i32) {
    %c0_i32 = arith.constant 0 : i32
    %c0_i32_0 = arith.constant 0 : i32
    %c0_i32_1 = arith.constant 0 : i32
    return %c0_i32, %c0_i32_0 : i32, i32
  }
  func.func @transform_8(%arg0: i32) -> (i32, i32) {
    %c0_i32 = arith.constant 0 : i32
    %c0_i32_0 = arith.constant 0 : i32
    %c0_i32_1 = arith.constant 0 : i32
    return %c0_i32, %c0_i32_0 : i32, i32
  }
  func.func @transform_9(%arg0: i32) -> (i32, i32) {
    %c0_i32 = arith.constant 0 : i32
    %c0_i32_0 = arith.constant 0 : i32
    return %arg0, %c0_i32 : i32, i32
  }
}

</mosaic_0001>

<bundles_post_ra>
// kernel: net_forward.1
= control target key start
LH: loop header
LB: loop body
LE: loop exit
PB: predicated region body
PF: predicated region fallthrough
CT: control target
= control target key end

     0   :  { %14 = vsyncpa [#allocation4], 0  ;;  %s5321_s0 = inlined_call_operand.vmem [shape: f32[2,14,16,28], index: 0, kind: input, shape index: {}]   ;;  %s5322_s1 = inlined_call_operand.vmem [shape: bf16[2,140,128], index: 1, kind: input, shape index: {}]   ;;  %s5323_s2 = inlined_call_operand.vmem [shape: f32[1,128], index: 2, kind: input, shape index: {}]   ;;  %s5324_s3 = inlined_call_operand.vmem [shape: bf16[2,640,128], index: 3, kind: input, shape index: {}]   ;;  %s5325_s4 = inlined_call_operand.vmem [shape: f32[1,128], index: 4, kind: input, shape index: {}]   ;;  %s5326_s5 = inlined_call_operand.vmem [shape: bf16[512,64], index: 5, kind: input, shape index: {}]   ;;  %s5327_s6 = inlined_call_operand.vmem [shape: f32[1,64], index: 6, kind: input, shape index: {}]   ;;  %s5328_s7 = inlined_call_operand.vmem [shape: bf16[64,10], index: 7, kind: input, shape index: {}]   ;;  %s5329_s8 = inlined_call_operand.vmem [shape: f32[1,10], index: 8, kind: input, shape index: {}]   ;;  %s5330_s9 = inlined_call_operand.hbm [shape: f32[16,10], index: 9, kind: output, shape index: {}]  }
   0x1   :  { %16 = vsyncpa [#allocation4 + $0x1], 0  ;;  %s4224_s30 = smov 0   ;;  %s4226_s10 = smov 0  }
   0x2   :  { %s4228_s11 = smov 0   ;;  %s4230_s12 = smov 0  }
   0x3 LB: > { %s5331_s13 = sadd.s32 4294967295, %s4164_s12   ;;  %s3073_s14 = sadd.s32 4294967294, %s4164_s12   ;;  %s4164_s12 = sphi %s4230_s12, %s5341_s12   ;;  %s4160_s11 = sphi %s4228_s11, %s5340_s11   ;;  %s4156_s10 = sphi %s4226_s10, %s5339_s10   ;;  %s4152_s30 = sphi %s4224_s30, %s5338_s30  }
   0x4   : > { %s4247_s15 = sadd.s32 1, %s4164_s12   ;;  %s29_s16 = sadd.s32 1, %s4160_s11 }
   0x5   : > { %s26_s17 = ssub.s32 %s4164_s12, %s4247_s15  ;;  %p36_p0 = scmp.ne.s32.totalorder %s4160_s11, %s4156_s10 }
   0x6   : > { %p27_p1 = scmp.eq.s32.totalorder %s26_s17, 0  ;;  %p37_p2 = scmp.eq.s32.totalorder %s4164_s12, 0 }
   0x7   : > { %p234_p3 = scmp.eq.s32.totalorder %s5331_s13, 1  ;;  %p239_p4 = scmp.ne.s32.totalorder %s4156_s10, %s4152_s30 }
   0x8   : > { %s4260_s18 = scalar_select %p27_p1, %s4160_s11, %s29_s16  }
   0x9   : > { %p38_p5 = por %p37_p2, %p36_p0  ;;  %p4262_p6 = por %p234_p3, %p36_p0 }
   0xa   : > { %p240_p7 = scmp.eq.s32.totalorder %s3073_s14, 1  ;;  %p3075_p9 = scmp.ge.s32.totalorder %s4164_s12, 2 }
   0xc   : > { %p4266_p8 = por %p240_p7, %p239_p4  ;;  %280 = sbr.rel (%p3075_p9) target bundleno = 37 (0x25), region = 48 }
  0x13   : > { %283 = sbr.rel (!%p38_p5) target bundleno = 37 (0x25), region = 52  ;;  %s285_s21 = sand.u32 (%p38_p5), 1, %s4160_s11  }
  0x14   : > { %s3076_s22 = sshll.u32 (%p38_p5), %s4164_s12, 3  ;;  %s3664_s23 = smul.u32 (%p38_p5), 224, %s285_s21 }
  0x15   : > { %s4278_s26 = scalar_lea.vmem (%p38_p5), %s5321_s0, %s3076_s22 }
  0x16   : > { %v371_v0 = vld [vmem:[%s4278_s26] sm:$0xff] (%p38_p5)  ;;  %v373_v1 = vld [vmem:[%s4278_s26 + $0x10] sm:$0xff] (%p38_p5)  ;;  %s4286_s27 = scalar_lea.vmem (%p38_p5), [#allocation2], %s3664_s23 }
  0x17   : > { %v375_v2 = vld [vmem:[%s4278_s26 + $0x20] sm:$0xff] (%p38_p5)  ;;  %v377_v3 = vld [vmem:[%s4278_s26 + $0x30] sm:$0xff] (%p38_p5)  ;;  %372 = vst [vmem:[%s4286_s27] sm:$0xff] (%p38_p5), %v371_v0  ;;  %374 = vst [vmem:[%s4286_s27 + $0x8] sm:$0xff] (%p38_p5), %v373_v1 }
  0x18   : > { %v379_v4 = vld [vmem:[%s4278_s26 + $0x40] sm:$0xff] (%p38_p5)  ;;  %v381_v5 = vld [vmem:[%s4278_s26 + $0x50] sm:$0xff] (%p38_p5)  ;;  %376 = vst [vmem:[%s4286_s27 + $0x10] sm:$0xff] (%p38_p5), %v375_v2  ;;  %378 = vst [vmem:[%s4286_s27 + $0x18] sm:$0xff] (%p38_p5), %v377_v3 }
  0x19   : > { %380 = vst [vmem:[%s4286_s27 + $0x20] sm:$0xff] (%p38_p5), %v379_v4  ;;  %382 = vst [vmem:[%s4286_s27 + $0x28] sm:$0xff] (%p38_p5), %v381_v5  ;;  %v383_v6 = vld [vmem:[%s4278_s26 + $0x60] sm:$0xff] (%p38_p5)  ;;  %v385_v7 = vld [vmem:[%s4278_s26 + $0x70] sm:$0xff] (%p38_p5) }
  0x1a   : > { %v387_v8 = vld [vmem:[%s4278_s26 + $0x80] sm:$0xff]  ;;  %384 = vst [vmem:[%s4286_s27 + $0x30] sm:$0xff] %v383_v6  ;;  %386 = vst [vmem:[%s4286_s27 + $0x38] sm:$0xff] %v385_v7  ;;  %v389_v9 = vld [vmem:[%s4278_s26 + $0x90] sm:$0xff] }
  0x1b   : > { %388 = vst [vmem:[%s4286_s27 + $0x40] sm:$0xff] %v387_v8  ;;  %v391_v10 = vld [vmem:[%s4278_s26 + $0xa0] sm:$0xff]  ;;  %v393_v11 = vld [vmem:[%s4278_s26 + $0xb0] sm:$0xff]  ;;  %390 = vst [vmem:[%s4286_s27 + $0x48] sm:$0xff] %v389_v9 }
  0x1c   : > { %392 = vst [vmem:[%s4286_s27 + $0x50] sm:$0xff] %v391_v10  ;;  %394 = vst [vmem:[%s4286_s27 + $0x58] sm:$0xff] %v393_v11  ;;  %v395_v12 = vld [vmem:[%s4278_s26 + $0xc0] sm:$0xff]  ;;  %v397_v13 = vld [vmem:[%s4278_s26 + $0xd0] sm:$0xff] }
  0x1d   : > { %v399_v14 = vld [vmem:[%s4278_s26 + $0xe0] sm:$0xff]  ;;  %396 = vst [vmem:[%s4286_s27 + $0x60] sm:$0xff] %v395_v12  ;;  %398 = vst [vmem:[%s4286_s27 + $0x68] sm:$0xff] %v397_v13  ;;  %v401_v15 = vld [vmem:[%s4278_s26 + $0xf0] sm:$0xff] }
  0x1e   : > { %400 = vst [vmem:[%s4286_s27 + $0x70] sm:$0xff] %v399_v14  ;;  %v403_v16 = vld [vmem:[%s4278_s26 + $0x100] sm:$0xff]  ;;  %v405_v17 = vld [vmem:[%s4278_s26 + $0x110] sm:$0xff]  ;;  %402 = vst [vmem:[%s4286_s27 + $0x78] sm:$0xff] %v401_v15 }
  0x1f   : > { %404 = vst [vmem:[%s4286_s27 + $0x80] sm:$0xff] %v403_v16  ;;  %406 = vst [vmem:[%s4286_s27 + $0x88] sm:$0xff] %v405_v17  ;;  %v407_v18 = vld [vmem:[%s4278_s26 + $0x120] sm:$0xff]  ;;  %v409_v19 = vld [vmem:[%s4278_s26 + $0x130] sm:$0xff] }
  0x20   : > { %v411_v20 = vld [vmem:[%s4278_s26 + $0x140] sm:$0xff]  ;;  %408 = vst [vmem:[%s4286_s27 + $0x90] sm:$0xff] %v407_v18  ;;  %410 = vst [vmem:[%s4286_s27 + $0x98] sm:$0xff] %v409_v19  ;;  %v413_v21 = vld [vmem:[%s4278_s26 + $0x150] sm:$0xff] }
  0x21   : > { %412 = vst [vmem:[%s4286_s27 + $0xa0] sm:$0xff] %v411_v20  ;;  %v415_v22 = vld [vmem:[%s4278_s26 + $0x160] sm:$0xff]  ;;  %v417_v23 = vld [vmem:[%s4278_s26 + $0x170] sm:$0xff]  ;;  %414 = vst [vmem:[%s4286_s27 + $0xa8] sm:$0xff] %v413_v21 }
  0x22   : > { %416 = vst [vmem:[%s4286_s27 + $0xb0] sm:$0xff] %v415_v22  ;;  %418 = vst [vmem:[%s4286_s27 + $0xb8] sm:$0xff] %v417_v23  ;;  %v419_v24 = vld [vmem:[%s4278_s26 + $0x180] sm:$0xff]  ;;  %v421_v25 = vld [vmem:[%s4278_s26 + $0x190] sm:$0xff] }
  0x23   : > { %v423_v26 = vld [vmem:[%s4278_s26 + $0x1a0] sm:$0xff]  ;;  %420 = vst [vmem:[%s4286_s27 + $0xc0] sm:$0xff] %v419_v24  ;;  %422 = vst [vmem:[%s4286_s27 + $0xc8] sm:$0xff] %v421_v25  ;;  %v425_v27 = vld [vmem:[%s4278_s26 + $0x1b0] sm:$0xff] }
  0x24   : > { %424 = vst [vmem:[%s4286_s27 + $0xd0] sm:$0xff] %v423_v26  ;;  %426 = vst [vmem:[%s4286_s27 + $0xd8] sm:$0xff] %v425_v27 }
  0x25 PF: > { %p3077_p10 = scmp.ge.s32.totalorder %s4164_s12, 1  ;;  %p431_p11 = scmp.lt.s32.totalorder %s4164_s12, 3 }
  0x27   : > { %p432_p12 = pnand %p3077_p10, %p431_p11 }
  0x28   : > { %s4341_s28 = sand.u32 (!%p432_p12), 1, %s4156_s10   ;;  %v3952_v28 = vld [vmem:[%s5322_s1] sm:$0xff] (!%p432_p12)   ;;  %v4166_v29 = vmov (!%p432_p12), 0   ;;  %v3953_v30 = vld [vmem:[%s5322_s1 + $0x48] sm:$0xff] (!%p432_p12)   ;;  %v3955_v32 = vld [vmem:[%s5322_s1 + $0x50] sm:$0xff] (!%p432_p12)   ;;  %s4167_s27 = smov (!%p432_p12), 28  }
  0x29   : > { %435 = sbr.rel (%p432_p12) target bundleno = 1549 (0x60d), region = 90  ;;  %1080 = vmatprep.subr.bf16.mxu0 (!%p432_p12), %v4166_v29  ;;  %1296 = vmatprep.subr.bf16.mxu1 (!%p432_p12), %v4166_v29  ;;  %v3954_v31 = vld [vmem:[%s5322_s1 + $0x8] sm:$0xff] (!%p432_p12)   ;;  %s4168_s29 = smov (!%p432_p12), 84   ;;  %v3956_v53 = vld [vmem:[%s5322_s1 + $0x10] sm:$0xff] (!%p432_p12)   ;;  %v3957_v54 = vld [vmem:[%s5322_s1 + $0x58] sm:$0xff] (!%p432_p12)   ;;  %vm1076_vm0 = vcmask (!%p432_p12), 1045504  }
  0x2a   : > { %s3665_s16 = smul.u32 (!%p432_p12), 224, %s4341_s28  ;;  %1081 = vmatpush1.bf16.msra.mxu0 (!%p432_p12), %v3952_v28  ;;  %1297 = vmatpush1.bf16.msra.mxu1 (!%p432_p12), %v3953_v30  ;;  %s5332_s14 = smov (!%p432_p12), 56   ;;  %v3958_v55 = vld [vmem:[%s5322_s1 + $0x18] sm:$0xff] (!%p432_p12)   ;;  %v3959_v56 = vld [vmem:[%s5322_s1 + $0x60] sm:$0xff] (!%p432_p12)   ;;  %v3961_v62 = vld [vmem:[%s5322_s1 + $0x68] sm:$0xff] (!%p432_p12)   ;;  %vm499_vm1 = vcmask (!%p432_p12), 228352  }
  0x2b   : > { %1082 = vmatprep.subr.bf16.mxu0 (!%p432_p12), %v4166_v29  ;;  %1298 = vmatprep.subr.bf16.mxu1 (!%p432_p12), %v4166_v29  ;;  %v3960_v61 = vld [vmem:[%s5322_s1 + $0x20] sm:$0xff] (!%p432_p12)   ;;  %s5336_s22 = smov (!%p432_p12), 56   ;;  %v3962_v3 = vld [vmem:[%s5322_s1 + $0x28] sm:$0xff] (!%p432_p12)   ;;  %v3963_v5 = vld [vmem:[%s5322_s1 + $0x70] sm:$0xff] (!%p432_p12)   ;;  %vm501_vm2 = vcmask (!%p432_p12), 457728   ;;  %vm1039_vm3 = vcmask (!%p432_p12), 97280  }
  0x2c   : > { %s4359_s26 = scalar_lea.vmem (!%p432_p12), [#allocation2], %s3665_s16  ;;  %s4170_s16 = smov (!%p432_p12), 112   ;;  %v3964_v9 = vld [vmem:[%s5322_s1 + $0x30] sm:$0xff] (!%p432_p12)   ;;  %v3965_v10 = vld [vmem:[%s5322_s1 + $0x78] sm:$0xff] (!%p432_p12)   ;;  %v3968_v13 = vld [vmem:[%s5322_s1 + $0x40] sm:$0x3f] (!%p432_p12)  }
  0x2d   : > { %v3079_v33 = vld [vmem:[%s4359_s26 + $0x70] sm:$0xff] (!%p432_p12)  ;;  %v3081_v34 = vld [vmem:[%s4359_s26 + $0x78] sm:$0xff] (!%p432_p12)  ;;  %v3083_v35 = vld [vmem:[%s4359_s26 + $0x80] sm:$0xff] (!%p432_p12)  ;;  %v1078_v23 = vsel (!%p432_p12), %vm1076_vm0, %v3968_v13, 0  ;;  %vm503_vm4 = vcmask (!%p432_p12), 687104   ;;  %vm505_vm5 = vcmask (!%p432_p12), 916480  }
  0x2e   : > { %v3712_v36 = vpack.i.bf16 (!%p432_p12), %v3081_v34, %v3079_v33  ;;  %v4364_v37 = vpack.i.bf16 (!%p432_p12), %v3083_v35, %v3081_v34  ;;  %v4367_v38 = vld [vmem:[%s4359_s26 + $0x8] sm:$0xff] (!%p432_p12)  ;;  %v4370_v39 = vld [vmem:[%s4359_s26 + $0x10] sm:$0xff] (!%p432_p12)  ;;  %v4373_v40 = vld [vmem:[%s4359_s26 + $0x18] sm:$0xff] (!%p432_p12)  ;;  %1083 = vmatpush1.bf16.msra.mxu0 (!%p432_p12), %v3954_v31  ;;  %1299 = vmatpush1.bf16.msra.mxu1 (!%p432_p12), %v3955_v32  ;;  %vm4172_vm6 = vmmov (!%p432_p12), 0   ;;  %vm2936_vm7 = vcmask (!%p432_p12), 523264   ;;  %s5337_s13 = sadd.s32 (!%p432_p12), 4294967295, %s4164_s12  }
  0x2f   : > { %v4381_v41 = vpack.i.bf16 (!%p432_p12), %v4370_v39, %v4367_v38  ;;  %v4385_v42 = vpack.i.bf16 (!%p432_p12), %v4373_v40, %v4370_v39  ;;  %v3085_v43 = vld [vmem:[%s4359_s26 + $0x88] sm:$0xff] (!%p432_p12)  ;;  %v4389_v44 = vld [vmem:[%s4359_s26 + $0x20] sm:$0xff] (!%p432_p12)  ;;  %1084 = vmatprep.subr.bf16.mxu0 (!%p432_p12), %v4166_v29  ;;  %1300 = vmatprep.subr.bf16.mxu1 (!%p432_p12), %v4166_v29  ;;  %v3087_v47 = vld [vmem:[%s4359_s26 + $0x90] sm:$0xff] (!%p432_p12)  ;;  %vm2980_vm8 = vcmask (!%p432_p12), 80896   ;;  %s2995_s21 = scalar_lea.sflag (!%p432_p12), [#allocation4], %s4341_s28  ;;  %s4173_s24 = smov (!%p432_p12), [#allocation3]  }
  0x30   : > { %3713 = vrot.lane.b32.xlu0 %v3712_v36, %s4167_s27  ;;  %3723 = vrot.lane.b32.xlu1 %v4364_v37, %s4168_s29  ;;  %v4397_v45 = vpack.i.bf16 %v3085_v43, %v3083_v35  ;;  %v4401_v46 = vpack.i.bf16 %v4389_v44, %v4373_v40  ;;  %v4405_v48 = vld [vmem:[%s4359_s26 + $0x28] sm:$0xff]  ;;  %v3089_v49 = vld [vmem:[%s4359_s26 + $0x98] sm:$0xff]  ;;  %v4415_v51 = vpack.i.bf16 %v3087_v47, %v3085_v43  ;;  %s4106_s25 = sshll.u32 %s4173_s24, 4  ;;  %s4107_s25 = int_to_ptr.vmem [resolvable:$false] %s4106_s25 }
  0x31   : > { %v4409_v50 = vld [vmem:[%s4359_s26 + $0x30] sm:$0xff]  ;;  %v4419_v52 = vpack.i.bf16 %v4405_v48, %v4389_v44  ;;  %v4438_v57 = vpack.i.bf16 %v3089_v49, %v3087_v47  ;;  %v3091_v59 = vld [vmem:[%s4359_s26 + $0xa0] sm:$0xff]  ;;  %v4446_v60 = vld [vmem:[%s4359_s26 + $0x38] sm:$0xff] }
  0x32   : > { %1085 = vmatpush1.bf16.msra.mxu0 %v3956_v53  ;;  %1301 = vmatpush1.bf16.msra.mxu1 %v3957_v54  ;;  %v4442_v58 = vpack.i.bf16 %v4409_v50, %v4405_v48  ;;  %v4460_v63 = vpack.i.bf16 %v3091_v59, %v3089_v49  ;;  %v4464_v0 = vpack.i.bf16 %v4446_v60, %v4409_v50  ;;  %v3093_v1 = vld [vmem:[%s4359_s26 + $0xa8] sm:$0xff]  ;;  %v4468_v2 = vld [vmem:[%s4359_s26 + $0x40] sm:$0xff]  ;;  %v3095_v4 = vld [vmem:[%s4359_s26 + $0xb0] sm:$0xff] }
  0x33   : > { %1086 = vmatprep.subr.bf16.mxu0 %v4166_v29  ;;  %1302 = vmatprep.subr.bf16.mxu1 %v4166_v29  ;;  %v4483_v6 = vpack.i.bf16 %v3093_v1, %v3091_v59  ;;  %v4487_v7 = vpack.i.bf16 %v4468_v2, %v4446_v60  ;;  %v4490_v8 = vld [vmem:[%s4359_s26 + $0x48] sm:$0xff]  ;;  %v3097_v11 = vld [vmem:[%s4359_s26 + $0xb8] sm:$0xff]  ;;  %v4501_v12 = vld [vmem:[%s4359_s26 + $0x50] sm:$0xff]  ;;  %v3782_v14 = vpack.i.bf16 %v3095_v4, %v3093_v1 }
  0x34   : > { %3718 = vrot.lane.b32.xlu0 %v4381_v41, %s5332_s14  ;;  %3728 = vrot.lane.b32.xlu1 %v4385_v42, %s4170_s16  ;;  %v3787_v15 = vpack.i.bf16 %v4490_v8, %v4468_v2  ;;  %v3966_v16 = vld [vmem:[%s5322_s1 + $0x38] sm:$0xff]   ;;  %v3967_v17 = vld [vmem:[%s5322_s1 + $0x80] sm:$0xff]   ;;  %v3792_v21 = vpack.i.bf16 %v3097_v11, %v3095_v4  ;;  %v3797_v22 = vpack.i.bf16 %v4501_v12, %v4490_v8 }
  0x35   : > { %v3969_v18 = vld [vmem:[%s5322_s1 + $0x88] sm:$0x3f]   ;;  %v3099_v19 = vld [vmem:[%s4359_s26 + $0xc0] sm:$0xff]  ;;  %v4525_v20 = vld [vmem:[%s4359_s26 + $0x58] sm:$0xff] }
  0x36   : > { %1087 = vmatpush1.bf16.msra.mxu0 %v3958_v55  ;;  %1303 = vmatpush1.bf16.msra.mxu1 %v3959_v56  ;;  %v3101_v24 = vld [vmem:[%s4359_s26 + $0xc8] sm:$0xff]  ;;  %v3102_v25 = vld [vmem:[%s4359_s26 + $0x60] sm:$0xff]  ;;  %v3802_v26 = vpack.i.bf16 %v3099_v19, %v3097_v11  ;;  %v3807_v27 = vpack.i.bf16 %v4525_v20, %v4501_v12  ;;  %v1294_v28 = vsel %vm1076_vm0, %v3969_v18, 0  ;;  %v3103_v30 = vld [vmem:[%s4359_s26 + $0xd0] sm:$0xff] }
  0x37   : > { %1088 = vmatprep.subr.bf16.mxu0 %v4166_v29  ;;  %1304 = vmatprep.subr.bf16.mxu1 %v4166_v29  ;;  %v3104_v31 = vld [vmem:[%s4359_s26 + $0x68] sm:$0xff]  ;;  %v3812_v32 = vpack.i.bf16 %v3101_v24, %v3099_v19  ;;  %v3817_v33 = vpack.i.bf16 %v3102_v25, %v4525_v20  ;;  %v3822_v34 = vpack.i.bf16 %v3103_v30, %v3101_v24  ;;  %v3970_v36 = vld [vmem:[%s5324_s3 + $0x40] sm:$0xff]  }
  0x38   : > { %3733 = vrot.lane.b32.xlu0 %v4397_v45, %s4167_s27  ;;  %3738 = vrot.lane.b32.xlu1 %v4401_v46, %s5332_s14  ;;  %v3827_v35 = vpack.i.bf16 %v3104_v31, %v3102_v25  ;;  %v474_v47 = vld [vmem:[%s4359_s26] sm:$0xff]  ;;  %s3368_s14 = sshll.u32 %s5337_s13, 7 }
  0x39   : > { %v3971_v11 = vld [vmem:[%s5324_s3] sm:$0xff]  }
  0x3a   : > { %1089 = vmatpush1.bf16.msra.mxu0 %v3960_v61  ;;  %1305 = vmatpush1.bf16.msra.mxu1 %v3961_v62  ;;  %v3975_v13 = vld [vmem:[%s5324_s3 + $0x80] sm:$0xff]  }
  0x3b   : > { %1090 = vmatprep.subr.bf16.mxu0 %v4166_v29  ;;  %1306 = vmatprep.subr.bf16.mxu1 %v4166_v29 }
  0x3c   : > { %3743 = vrot.lane.b32.xlu0 %v4415_v51, %s4168_s29  ;;  %3748 = vrot.lane.b32.xlu1 %v4419_v52, %s4170_s16 }
  0x3e   : > { %1091 = vmatpush1.bf16.msra.mxu0 %v3962_v3  ;;  %1307 = vmatpush1.bf16.msra.mxu1 %v3963_v5 }
  0x3f   : > { %1092 = vmatprep.subr.bf16.mxu0 %v4166_v29  ;;  %1308 = vmatprep.subr.bf16.mxu1 %v4166_v29 }
  0x40   : > { %3753 = vrot.lane.b32.xlu0 %v4438_v57, %s4167_s27  ;;  %3758 = vrot.lane.b32.xlu1 %v4442_v58, %s5336_s22 }
  0x42   : > { %1093 = vmatpush1.bf16.msra.mxu0 %v3964_v9  ;;  %1309 = vmatpush1.bf16.msra.mxu1 %v3965_v10 }
  0x43   : > { %1094 = vmatprep.subr.bf16.mxu0 %v4166_v29  ;;  %1310 = vmatprep.subr.bf16.mxu1 %v4166_v29 }
  0x44   : > { %3763 = vrot.lane.b32.xlu0 %v4460_v63, %s4168_s29  ;;  %3768 = vrot.lane.b32.xlu1 %v4464_v0, %s4170_s16 }
  0x46   : > { %1095 = vmatpush1.bf16.msra.mxu0 %v3966_v16  ;;  %1311 = vmatpush1.bf16.msra.mxu1 %v3967_v17  ;;  %v3972_v17 = vld [vmem:[%s5324_s3 + $0x48] sm:$0xff]  }
  0x47   : > { %1096 = vmatprep.subr.bf16.mxu0 %v4166_v29  ;;  %1312 = vmatprep.subr.bf16.mxu1 %v4166_v29  ;;  %v3105_v29 = vld [vmem:[%s4359_s26 + $0xd8] sm:$0xff] }
  0x48   : > { %3773 = vrot.lane.b32.xlu0 %v4483_v6, %s4167_s27  ;;  %3778 = vrot.lane.b32.xlu1 %v4487_v7, %s5336_s22 }
  0x4a   : > { %1097 = vmatpush1.bf16.msra.mxu0 %v1078_v23  ;;  %1313 = vmatpush1.bf16.msra.mxu1 %v1294_v28 }
  0x4b   : > { %3371 = vmatprep.subr.bf16.mxu0 %v3970_v36 }
  0x4c   : > { %3783 = vrot.lane.b32.xlu0 %v3782_v14, %s4168_s29  ;;  %3788 = vrot.lane.b32.xlu1 %v3787_v15, %s4170_s16 }
  0x50   : > { %3793 = vrot.lane.b32.xlu0 %v3792_v21, %s4167_s27  ;;  %3798 = vrot.lane.b32.xlu1 %v3797_v22, %s5336_s22 }
  0x54   : > { %3803 = vrot.lane.b32.xlu0 %v3802_v26, %s4168_s29  ;;  %3808 = vrot.lane.b32.xlu1 %v3807_v27, %s4170_s16 }
  0x58   : > { %3813 = vrot.lane.b32.xlu0 %v3812_v32, %s4167_s27  ;;  %3818 = vrot.lane.b32.xlu1 %v3817_v33, %s5336_s22 }
  0x5c   : > { %3823 = vrot.lane.b32.xlu0 %v3822_v34, %s4168_s29  ;;  %3828 = vrot.lane.b32.xlu1 %v3827_v35, %s4170_s16 }
  0x60   : > { %3833 = vrot.lane.b32.xlu0 %v4381_v41, %s4167_s27  ;;  %3838 = vrot.lane.b32.xlu1 %v4364_v37, %s5336_s22  ;;  %v3947_v37 = vpack.i.bf16 %v3105_v29, %v3103_v30  ;;  %v3974_v41 = vld [vmem:[%s5324_s3 + $0xc0] sm:$0xff]  }
  0x61   : > { %3411 = vmatprep.subr.bf16.mxu1 %v3974_v41 }
  0x64   : > { %3843 = vrot.lane.b32.xlu0 %v4385_v42, %s4168_s29  ;;  %3848 = vrot.lane.b32.xlu1 %v4397_v45, %s4170_s16 }
  0x68   : > { %3853 = vrot.lane.b32.xlu0 %v4401_v46, %s4167_s27  ;;  %3858 = vrot.lane.b32.xlu1 %v4415_v51, %s5336_s22 }
  0x6c   : > { %3863 = vrot.lane.b32.xlu0 %v4419_v52, %s4168_s29  ;;  %3868 = vrot.lane.b32.xlu1 %v4438_v57, %s4170_s16 }
  0x70   : > { %3873 = vrot.lane.b32.xlu0 %v4442_v58, %s4167_s27  ;;  %3878 = vrot.lane.b32.xlu1 %v4460_v63, %s5336_s22 }
  0x74   : > { %3883 = vrot.lane.b32.xlu0 %v4464_v0, %s4168_s29  ;;  %3888 = vrot.lane.b32.xlu1 %v4483_v6, %s4170_s16 }
  0x78   : > { %3893 = vrot.lane.b32.xlu0 %v4487_v7, %s4167_s27  ;;  %3898 = vrot.lane.b32.xlu1 %v3782_v14, %s5336_s22 }
  0x7c   : > { %3903 = vrot.lane.b32.xlu0 %v3787_v15, %s4168_s29  ;;  %3908 = vrot.lane.b32.xlu1 %v3792_v21, %s4170_s16 }
  0x80   : > { %3913 = vrot.lane.b32.xlu0 %v3797_v22, %s4167_s27  ;;  %3918 = vrot.lane.b32.xlu1 %v3802_v26, %s5336_s22 }
  0x84   : > { %3923 = vrot.lane.b32.xlu0 %v3807_v27, %s4168_s29  ;;  %3928 = vrot.lane.b32.xlu1 %v3812_v32, %s4170_s16 }
  0x88   : > { %3933 = vrot.lane.b32.xlu0 %v3817_v33, %s4167_s27  ;;  %3938 = vrot.lane.b32.xlu1 %v3822_v34, %s5336_s22  ;;  %s5276_s22 = scalar_lea.hbm %s5330_s9, %s3368_s14 }
  0x8c   : > { %3943 = vrot.lane.b32.xlu0 %v3827_v35, %s4168_s29  ;;  %3948 = vrot.lane.b32.xlu1 %v3947_v37, %s4170_s16 }
  0xa2   : > { %v3714_v42 = vpop.permute.xlu0 %3713  ;;  %v3724_v43 = vpop.permute.xlu1 %3723 }
  0xa3   : > { %v3716_v45 = vunpack.i.h.bf16 %v3714_v42  ;;  %v3715_v46 = vunpack.i.l.bf16 %v3714_v42  ;;  %v3726_v58 = vunpack.i.h.bf16 %v3724_v43  ;;  %v3725_v59 = vunpack.i.l.bf16 %v3724_v43 }
  0xa5   : > { %v525_v56 = vsel %vm499_vm1, %v4367_v38, %v3716_v45  ;;  %v500_v57 = vsel %vm499_vm1, %v474_v47, %v3715_v46 }
  0xa6   : > { %v3719_v49 = vpop.permute.xlu0 %3718  ;;  %v3729_v51 = vpop.permute.xlu1 %3728 }
  0xa7   : > { %v3721_v52 = vunpack.i.h.bf16 %v3719_v49  ;;  %v3720_v53 = vunpack.i.l.bf16 %v3719_v49  ;;  %v3731_v54 = vunpack.i.h.bf16 %v3729_v51  ;;  %v3730_v55 = vunpack.i.l.bf16 %v3729_v51 }
  0xa9   : > { %v502_v61 = vsel %vm501_vm2, %v500_v57, %v3720_v53  ;;  %v526_v62 = vsel %vm501_vm2, %v525_v56, %v3721_v52  ;;  %v945_v63 = vpack.c.bf16 %v3731_v54, %v3730_v55 }
  0xaa   : > { %v3734_v0 = vpop.permute.xlu0 %3733  ;;  %v3739_v1 = vpop.permute.xlu1 %3738  ;;  %v504_v3 = vsel %vm503_vm4, %v502_v61, %v3725_v59  ;;  %v527_v4 = vsel %vm503_vm4, %v526_v62, %v3726_v58 }
  0xab   : > { %v3736_v5 = vunpack.i.h.bf16 %v3734_v0  ;;  %v3735_v6 = vunpack.i.l.bf16 %v3734_v0  ;;  %v3741_v7 = vunpack.i.h.bf16 %v3739_v1  ;;  %v3740_v38 = vunpack.i.l.bf16 %v3739_v1  ;;  %3115 = vmatprep.mubr.msk.bf16.mxu0 %vm1039_vm3, %v945_v63  ;;  %3154 = vmatprep.mubr.msk.bf16.mxu1 %vm1039_vm3, %v945_v63 }
  0xac   : > { %v506_v9 = vsel %vm505_vm5, %v504_v3, %v3730_v55  ;;  %v528_v10 = vsel %vm505_vm5, %v527_v4, %v3731_v54 }
  0xad   : > { %v569_v14 = vsel %vm499_vm1, %v4373_v40, %v3736_v5  ;;  %v547_v15 = vsel %vm499_vm1, %v4370_v39, %v3735_v6  ;;  %v944_v16 = vpack.c.bf16 %v528_v10, %v506_v9  ;;  %v3973_v39 = vld [vmem:[%s5324_s3 + $0x8] sm:$0xff]  }
  0xae   : > { %v548_v18 = vsel %vm501_vm2, %v547_v15, %v3740_v38  ;;  %v570_v19 = vsel %vm501_vm2, %v569_v14, %v3741_v7  ;;  %v3744_v21 = vpop.permute.xlu0 %3743  ;;  %v3749_v22 = vpop.permute.xlu1 %3748 }
  0xaf   : > { %v3746_v23 = vunpack.i.h.bf16 %v3744_v21  ;;  %v3745_v24 = vunpack.i.l.bf16 %v3744_v21  ;;  %1113 = vmatmul.mubr.bf16.vlgmr.msra.gmra.mrb[0].mxu0 %v944_v16  ;;  %1329 = vmatmul.mubr.bf16.vlgmr.msra.gmra.mrb[0].mxu1 %v944_v16  ;;  %v3751_v25 = vunpack.i.h.bf16 %v3749_v22  ;;  %v3750_v40 = vunpack.i.l.bf16 %v3749_v22 }
  0xb0   : > { %3372 = vmatpush3.bf16.msra.mxu0 %v3971_v11  ;;  %3412 = vmatpush3.bf16.msra.mxu1 %v3975_v13 }
  0xb1   : > { %v549_v26 = vsel %vm503_vm4, %v548_v18, %v3745_v24  ;;  %v571_v27 = vsel %vm503_vm4, %v570_v19, %v3746_v23  ;;  %v947_v28 = vpack.c.bf16 %v3751_v25, %v3750_v40  ;;  %3373 = vmatprep.subr.bf16.mxu0 %v3972_v17 }
  0xb2   : > { %v3754_v30 = vpop.permute.xlu0 %3753  ;;  %v3759_v31 = vpop.permute.xlu1 %3758  ;;  %v550_v32 = vsel %vm505_vm5, %v549_v26, %v3750_v40  ;;  %v572_v33 = vsel %vm505_vm5, %v571_v27, %v3751_v25 }
  0xb3   : > { %v3756_v34 = vunpack.i.h.bf16 %v3754_v30  ;;  %v3755_v35 = vunpack.i.l.bf16 %v3754_v30  ;;  %v3761_v29 = vunpack.i.h.bf16 %v3759_v31  ;;  %v3760_v36 = vunpack.i.l.bf16 %v3759_v31  ;;  %3116 = vmatprep.mubr.msk.bf16.mxu0 %vm1039_vm3, %v947_v28  ;;  %3155 = vmatprep.mubr.msk.bf16.mxu1 %vm1039_vm3, %v947_v28 }
  0xb4   : > { %v946_v37 = vpack.c.bf16 %v572_v33, %v550_v32  ;;  %3374 = vmatpush3.bf16.msra.mxu0 %v3973_v39 }
  0xb5   : > { %v613_v41 = vsel %vm499_vm1, %v4405_v48, %v3756_v34  ;;  %v591_v42 = vsel %vm499_vm1, %v4389_v44, %v3755_v35 }
  0xb6   : > { %v592_v43 = vsel %vm501_vm2, %v591_v42, %v3760_v36  ;;  %v614_v45 = vsel %vm501_vm2, %v613_v41, %v3761_v29  ;;  %v3764_v46 = vpop.permute.xlu0 %3763  ;;  %v3769_v47 = vpop.permute.xlu1 %3768 }
  0xb7   : > { %v3766_v49 = vunpack.i.h.bf16 %v3764_v46  ;;  %v3765_v51 = vunpack.i.l.bf16 %v3764_v46  ;;  %1121 = vmatmul.mubr.bf16.gmra.mrb[4].mxu0 %v946_v37  ;;  %1337 = vmatmul.mubr.bf16.gmra.mrb[4].mxu1 %v946_v37  ;;  %v3771_v52 = vunpack.i.h.bf16 %v3769_v47  ;;  %v3770_v53 = vunpack.i.l.bf16 %v3769_v47 }
  0xb9   : > { %v593_v54 = vsel %vm503_vm4, %v592_v43, %v3765_v51  ;;  %v615_v55 = vsel %vm503_vm4, %v614_v45, %v3766_v49  ;;  %v949_v48 = vpack.c.bf16 %v3771_v52, %v3770_v53 }
  0xba   : > { %v3774_v56 = vpop.permute.xlu0 %3773  ;;  %v3779_v57 = vpop.permute.xlu1 %3778  ;;  %v594_v44 = vsel %vm505_vm5, %v593_v54, %v3770_v53  ;;  %v616_v58 = vsel %vm505_vm5, %v615_v55, %v3771_v52 }
  0xbb   : > { %v3776_v59 = vunpack.i.h.bf16 %v3774_v56  ;;  %v3775_v61 = vunpack.i.l.bf16 %v3774_v56  ;;  %v3781_v62 = vunpack.i.h.bf16 %v3779_v57  ;;  %v3780_v63 = vunpack.i.l.bf16 %v3779_v57  ;;  %3117 = vmatprep.mubr.msk.bf16.mxu0 %vm1039_vm3, %v949_v48  ;;  %3156 = vmatprep.mubr.msk.bf16.mxu1 %vm1039_vm3, %v949_v48 }
  0xbc   : > { %v948_v0 = vpack.c.bf16 %v616_v58, %v594_v44 }
  0xbd   : > { %v657_v1 = vsel %vm499_vm1, %v4446_v60, %v3776_v59  ;;  %v635_v3 = vsel %vm499_vm1, %v4409_v50, %v3775_v61 }
  0xbe   : > { %v636_v4 = vsel %vm501_vm2, %v635_v3, %v3780_v63  ;;  %v658_v5 = vsel %vm501_vm2, %v657_v1, %v3781_v62  ;;  %v3784_v6 = vpop.permute.xlu0 %3783  ;;  %v3789_v7 = vpop.permute.xlu1 %3788 }
  0xbf   : > { %v3786_v38 = vunpack.i.h.bf16 %v3784_v6  ;;  %v3785_v9 = vunpack.i.l.bf16 %v3784_v6  ;;  %1129 = vmatmul.mubr.bf16.gmra.mrb[8].mxu0 %v948_v0  ;;  %1345 = vmatmul.mubr.bf16.gmra.mrb[8].mxu1 %v948_v0  ;;  %v3791_v10 = vunpack.i.h.bf16 %v3789_v7  ;;  %v3790_v11 = vunpack.i.l.bf16 %v3789_v7  ;;  %v4091_v6 = vld [vmem:[%s4359_s26 + $0x70] sm:$0xff] }
  0xc1   : > { %v637_v13 = vsel %vm503_vm4, %v636_v4, %v3785_v9  ;;  %v659_v14 = vsel %vm503_vm4, %v658_v5, %v3786_v38  ;;  %v951_v60 = vpack.c.bf16 %v3791_v10, %v3790_v11  ;;  %v4090_v4 = vld [vmem:[%s4359_s26 + $0x78] sm:$0xff] }
  0xc2   : > { %v3794_v15 = vpop.permute.xlu0 %3793  ;;  %v3799_v16 = vpop.permute.xlu1 %3798  ;;  %v638_v50 = vsel %vm505_vm5, %v637_v13, %v3790_v11  ;;  %v660_v17 = vsel %vm505_vm5, %v659_v14, %v3791_v10 }
  0xc3   : > { %v3796_v18 = vunpack.i.h.bf16 %v3794_v15  ;;  %v3795_v19 = vunpack.i.l.bf16 %v3794_v15  ;;  %v3801_v21 = vunpack.i.h.bf16 %v3799_v16  ;;  %v3800_v22 = vunpack.i.l.bf16 %v3799_v16  ;;  %3118 = vmatprep.mubr.msk.bf16.mxu0 %vm1039_vm3, %v951_v60  ;;  %3157 = vmatprep.mubr.msk.bf16.mxu1 %vm1039_vm3, %v951_v60 }
  0xc4   : > { %v950_v23 = vpack.c.bf16 %v660_v17, %v638_v50 }
  0xc5   : > { %v701_v24 = vsel %vm499_vm1, %v4490_v8, %v3796_v18  ;;  %v679_v25 = vsel %vm499_vm1, %v4468_v2, %v3795_v19 }
  0xc6   : > { %v680_v40 = vsel %vm501_vm2, %v679_v25, %v3800_v22  ;;  %v702_v39 = vsel %vm501_vm2, %v701_v24, %v3801_v21  ;;  %v3804_v26 = vpop.permute.xlu0 %3803  ;;  %v3809_v27 = vpop.permute.xlu1 %3808 }
  0xc7   : > { %v3806_v28 = vunpack.i.h.bf16 %v3804_v26  ;;  %v3805_v30 = vunpack.i.l.bf16 %v3804_v26  ;;  %1137 = vmatmul.mubr.bf16.gmra.mrb[12].mxu0 %v950_v23  ;;  %1353 = vmatmul.mubr.bf16.gmra.mrb[12].mxu1 %v950_v23  ;;  %v3811_v31 = vunpack.i.h.bf16 %v3809_v27  ;;  %v3810_v32 = vunpack.i.l.bf16 %v3809_v27  ;;  %v4092_v26 = vld [vmem:[%s4359_s26 + $0x88] sm:$0xff] }
  0xc9   : > { %v681_v33 = vsel %vm503_vm4, %v680_v40, %v3805_v30  ;;  %v703_v34 = vsel %vm503_vm4, %v702_v39, %v3806_v28  ;;  %v953_v8 = vpack.c.bf16 %v3811_v31, %v3810_v32  ;;  %v4093_v28 = vld [vmem:[%s4359_s26 + $0x80] sm:$0xff] }
  0xca   : > { %v3814_v35 = vpop.permute.xlu0 %3813  ;;  %v3819_v29 = vpop.permute.xlu1 %3818  ;;  %v682_v2 = vsel %vm505_vm5, %v681_v33, %v3810_v32  ;;  %v704_v36 = vsel %vm505_vm5, %v703_v34, %v3811_v31 }
  0xcb   : > { %v3816_v37 = vunpack.i.h.bf16 %v3814_v35  ;;  %v3815_v41 = vunpack.i.l.bf16 %v3814_v35  ;;  %v3821_v42 = vunpack.i.h.bf16 %v3819_v29  ;;  %v3820_v43 = vunpack.i.l.bf16 %v3819_v29  ;;  %3119 = vmatprep.mubr.msk.bf16.mxu0 %vm1039_vm3, %v953_v8  ;;  %3158 = vmatprep.mubr.msk.bf16.mxu1 %vm1039_vm3, %v953_v8 }
  0xcc   : > { %v952_v45 = vpack.c.bf16 %v704_v36, %v682_v2 }
  0xcd   : > { %v745_v46 = vsel %vm499_vm1, %v4525_v20, %v3816_v37  ;;  %v723_v47 = vsel %vm499_vm1, %v4501_v12, %v3815_v41 }
  0xce   : > { %v724_v49 = vsel %vm501_vm2, %v723_v47, %v3820_v43  ;;  %v746_v51 = vsel %vm501_vm2, %v745_v46, %v3821_v42  ;;  %v3824_v52 = vpop.permute.xlu0 %3823  ;;  %v3829_v53 = vpop.permute.xlu1 %3828 }
  0xcf   : > { %v3826_v54 = vunpack.i.h.bf16 %v3824_v52  ;;  %v3825_v55 = vunpack.i.l.bf16 %v3824_v52  ;;  %1145 = vmatmul.mubr.bf16.gmra.mrb[16].mxu0 %v952_v45  ;;  %1361 = vmatmul.mubr.bf16.gmra.mrb[16].mxu1 %v952_v45  ;;  %v3831_v48 = vunpack.i.h.bf16 %v3829_v53  ;;  %v3830_v56 = vunpack.i.l.bf16 %v3829_v53 }
  0xd1   : > { %v725_v57 = vsel %vm503_vm4, %v724_v49, %v3825_v55  ;;  %v747_v20 = vsel %vm503_vm4, %v746_v51, %v3826_v54  ;;  %v955_v44 = vpack.c.bf16 %v3831_v48, %v3830_v56  ;;  %v4094_v54 = vld [vmem:[%s4359_s26 + $0x98] sm:$0xff] }
  0xd2   : > { %v3834_v12 = vpop.permute.xlu0 %3833  ;;  %v3839_v58 = vpop.permute.xlu1 %3838  ;;  %v726_v59 = vsel %vm505_vm5, %v725_v57, %v3830_v56  ;;  %v748_v61 = vsel %vm505_vm5, %v747_v20, %v3831_v48  ;;  %v4095_v48 = vld [vmem:[%s4359_s26 + $0x90] sm:$0xff] }
  0xd3   : > { %v3836_v62 = vunpack.i.h.bf16 %v3834_v12  ;;  %v3835_v63 = vunpack.i.l.bf16 %v3834_v12  ;;  %v3841_v0 = vunpack.i.h.bf16 %v3839_v58  ;;  %v3840_v1 = vunpack.i.l.bf16 %v3839_v58  ;;  %3120 = vmatprep.mubr.msk.bf16.mxu0 %vm1039_vm3, %v955_v44  ;;  %3159 = vmatprep.mubr.msk.bf16.mxu1 %vm1039_vm3, %v955_v44 }
  0xd4   : > { %v954_v3 = vpack.c.bf16 %v748_v61, %v726_v59 }
  0xd5   : > { %v777_v5 = vsel %vm499_vm1, %v4090_v4, %v3836_v62  ;;  %v761_v7 = vsel %vm499_vm1, %v4091_v6, %v3835_v63 }
  0xd6   : > { %v762_v38 = vsel %vm501_vm2, %v761_v7, %v3840_v1  ;;  %v778_v9 = vsel %vm501_vm2, %v777_v5, %v3841_v0  ;;  %v3844_v10 = vpop.permute.xlu0 %3843  ;;  %v3849_v11 = vpop.permute.xlu1 %3848 }
  0xd7   : > { %v3846_v13 = vunpack.i.h.bf16 %v3844_v10  ;;  %v3845_v14 = vunpack.i.l.bf16 %v3844_v10  ;;  %1153 = vmatmul.mubr.bf16.gmra.mrb[20].mxu0 %v954_v3  ;;  %1369 = vmatmul.mubr.bf16.gmra.mrb[20].mxu1 %v954_v3  ;;  %v3851_v60 = vunpack.i.h.bf16 %v3849_v11  ;;  %v3850_v15 = vunpack.i.l.bf16 %v3849_v11 }
  0xd9   : > { %v763_v16 = vsel %vm503_vm4, %v762_v38, %v3845_v14  ;;  %v779_v50 = vsel %vm503_vm4, %v778_v9, %v3846_v13  ;;  %v957_v17 = vpack.c.bf16 %v3851_v60, %v3850_v15  ;;  %v4096_v13 = vld [vmem:[%s4359_s26 + $0xa8] sm:$0xff] }
  0xda   : > { %v3854_v18 = vpop.permute.xlu0 %3853  ;;  %v3859_v19 = vpop.permute.xlu1 %3858  ;;  %v764_v21 = vsel %vm505_vm5, %v763_v16, %v3850_v15  ;;  %v780_v22 = vsel %vm505_vm5, %v779_v50, %v3851_v60  ;;  %v4097_v60 = vld [vmem:[%s4359_s26 + $0xa0] sm:$0xff] }
  0xdb   : > { %v3856_v23 = vunpack.i.h.bf16 %v3854_v18  ;;  %v3855_v24 = vunpack.i.l.bf16 %v3854_v18  ;;  %v3861_v25 = vunpack.i.h.bf16 %v3859_v19  ;;  %v3860_v40 = vunpack.i.l.bf16 %v3859_v19  ;;  %3121 = vmatprep.mubr.msk.bf16.mxu0 %vm1039_vm3, %v957_v17  ;;  %3160 = vmatprep.mubr.msk.bf16.mxu1 %vm1039_vm3, %v957_v17 }
  0xdc   : > { %v956_v39 = vpack.c.bf16 %v780_v22, %v764_v21 }
  0xdd   : > { %v809_v27 = vsel %vm499_vm1, %v4092_v26, %v3856_v23  ;;  %v793_v30 = vsel %vm499_vm1, %v4093_v28, %v3855_v24 }
  0xde   : > { %v794_v31 = vsel %vm501_vm2, %v793_v30, %v3860_v40  ;;  %v810_v32 = vsel %vm501_vm2, %v809_v27, %v3861_v25  ;;  %v3864_v33 = vpop.permute.xlu0 %3863  ;;  %v3869_v34 = vpop.permute.xlu1 %3868 }
  0xdf   : > { %v3866_v8 = vunpack.i.h.bf16 %v3864_v33  ;;  %v3865_v35 = vunpack.i.l.bf16 %v3864_v33  ;;  %1161 = vmatmul.mubr.bf16.gmra.mrb[24].mxu0 %v956_v39  ;;  %1377 = vmatmul.mubr.bf16.gmra.mrb[24].mxu1 %v956_v39  ;;  %v3871_v29 = vunpack.i.h.bf16 %v3869_v34  ;;  %v3870_v2 = vunpack.i.l.bf16 %v3869_v34 }
  0xe1   : > { %v795_v36 = vsel %vm503_vm4, %v794_v31, %v3865_v35  ;;  %v811_v37 = vsel %vm503_vm4, %v810_v32, %v3866_v8  ;;  %v959_v41 = vpack.c.bf16 %v3871_v29, %v3870_v2  ;;  %v4098_v8 = vld [vmem:[%s4359_s26 + $0xb8] sm:$0xff] }
  0xe2   : > { %v3874_v42 = vpop.permute.xlu0 %3873  ;;  %v3879_v43 = vpop.permute.xlu1 %3878  ;;  %v796_v45 = vsel %vm505_vm5, %v795_v36, %v3870_v2  ;;  %v812_v46 = vsel %vm505_vm5, %v811_v37, %v3871_v29  ;;  %v4099_v29 = vld [vmem:[%s4359_s26 + $0xb0] sm:$0xff] }
  0xe3   : > { %v3876_v47 = vunpack.i.h.bf16 %v3874_v42  ;;  %v3875_v49 = vunpack.i.l.bf16 %v3874_v42  ;;  %v3881_v51 = vunpack.i.h.bf16 %v3879_v43  ;;  %v3880_v52 = vunpack.i.l.bf16 %v3879_v43  ;;  %3122 = vmatprep.mubr.msk.bf16.mxu0 %vm1039_vm3, %v959_v41  ;;  %3161 = vmatprep.mubr.msk.bf16.mxu1 %vm1039_vm3, %v959_v41 }
  0xe4   : > { %v958_v53 = vpack.c.bf16 %v812_v46, %v796_v45 }
  0xe5   : > { %v841_v55 = vsel %vm499_vm1, %v4094_v54, %v3876_v47  ;;  %v825_v56 = vsel %vm499_vm1, %v4095_v48, %v3875_v49 }
  0xe6   : > { %v826_v57 = vsel %vm501_vm2, %v825_v56, %v3880_v52  ;;  %v842_v20 = vsel %vm501_vm2, %v841_v55, %v3881_v51  ;;  %v3884_v44 = vpop.permute.xlu0 %3883  ;;  %v3889_v12 = vpop.permute.xlu1 %3888 }
  0xe7   : > { %v3886_v58 = vunpack.i.h.bf16 %v3884_v44  ;;  %v3885_v59 = vunpack.i.l.bf16 %v3884_v44  ;;  %1169 = vmatmul.mubr.bf16.gmra.mrb[28].mxu0 %v958_v53  ;;  %1385 = vmatmul.mubr.bf16.gmra.mrb[28].mxu1 %v958_v53  ;;  %v3891_v61 = vunpack.i.h.bf16 %v3889_v12  ;;  %v3890_v62 = vunpack.i.l.bf16 %v3889_v12 }
  0xe9   : > { %v827_v63 = vsel %vm503_vm4, %v826_v57, %v3885_v59  ;;  %v843_v0 = vsel %vm503_vm4, %v842_v20, %v3886_v58  ;;  %v961_v1 = vpack.c.bf16 %v3891_v61, %v3890_v62  ;;  %v4100_v58 = vld [vmem:[%s4359_s26 + $0xc8] sm:$0xff] }
  0xea   : > { %v3894_v3 = vpop.permute.xlu0 %3893  ;;  %v3899_v4 = vpop.permute.xlu1 %3898  ;;  %v828_v5 = vsel %vm505_vm5, %v827_v63, %v3890_v62  ;;  %v844_v6 = vsel %vm505_vm5, %v843_v0, %v3891_v61  ;;  %v4101_v61 = vld [vmem:[%s4359_s26 + $0xc0] sm:$0xff]  ;;  %s3078_s26 = sshll.u32 %s4341_s28, 3 }
  0xeb   : > { %v3896_v7 = vunpack.i.h.bf16 %v3894_v3  ;;  %v3895_v38 = vunpack.i.l.bf16 %v3894_v3  ;;  %v3901_v9 = vunpack.i.h.bf16 %v3899_v4  ;;  %v3900_v10 = vunpack.i.l.bf16 %v3899_v4  ;;  %3123 = vmatprep.mubr.msk.bf16.mxu0 %vm1039_vm3, %v961_v1  ;;  %3162 = vmatprep.mubr.msk.bf16.mxu1 %vm1039_vm3, %v961_v1  ;;  %s472_s17 = scalar_lea.vmem [#allocation3], %s3078_s26  ;;  %s4108_s26 = scalar_lea.vmem %s4107_s25, 256 }
  0xec   : > { %v960_v11 = vpack.c.bf16 %v844_v6, %v828_v5  ;;  %s3008_s27 = sshll.u32 %s472_s17, 4  ;;  %s5278_s27 = int_to_ptr.vmem [resolvable:$true] %s3008_s27 }
  0xed   : > { %v873_v14 = vsel %vm499_vm1, %v4096_v13, %v3896_v7  ;;  %v857_v15 = vsel %vm499_vm1, %v4097_v60, %v3895_v38  ;;  %v3976_v60 = vld [vmem:[%s5324_s3 + $0x50] sm:$0xff]   ;;  %s4102_s23 = scalar_lea.vmem %s5278_s27, 128  ;;  %p4109_p2 = scmp.lt.s32.totalorder %s5278_s27, %s4107_s25 }
  0xee   : > { %v858_v16 = vsel %vm501_vm2, %v857_v15, %v3900_v10  ;;  %v874_v50 = vsel %vm501_vm2, %v873_v14, %v3901_v9  ;;  %v3904_v17 = vpop.permute.xlu0 %3903  ;;  %v3909_v18 = vpop.permute.xlu1 %3908  ;;  %v3977_v15 = vld [vmem:[%s5324_s3 + $0x10] sm:$0xff]   ;;  %3375 = vmatprep.subr.bf16.mxu0 %v3976_v60  ;;  %p4103_p13 = scmp.ne.s32.totalorder %s5278_s27, %s4102_s23  ;;  %p4110_p3 = scmp.lt.s32.totalorder %s4108_s26, %s4102_s23 }
  0xef   : > { %v3906_v19 = vunpack.i.h.bf16 %v3904_v17  ;;  %v3905_v21 = vunpack.i.l.bf16 %v3904_v17  ;;  %1177 = vmatmul.mubr.bf16.gmra.mrb[32].mxu0 %v960_v11  ;;  %1393 = vmatmul.mubr.bf16.gmra.mrb[32].mxu1 %v960_v11  ;;  %v3911_v22 = vunpack.i.h.bf16 %v3909_v18  ;;  %v3910_v23 = vunpack.i.l.bf16 %v3909_v18  ;;  %v3980_v17 = vld [vmem:[%s5324_s3 + $0x58] sm:$0xff]  }
  0xf0   : > { %3376 = vmatpush3.bf16.msra.mxu0 %v3977_v15  ;;  %v3981_v18 = vld [vmem:[%s5324_s3 + $0x18] sm:$0xff]   ;;  %p4104_p0 = pnand %p4103_p13, %p4262_p6  ;;  %p4111_p4 = por %p4110_p3, %p4109_p2 }
  0xf1   : > { %v859_v24 = vsel %vm503_vm4, %v858_v16, %v3905_v21  ;;  %v875_v25 = vsel %vm503_vm4, %v874_v50, %v3906_v19  ;;  %v963_v40 = vpack.c.bf16 %v3911_v22, %v3910_v23  ;;  %v3978_v16 = vld [vmem:[%s5324_s3 + $0xc8] sm:$0xff]   ;;  %3377 = vmatprep.subr.bf16.mxu0 %v3980_v17  ;;  %v3982_v19 = vld [vmem:[%s5324_s3 + $0xd0] sm:$0xff]  }
  0xf2   : > { %v3914_v39 = vpop.permute.xlu0 %3913  ;;  %v3919_v26 = vpop.permute.xlu1 %3918  ;;  %v860_v27 = vsel %vm505_vm5, %v859_v24, %v3910_v23  ;;  %v876_v28 = vsel %vm505_vm5, %v875_v25, %v3911_v22  ;;  %v3979_v50 = vld [vmem:[%s5324_s3 + $0x88] sm:$0xff]   ;;  %3413 = vmatprep.subr.bf16.mxu1 %v3978_v16  ;;  %v3983_v21 = vld [vmem:[%s5324_s3 + $0x90] sm:$0xff]   ;;  %v3984_v22 = vld [vmem:[%s5324_s3 + $0x60] sm:$0xff]   ;;  %p4105_p1 = pneg %p4104_p0 }
  0xf3   : > { %v3916_v30 = vunpack.i.h.bf16 %v3914_v39  ;;  %v3915_v31 = vunpack.i.l.bf16 %v3914_v39  ;;  %v3921_v32 = vunpack.i.h.bf16 %v3919_v26  ;;  %v3920_v33 = vunpack.i.l.bf16 %v3919_v26  ;;  %3124 = vmatprep.mubr.msk.bf16.mxu0 %vm1039_vm3, %v963_v40  ;;  %3163 = vmatprep.mubr.msk.bf16.mxu1 %vm1039_vm3, %v963_v40  ;;  %v3985_v23 = vld [vmem:[%s5324_s3 + $0x20] sm:$0xff]   ;;  %v3986_v24 = vld [vmem:[%s5324_s3 + $0xd8] sm:$0xff]   ;;  %v3988_v40 = vld [vmem:[%s5324_s3 + $0x68] sm:$0xff]  }
  0xf4   : > { %v962_v34 = vpack.c.bf16 %v876_v28, %v860_v27  ;;  %3414 = vmatpush3.bf16.msra.mxu1 %v3979_v50  ;;  %3378 = vmatpush3.bf16.msra.mxu0 %v3981_v18  ;;  %v3987_v25 = vld [vmem:[%s5324_s3 + $0x98] sm:$0xff]   ;;  %v3989_v39 = vld [vmem:[%s5324_s3 + $0x28] sm:$0xff]   ;;  %v3990_v26 = vld [vmem:[%s5324_s3 + $0xe0] sm:$0xff]   ;;  %p4112_p5 = pnand %p4111_p4, %p4105_p1 }
  0xf5   : > { %v905_v35 = vsel %vm499_vm1, %v4098_v8, %v3916_v30  ;;  %v889_v2 = vsel %vm499_vm1, %v4099_v29, %v3915_v31  ;;  %3415 = vmatprep.subr.bf16.mxu1 %v3982_v19  ;;  %3379 = vmatprep.subr.bf16.mxu0 %v3984_v22  ;;  %v3991_v27 = vld [vmem:[%s5324_s3 + $0xa0] sm:$0xff]   ;;  %v3992_v28 = vld [vmem:[%s5324_s3 + $0x70] sm:$0xff]   ;;  %v3994_v31 = vld [vmem:[%s5324_s3 + $0xe8] sm:$0xff]  }
  0xf6   : > { %v890_v36 = vsel %vm501_vm2, %v889_v2, %v3920_v33  ;;  %v906_v37 = vsel %vm501_vm2, %v905_v35, %v3921_v32  ;;  %v3924_v41 = vpop.permute.xlu0 %3923  ;;  %v3929_v42 = vpop.permute.xlu1 %3928  ;;  %v3993_v30 = vld [vmem:[%s5324_s3 + $0x30] sm:$0xff]   ;;  %v3996_v32 = vld [vmem:[%s5324_s3 + $0x78] sm:$0xff]   ;;  %v3995_v33 = vld [vmem:[%s5324_s3 + $0xa8] sm:$0xff]  }
  0xf7   : > { %1185 = vmatmul.mubr.bf16.gmra.mrb[36].mxu0 %v962_v34  ;;  %1401 = vmatmul.mubr.bf16.gmra.mrb[36].mxu1 %v962_v34  ;;  %v3926_v43 = vunpack.i.h.bf16 %v3924_v41  ;;  %v3925_v45 = vunpack.i.l.bf16 %v3924_v41  ;;  %v3931_v46 = vunpack.i.h.bf16 %v3929_v42  ;;  %v3930_v47 = vunpack.i.l.bf16 %v3929_v42  ;;  %v3997_v34 = vld [vmem:[%s5324_s3 + $0x38] sm:$0xff]   ;;  %v3998_v8 = vld [vmem:[%s5324_s3 + $0xf0] sm:$0xff]  }
  0xf8   : > { %3416 = vmatpush3.bf16.msra.mxu1 %v3983_v21  ;;  %3380 = vmatpush3.bf16.msra.mxu0 %v3985_v23  ;;  %v3999_v35 = vld [vmem:[%s5324_s3 + $0xb0] sm:$0xff]   ;;  %v4000_v29 = vld [vmem:[%s5324_s3 + $0xf8] sm:$0xff]  }
  0xf9   : > { %v891_v49 = vsel %vm503_vm4, %v890_v36, %v3925_v45  ;;  %v907_v51 = vsel %vm503_vm4, %v906_v37, %v3926_v43  ;;  %v965_v52 = vpack.c.bf16 %v3931_v46, %v3930_v47  ;;  %3417 = vmatprep.subr.bf16.mxu1 %v3986_v24  ;;  %3381 = vmatprep.subr.bf16.mxu0 %v3988_v40  ;;  %v4001_v2 = vld [vmem:[%s5324_s3 + $0xb8] sm:$0xff]   ;;  %v4833_v36 = vld [vmem:[%s5324_s3 + $0x100] sm:$0xff]  }
  0xfa   : > { %v3934_v53 = vpop.permute.xlu0 %3933  ;;  %v3939_v54 = vpop.permute.xlu1 %3938  ;;  %v892_v55 = vsel %vm505_vm5, %v891_v49, %v3930_v47  ;;  %v908_v48 = vsel %vm505_vm5, %v907_v51, %v3931_v46  ;;  %v4005_v37 = vld [vmem:[%s5324_s3 + $0x180] sm:$0xff]  }
  0xfb   : > { %v3936_v56 = vunpack.i.h.bf16 %v3934_v53  ;;  %v3935_v57 = vunpack.i.l.bf16 %v3934_v53  ;;  %v3941_v20 = vunpack.i.h.bf16 %v3939_v54  ;;  %v3940_v44 = vunpack.i.l.bf16 %v3939_v54  ;;  %3125 = vmatprep.mubr.msk.bf16.mxu0 %vm1039_vm3, %v965_v52  ;;  %3164 = vmatprep.mubr.msk.bf16.mxu1 %vm1039_vm3, %v965_v52 }
  0xfc   : > { %v964_v12 = vpack.c.bf16 %v908_v48, %v892_v55  ;;  %3418 = vmatpush3.bf16.msra.mxu1 %v3987_v25  ;;  %3382 = vmatpush3.bf16.msra.mxu0 %v3989_v39 }
  0xfd   : > { %v940_v59 = vsel %vm499_vm1, %v4100_v58, %v3936_v56  ;;  %v921_v62 = vsel %vm499_vm1, %v4101_v61, %v3935_v57  ;;  %3419 = vmatprep.subr.bf16.mxu1 %v3990_v26  ;;  %3383 = vmatprep.subr.bf16.mxu0 %v3992_v28 }
  0xfe   : > { %v922_v63 = vsel %vm501_vm2, %v921_v62, %v3940_v44  ;;  %v941_v0 = vsel %vm501_vm2, %v940_v59, %v3941_v20  ;;  %v3944_v1 = vpop.permute.xlu0 %3943  ;;  %v3949_v3 = vpop.permute.xlu1 %3948 }
  0xff   : > { %1193 = vmatmul.mubr.bf16.gmra.mrb[40].mxu0 %v964_v12  ;;  %1409 = vmatmul.mubr.bf16.gmra.mrb[40].mxu1 %v964_v12  ;;  %v3946_v4 = vunpack.i.h.bf16 %v3944_v1  ;;  %v3945_v5 = vunpack.i.l.bf16 %v3944_v1  ;;  %v3951_v6 = vunpack.i.h.bf16 %v3949_v3  ;;  %v3950_v7 = vunpack.i.l.bf16 %v3949_v3 }
 0x100   : > { %3420 = vmatpush3.bf16.msra.mxu1 %v3991_v27  ;;  %3384 = vmatpush3.bf16.msra.mxu0 %v3993_v30 }
 0x101   : > { %v923_v38 = vsel %vm503_vm4, %v922_v63, %v3945_v5  ;;  %v942_v9 = vsel %vm503_vm4, %v941_v0, %v3946_v4  ;;  %v967_v10 = vpack.c.bf16 %v3951_v6, %v3950_v7  ;;  %3421 = vmatprep.subr.bf16.mxu1 %v3994_v31  ;;  %3385 = vmatprep.subr.bf16.mxu0 %v3996_v32 }
 0x102   : > { %v924_v11 = vsel %vm505_vm5, %v923_v38, %v3950_v7  ;;  %v943_v13 = vsel %vm505_vm5, %v942_v9, %v3951_v6 }
 0x103   : > { %3126 = vmatprep.mubr.msk.bf16.mxu0 %vm1039_vm3, %v967_v10  ;;  %3165 = vmatprep.mubr.msk.bf16.mxu1 %vm1039_vm3, %v967_v10  ;;  %v966_v14 = vpack.c.bf16 %v943_v13, %v924_v11 }
 0x104   : > { %3422 = vmatpush3.bf16.msra.mxu1 %v3995_v33  ;;  %3386 = vmatpush3.bf16.msra.mxu0 %v3997_v34 }
 0x105   : > { %3423 = vmatprep.subr.bf16.mxu1 %v3998_v8  ;;  %3604 = vmatprep.subr.bf16.mxu0 %v4833_v36 }
 0x107   : > { %1201 = vmatmul.mubr.bf16.gmra.mrb[44].mxu0 %v966_v14  ;;  %1417 = vmatmul.mubr.bf16.gmra.mrb[44].mxu1 %v966_v14 }
 0x108   : > { %3424 = vmatpush3.bf16.msra.mxu1 %v3999_v35 }
 0x109   : > { %3425 = vmatprep.subr.bf16.mxu1 %v4000_v29 }
 0x10c   : > { %3426 = vmatpush3.bf16.msra.mxu1 %v4001_v2 }
 0x10d   : > { %3463 = vmatprep.subr.bf16.mxu1 %v4005_v37  ;;  %v4882_v37 = vld [vmem:[%s5323_s2] ss:$0 sm:$0xff] }
 0x182   : > { %v1114_v41 = vpop.f32.mrb[0].mxu0  ;;  %v1330_v42 = vpop.f32.mrb[0].mxu1 }
 0x183   : > { %v1116_v43 = vpop.f32.mrb[1].mxu0  ;;  %v1332_v45 = vpop.f32.mrb[1].mxu1 }
 0x184   : > { %v1117_v46 = vpop.f32.mrb[2].mxu0  ;;  %v1333_v47 = vpop.f32.mrb[2].mxu1 }
 0x185   : > { %v1119_v49 = vpop.f32.mrb[3].mxu0  ;;  %v1335_v51 = vpop.f32.mrb[3].mxu1 }
 0x18a   : > { %v4839_v52 = vpop.f32.mrb[4].mxu0  ;;  %v4841_v53 = vpop.f32.mrb[4].mxu1 }
 0x18b   : > { %v1124_v54 = vpop.f32.mrb[5].mxu0  ;;  %v1340_v55 = vpop.f32.mrb[5].mxu1 }
 0x18c   : > { %v4843_v48 = vpop.f32.mrb[6].mxu0  ;;  %v4845_v56 = vpop.f32.mrb[6].mxu1 }
 0x18d   : > { %v1127_v57 = vpop.f32.mrb[7].mxu0  ;;  %v1343_v20 = vpop.f32.mrb[7].mxu1 }
 0x192   : > { %v4847_v44 = vpop.f32.mrb[8].mxu0  ;;  %v4849_v12 = vpop.f32.mrb[8].mxu1 }
 0x193   : > { %v1132_v58 = vpop.f32.mrb[9].mxu0  ;;  %v1348_v59 = vpop.f32.mrb[9].mxu1 }
 0x194   : > { %v4851_v61 = vpop.f32.mrb[10].mxu0  ;;  %v4853_v62 = vpop.f32.mrb[10].mxu1 }
 0x195   : > { %v1135_v63 = vpop.f32.mrb[11].mxu0  ;;  %v1351_v0 = vpop.f32.mrb[11].mxu1 }
 0x19a   : > { %v4855_v1 = vpop.f32.mrb[12].mxu0  ;;  %v4857_v3 = vpop.f32.mrb[12].mxu1 }
 0x19b   : > { %v1140_v4 = vpop.f32.mrb[13].mxu0  ;;  %v1356_v5 = vpop.f32.mrb[13].mxu1 }
 0x19c   : > { %v4859_v6 = vpop.f32.mrb[14].mxu0  ;;  %v4861_v7 = vpop.f32.mrb[14].mxu1 }
 0x19d   : > { %v1143_v38 = vpop.f32.mrb[15].mxu0  ;;  %v1359_v9 = vpop.f32.mrb[15].mxu1 }
 0x1a2   : > { %v4863_v10 = vpop.f32.mrb[16].mxu0  ;;  %v4865_v11 = vpop.f32.mrb[16].mxu1 }
 0x1a3   : > { %v1148_v13 = vpop.f32.mrb[17].mxu0  ;;  %v1364_v14 = vpop.f32.mrb[17].mxu1 }
 0x1a4   : > { %v4867_v60 = vpop.f32.mrb[18].mxu0  ;;  %v4869_v15 = vpop.f32.mrb[18].mxu1 }
 0x1a5   : > { %v1151_v16 = vpop.f32.mrb[19].mxu0  ;;  %v1367_v50 = vpop.f32.mrb[19].mxu1 }
 0x1aa   : > { %v4871_v17 = vpop.f32.mrb[20].mxu0  ;;  %v4873_v18 = vpop.f32.mrb[20].mxu1 }
 0x1ab   : > { %v1156_v19 = vpop.f32.mrb[21].mxu0  ;;  %v1372_v21 = vpop.f32.mrb[21].mxu1 }
 0x1ac   : > { %v4875_v22 = vpop.f32.mrb[22].mxu0  ;;  %v4877_v23 = vpop.f32.mrb[22].mxu1 }
 0x1ad   : > { %v1159_v24 = vpop.f32.mrb[23].mxu0  ;;  %v1375_v25 = vpop.f32.mrb[23].mxu1 }
 0x1b2   : > { %v1162_v40 = vpop.f32.mrb[24].mxu0  ;;  %v1378_v39 = vpop.f32.mrb[24].mxu1 }
 0x1b3   : > { %v1209_v26 = vmax.f32 %v1114_v41, %v1162_v40  ;;  %v1425_v27 = vmax.f32 %v1330_v42, %v1378_v39  ;;  %v1164_v28 = vpop.f32.mrb[25].mxu0  ;;  %v1380_v30 = vpop.f32.mrb[25].mxu1 }
 0x1b4   : > { %v1165_v31 = vpop.f32.mrb[26].mxu0  ;;  %v1381_v32 = vpop.f32.mrb[26].mxu1  ;;  %v4003_v30 = vld [vmem:[%s5324_s3 + $0x108] sm:$0xff]  }
 0x1b5   : > { %v1437_v33 = vmax.f32 %v1209_v26, %v1425_v27  ;;  %v1210_v34 = vmax.f32 %v1117_v46, %v1165_v31  ;;  %v1426_v8 = vmax.f32 %v1333_v47, %v1381_v32  ;;  %v1167_v35 = vpop.f32.mrb[27].mxu0  ;;  %v1383_v29 = vpop.f32.mrb[27].mxu1 }
 0x1b7   : > { %v1438_v2 = vmax.f32 %v1210_v34, %v1426_v8  ;;  %v1456_v46 = vadd.f32 %v4882_v37, %v1437_v33  ;;  %v4004_v33 = vld [vmem:[%s5324_s3 + $0x110] sm:$0xff]  }
 0x1b9   : > { %v1457_v63 = vadd.f32 %v4882_v37, %v1438_v2  ;;  %v1468_v4 = vmax.f32 %v1456_v46, 0.0  ;;  %v4008_v46 = vld [vmem:[%s5324_s3 + $0x188] sm:$0xff]  }
 0x1ba   : > { %v1170_v43 = vpop.f32.mrb[28].mxu0  ;;  %v1386_v45 = vpop.f32.mrb[28].mxu1 }
 0x1bb   : > { %v1211_v41 = vmax.f32 %v4839_v52, %v1170_v43  ;;  %v1427_v42 = vmax.f32 %v4841_v53, %v1386_v45  ;;  %v1172_v49 = vpop.f32.mrb[29].mxu0  ;;  %v1388_v51 = vpop.f32.mrb[29].mxu1  ;;  %v1469_v38 = vmax.f32 %v1457_v63, 0.0  ;;  %v4010_v63 = vld [vmem:[%s5324_s3 + $0x120] sm:$0xff]  }
 0x1bc   : > { %v1173_v54 = vpop.f32.mrb[30].mxu0  ;;  %v1389_v55 = vpop.f32.mrb[30].mxu1 }
 0x1bd   : > { %v1439_v47 = vmax.f32 %v1211_v41, %v1427_v42  ;;  %v1212_v57 = vmax.f32 %v4843_v48, %v1173_v54  ;;  %v1428_v20 = vmax.f32 %v4845_v56, %v1389_v55  ;;  %v1175_v58 = vpop.f32.mrb[31].mxu0  ;;  %v1391_v59 = vpop.f32.mrb[31].mxu1 }
 0x1be   : > { %v4009_v59 = vld [vmem:[%s5324_s3 + $0x148] sm:$0xff]  }
 0x1bf   : > { %v1458_v0 = vadd.f32 %v4882_v37, %v1439_v47  ;;  %v1440_v52 = vmax.f32 %v1212_v57, %v1428_v20 }
 0x1c1   : > { %v1470_v53 = vmax.f32 %v1458_v0, 0.0  ;;  %v1459_v5 = vadd.f32 %v4882_v37, %v1440_v52 }
 0x1c2   : > { %v1178_v9 = vpop.f32.mrb[32].mxu0  ;;  %v1394_v13 = vpop.f32.mrb[32].mxu1 }
 0x1c3   : > { %v4892_v14 = vpack.c.bf16 %v1470_v53, %v1468_v4  ;;  %v1471_v16 = vmax.f32 %v1459_v5, 0.0  ;;  %v1213_v48 = vmax.f32 %v4847_v44, %v1178_v9  ;;  %v1429_v56 = vmax.f32 %v4849_v12, %v1394_v13  ;;  %v1180_v50 = vpop.f32.mrb[33].mxu0  ;;  %v1396_v19 = vpop.f32.mrb[33].mxu1  ;;  %v4011_v9 = vld [vmem:[%s5324_s3 + $0x190] sm:$0xff]  }
 0x1c4   : > { %v1181_v21 = vpop.f32.mrb[34].mxu0  ;;  %v1397_v24 = vpop.f32.mrb[34].mxu1 }
 0x1c5   : > { %v4896_v25 = vpack.c.bf16 %v1471_v16, %v1469_v38  ;;  %v1441_v40 = vmax.f32 %v1213_v48, %v1429_v56  ;;  %v1214_v39 = vmax.f32 %v4851_v61, %v1181_v21  ;;  %v1430_v26 = vmax.f32 %v4853_v62, %v1397_v24  ;;  %v1183_v27 = vpop.f32.mrb[35].mxu0  ;;  %v1399_v28 = vpop.f32.mrb[35].mxu1 }
 0x1c7   : > { %v1460_v44 = vadd.f32 %v4882_v37, %v1441_v40  ;;  %v1442_v12 = vmax.f32 %v1214_v39, %v1430_v26  ;;  %1842 = vmatprep.mubr.bf16.mxu0 %v4896_v25 }
 0x1c8   : > { %1843 = vmatmul.mubr.bf16.vlgmr.msra.gmra.mrb[48].mxu0 %v4892_v14 }
 0x1c9   : > { %v1472_v31 = vmax.f32 %v1460_v44, 0.0  ;;  %v1461_v32 = vadd.f32 %v4882_v37, %v1442_v12  ;;  %3605 = vmatpush3.bf16.msra.mxu0 %v4833_v36  ;;  %v4016_v44 = vld [vmem:[%s5324_s3 + $0x130] sm:$0xff]  }
 0x1ca   : > { %v1186_v61 = vpop.f32.mrb[36].mxu0  ;;  %v1402_v62 = vpop.f32.mrb[36].mxu1  ;;  %3606 = vmatprep.subr.bf16.mxu0 %v4003_v30 }
 0x1cb   : > { %v4911_v34 = vpack.c.bf16 %v1472_v31, %v1470_v53  ;;  %v1473_v8 = vmax.f32 %v1461_v32, 0.0  ;;  %v1215_v35 = vmax.f32 %v4855_v1, %v1186_v61  ;;  %v1431_v29 = vmax.f32 %v4857_v3, %v1402_v62  ;;  %v1188_v2 = vpop.f32.mrb[37].mxu0  ;;  %v1404_v43 = vpop.f32.mrb[37].mxu1  ;;  %v4006_v1 = vld [vmem:[%s5324_s3 + $0x140] sm:$0xff]   ;;  %v4007_v3 = vld [vmem:[%s5324_s3 + $0x118] sm:$0xff]  }
 0x1cc   : > { %v1189_v45 = vpop.f32.mrb[38].mxu0  ;;  %v1405_v41 = vpop.f32.mrb[38].mxu1 }
 0x1cd   : > { %v4915_v42 = vpack.c.bf16 %v1473_v8, %v1471_v16  ;;  %v1443_v36 = vmax.f32 %v1215_v35, %v1431_v29  ;;  %v1216_v49 = vmax.f32 %v4859_v6, %v1189_v45  ;;  %v1432_v51 = vmax.f32 %v4861_v7, %v1405_v41  ;;  %v1191_v54 = vpop.f32.mrb[39].mxu0  ;;  %v1407_v55 = vpop.f32.mrb[39].mxu1  ;;  %3607 = vmatpush3.bf16.msra.mxu0 %v4003_v30  ;;  %v4015_v30 = vld [vmem:[%s5324_s3 + $0x158] sm:$0xff]  }
 0x1ce   : > { %3608 = vmatprep.subr.bf16.mxu0 %v4004_v33 }
 0x1cf   : > { %v1462_v6 = vadd.f32 %v4882_v37, %v1443_v36  ;;  %v1444_v47 = vmax.f32 %v1216_v49, %v1432_v51  ;;  %1907 = vmatprep.mubr.bf16.mxu1 %v4915_v42 }
 0x1d0   : > { %1908 = vmatmul.mubr.bf16.vlgmr.msra.gmra.mrb[48].mxu1 %v4911_v34 }
 0x1d1   : > { %v1474_v7 = vmax.f32 %v1462_v6, 0.0  ;;  %v1463_v57 = vadd.f32 %v4882_v37, %v1444_v47  ;;  %3609 = vmatpush3.bf16.msra.mxu0 %v4004_v33  ;;  %3464 = vmatpush3.bf16.msra.mxu1 %v4006_v1  ;;  %v4021_v1 = vld [vmem:[%s5324_s3 + $0x168] sm:$0xff]   ;;  %v4022_v6 = vld [vmem:[%s5324_s3 + $0x200] sm:$0xff]  }
 0x1d2   : > { %v1194_v20 = vpop.f32.mrb[40].mxu0  ;;  %v1410_v58 = vpop.f32.mrb[40].mxu1  ;;  %3610 = vmatprep.subr.bf16.mxu0 %v4007_v3  ;;  %3465 = vmatprep.subr.bf16.mxu1 %v4008_v46 }
 0x1d3   : > { %v4938_v0 = vpack.c.bf16 %v1474_v7, %v1472_v31  ;;  %v1475_v52 = vmax.f32 %v1463_v57, 0.0  ;;  %v1217_v4 = vmax.f32 %v4863_v10, %v1194_v20  ;;  %v1433_v53 = vmax.f32 %v4865_v11, %v1410_v58  ;;  %v1196_v5 = vpop.f32.mrb[41].mxu0  ;;  %v1412_v38 = vpop.f32.mrb[41].mxu1  ;;  %v4012_v10 = vld [vmem:[%s5324_s3 + $0x150] sm:$0xff]   ;;  %v4013_v11 = vld [vmem:[%s5324_s3 + $0x128] sm:$0xff]   ;;  %v4027_v57 = vld [vmem:[%s5324_s3 + $0x1b8] sm:$0xff]  }
 0x1d4   : > { %v1197_v13 = vpop.f32.mrb[42].mxu0  ;;  %v1413_v16 = vpop.f32.mrb[42].mxu1  ;;  %v4029_v20 = vld [vmem:[%s5324_s3 + $0x178] sm:$0xff]   ;;  %v4032_v58 = vld [vmem:[%s5324_s3 + $0x240] sm:$0xff]   ;;  %v4035_v38 = vld [vmem:[%s5324_s3 + $0x248] sm:$0xff]  }
 0x1d5   : > { %v4945_v48 = vpack.c.bf16 %v1475_v52, %v1473_v8  ;;  %v1445_v56 = vmax.f32 %v1217_v4, %v1433_v53  ;;  %v1218_v50 = vmax.f32 %v4867_v60, %v1197_v13  ;;  %v1434_v19 = vmax.f32 %v4869_v15, %v1413_v16  ;;  %v1199_v21 = vpop.f32.mrb[43].mxu0  ;;  %v1415_v24 = vpop.f32.mrb[43].mxu1  ;;  %3611 = vmatpush3.bf16.msra.mxu0 %v4007_v3  ;;  %v4014_v60 = vld [vmem:[%s5324_s3 + $0x198] sm:$0xff]   ;;  %v4017_v8 = vld [vmem:[%s5324_s3 + $0x1a0] sm:$0xff]   ;;  %v4030_v4 = vld [vmem:[%s5324_s3 + $0x210] sm:$0xff]  }
 0x1d6   : > { %3466 = vmatpush3.bf16.msra.mxu1 %v4009_v59  ;;  %3612 = vmatprep.subr.bf16.mxu0 %v4010_v63  ;;  %v4024_v59 = vld [vmem:[%s5324_s3 + $0x1c0] sm:$0xff]   ;;  %v4031_v53 = vld [vmem:[%s5324_s3 + $0x1d0] sm:$0xff]   ;;  %v4033_v5 = vld [vmem:[%s5324_s3 + $0x218] sm:$0xff]  }
 0x1d7   : > { %v1464_v40 = vadd.f32 %v4882_v37, %v1445_v56  ;;  %v1446_v39 = vmax.f32 %v1218_v50, %v1434_v19  ;;  %1850 = vmatprep.mubr.bf16.mxu0 %v4945_v48  ;;  %3467 = vmatprep.subr.bf16.mxu1 %v4011_v9  ;;  %v4034_v9 = vld [vmem:[%s5324_s3 + $0x1d8] sm:$0xff]   ;;  %v4036_v13 = vld [vmem:[%s5324_s3 + $0x220] sm:$0xff]   ;;  %v4039_v56 = vld [vmem:[%s5324_s3 + $0x228] sm:$0xff]  }
 0x1d8   : > { %1851 = vmatmul.mubr.bf16.gmra.mrb[52].mxu0 %v4938_v0  ;;  %v4037_v16 = vld [vmem:[%s5324_s3 + $0x1e0] sm:$0xff]   ;;  %v4041_v50 = vld [vmem:[%s5324_s3 + $0x258] sm:$0xff]   ;;  %v4040_v19 = vld [vmem:[%s5324_s3 + $0x1e8] sm:$0xff]  }
 0x1d9   : > { %v1476_v15 = vmax.f32 %v1464_v40, 0.0  ;;  %v1465_v26 = vadd.f32 %v4882_v37, %v1446_v39  ;;  %1858 = vmatprep.mubr.bf16.mxu0 %v4911_v34  ;;  %3613 = vmatpush3.bf16.msra.mxu0 %v4010_v63  ;;  %v4026_v63 = vld [vmem:[%s5324_s3 + $0x208] sm:$0xff]   ;;  %v4042_v21 = vld [vmem:[%s5324_s3 + $0x230] sm:$0xff]   ;;  %v4044_v24 = vld [vmem:[%s5324_s3 + $0x260] sm:$0xff]  }
 0x1da   : > { %v1202_v27 = vpop.f32.mrb[44].mxu0  ;;  %v1418_v28 = vpop.f32.mrb[44].mxu1  ;;  %3468 = vmatpush3.bf16.msra.mxu1 %v4012_v10  ;;  %3614 = vmatprep.subr.bf16.mxu0 %v4013_v11  ;;  %v4043_v10 = vld [vmem:[%s5324_s3 + $0x1f0] sm:$0xff]   ;;  %v4047_v40 = vld [vmem:[%s5324_s3 + $0x268] sm:$0xff]   ;;  %v4046_v39 = vld [vmem:[%s5324_s3 + $0x1f8] sm:$0xff]  }
 0x1db   : > { %v4969_v12 = vpack.c.bf16 %v1476_v15, %v1474_v7  ;;  %v1477_v31 = vmax.f32 %v1465_v26, 0.0  ;;  %v1219_v32 = vmax.f32 %v4871_v17, %v1202_v27  ;;  %v1435_v61 = vmax.f32 %v4873_v18, %v1418_v28  ;;  %v1204_v62 = vpop.f32.mrb[45].mxu0  ;;  %v1420_v33 = vpop.f32.mrb[45].mxu1  ;;  %3469 = vmatprep.subr.bf16.mxu1 %v4014_v60  ;;  %v4018_v18 = vld [vmem:[%s5324_s3 + $0x160] sm:$0xff]   ;;  %v4025_v7 = vld [vmem:[%s5324_s3 + $0x170] sm:$0xff]  }
 0x1dc   : > { %v1205_v35 = vpop.f32.mrb[46].mxu0  ;;  %v1421_v29 = vpop.f32.mrb[46].mxu1  ;;  %v4048_v60 = vld [vmem:[%s5324_s3 + $0x270] sm:$0xff]   ;;  %v4055_v26 = vld [vmem:[%s5326_s5 + $0xc0] sm:$0xff]  }
 0x1dd   : > { %v4976_v2 = vpack.c.bf16 %v1477_v31, %v1475_v52  ;;  %v1447_v43 = vmax.f32 %v1219_v32, %v1435_v61  ;;  %v1220_v45 = vmax.f32 %v4875_v22, %v1205_v35  ;;  %v1436_v41 = vmax.f32 %v4877_v23, %v1421_v29  ;;  %v1207_v36 = vpop.f32.mrb[47].mxu0  ;;  %v1423_v17 = vpop.f32.mrb[47].mxu1  ;;  %3615 = vmatpush3.bf16.msra.mxu0 %v4013_v11  ;;  %v4019_v22 = vld [vmem:[%s5324_s3 + $0x138] sm:$0xff]   ;;  %v4020_v23 = vld [vmem:[%s5324_s3 + $0x1a8] sm:$0xff]   ;;  %v4056_v27 = vld [vmem:[%s5326_s5 + $0x10] sm:$0xff]  }
 0x1de   : > { %3470 = vmatpush3.bf16.msra.mxu1 %v4015_v30  ;;  %3616 = vmatprep.subr.bf16.mxu0 %v4016_v44  ;;  %v4028_v52 = vld [vmem:[%s5324_s3 + $0x1c8] sm:$0xff]   ;;  %v4045_v11 = vld [vmem:[%s5324_s3 + $0x238] sm:$0xff]   ;;  %v4057_v28 = vld [vmem:[%s5326_s5 + $0x80] sm:$0xff]  }
 0x1df   : > { %v1466_v49 = vadd.f32 %v4882_v37, %v1447_v43  ;;  %v1448_v51 = vmax.f32 %v1220_v45, %v1436_v41  ;;  %1915 = vmatprep.mubr.bf16.mxu1 %v4976_v2  ;;  %3471 = vmatprep.subr.bf16.mxu1 %v4017_v8  ;;  %v4058_v30 = vld [vmem:[%s5326_s5 + $0x58] sm:$0xff]   ;;  %v4062_v32 = vld [vmem:[%s5326_s5 + $0x60] sm:$0xff]   ;;  %v4063_v61 = vld [vmem:[%s5326_s5 + $0xd0] sm:$0xff]  }
 0x1e0   : > { %1859 = vmatmul.mubr.bf16.gmra.mrb[56].mxu0 %v4896_v25  ;;  %1916 = vmatmul.mubr.bf16.gmra.mrb[52].mxu1 %v4969_v12  ;;  %v4064_v62 = vld [vmem:[%s5326_s5 + $0x20] sm:$0xff]   ;;  %v4065_v33 = vld [vmem:[%s5326_s5 + $0x90] sm:$0xff]   ;;  %v4066_v8 = vld [vmem:[%s5326_s5 + $0x68] sm:$0xff]  }
 0x1e1   : > { %v1478_v54 = vmax.f32 %v1466_v49, 0.0  ;;  %v1467_v55 = vadd.f32 %v4882_v37, %v1448_v51  ;;  %1866 = vmatprep.mubr.bf16.mxu0 %v4969_v12  ;;  %1923 = vmatprep.mubr.bf16.mxu1 %v4938_v0  ;;  %v4023_v37 = vld [vmem:[%s5324_s3 + $0x1b0] sm:$0xff]   ;;  %v4067_v35 = vld [vmem:[%s5326_s5 + $0xd8] sm:$0xff]   ;;  %v4068_v29 = vld [vmem:[%s5326_s5 + $0x28] sm:$0xff]  }
 0x1e2   : > { %3617 = vmatpush3.bf16.msra.mxu0 %v4016_v44  ;;  %3472 = vmatpush3.bf16.msra.mxu1 %v4018_v18  ;;  %v4059_v44 = vld [vmem:[%s5326_s5 + $0xc8] sm:$0xff]   ;;  %v4070_v43 = vld [vmem:[%s5326_s5 + $0x70] sm:$0xff]   ;;  %v4071_v45 = vld [vmem:[%s5326_s5 + $0xe0] sm:$0xff]  }
 0x1e3   : > { %v4999_v3 = vpack.c.bf16 %v1478_v54, %v1476_v15  ;;  %v1479_v46 = vmax.f32 %v1467_v55, 0.0  ;;  %3618 = vmatprep.subr.bf16.mxu0 %v4019_v22  ;;  %3473 = vmatprep.subr.bf16.mxu1 %v4020_v23  ;;  %v4054_v15 = vld [vmem:[%s5326_s5 + $0x50] sm:$0xff]   ;;  %v4073_v36 = vld [vmem:[%s5326_s5 + $0xa0] sm:$0xff]   ;;  %v4074_v17 = vld [vmem:[%s5326_s5 + $0x78] sm:$0xff]  }
 0x1e4   : > { %v4072_v41 = vld [vmem:[%s5326_s5 + $0x30] sm:$0xff]   ;;  %v4075_v18 = vld [vmem:[%s5326_s5 + $0xe8] sm:$0xff]   ;;  %v4076_v49 = vld [vmem:[%s5326_s5 + $0x38] sm:$0xff]  }
 0x1e5   : > { %v5007_v47 = vpack.c.bf16 %v1479_v46, %v1477_v31  ;;  %v4061_v31 = vld [vmem:[%s5326_s5 + $0x88] sm:$0xff]   ;;  %v4079_v23 = vld [vmem:[%s5326_s5 + $0xb0] sm:$0xff]   ;;  %v4080_v54 = vld [vmem:[%s5326_s5 + $0xf8] sm:$0xff]  }
 0x1e6   : > { %3619 = vmatpush3.bf16.msra.mxu0 %v4019_v22  ;;  %3474 = vmatpush3.bf16.msra.mxu1 %v4021_v1  ;;  %v4077_v51 = vld [vmem:[%s5326_s5 + $0xa8] sm:$0xff]   ;;  %v4078_v22 = vld [vmem:[%s5326_s5 + $0xf0] sm:$0xff]   ;;  %v4081_v55 = vld [vmem:[%s5326_s5 + $0xb8] sm:$0xff]  }
 0x1e7   : > { %3503 = vmatprep.subr.bf16.mxu0 %v4022_v6  ;;  %3475 = vmatprep.subr.bf16.mxu1 %v4023_v37 }
 0x1e8   : > { %1867 = vmatmul.mubr.bf16.gmra.mrb[60].mxu0 %v4945_v48  ;;  %1924 = vmatmul.mubr.bf16.gmra.mrb[56].mxu1 %v4915_v42 }
 0x1e9   : > { %1931 = vmatprep.mubr.bf16.mxu1 %v4999_v3  ;;  %3620 = vmatprep.mubr.bf16.mxu0 %v4938_v0 }
 0x1ea   : > { %3476 = vmatpush3.bf16.msra.mxu1 %v4025_v7 }
 0x1eb   : > { %3477 = vmatprep.subr.bf16.mxu1 %v4027_v57 }
 0x1ee   : > { %3478 = vmatpush3.bf16.msra.mxu1 %v4029_v20 }
 0x1ef   : > { %3628 = vmatprep.subr.bf16.mxu1 %v4032_v58 }
 0x1f0   : > { %1932 = vmatmul.mubr.bf16.gmra.mrb[60].mxu1 %v4976_v2  ;;  %3621 = vmatmul.mubr.bf16.vlgmr.msra.gmra.mrb[64].mxu0 %v4999_v3 }
 0x1f1   : > { %3504 = vmatpush3.bf16.msra.mxu0 %v4024_v59  ;;  %3624 = vmatprep.mubr.bf16.mxu0 %v4945_v48 }
 0x1f2   : > { %2362 = vmatprep.mubr.bf16.mxu1 %v4896_v25  ;;  %3505 = vmatprep.subr.bf16.mxu0 %v4026_v63 }
 0x1f5   : > { %3506 = vmatpush3.bf16.msra.mxu0 %v4028_v52 }
 0x1f6   : > { %3507 = vmatprep.subr.bf16.mxu0 %v4030_v4 }
 0x1f8   : > { %3625 = vmatmul.mubr.bf16.gmra.mrb[68].mxu0 %v5007_v47  ;;  %2363 = vmatmul.mubr.bf16.vlgmr.msra.gmra.mrb[64].mxu1 %v4892_v14  ;;  %v4038_v14 = vld [vmem:[%s5324_s3 + $0x250] sm:$0xff]  }
 0x1f9   : > { %3508 = vmatpush3.bf16.msra.mxu0 %v4031_v53  ;;  %2370 = vmatprep.mubr.bf16.mxu1 %v4945_v48 }
 0x1fa   : > { %2427 = vmatprep.mubr.bf16.mxu0 %v4915_v42  ;;  %3629 = vmatpush3.bf16.msra.mxu1 %v4032_v58 }
 0x1fb   : > { %3509 = vmatprep.subr.bf16.mxu0 %v4033_v5  ;;  %3630 = vmatprep.subr.bf16.mxu1 %v4035_v38 }
 0x1fd   : > { %3510 = vmatpush3.bf16.msra.mxu0 %v4034_v9 }
 0x1fe   : > { %3631 = vmatpush3.bf16.msra.mxu1 %v4035_v38  ;;  %3511 = vmatprep.subr.bf16.mxu0 %v4036_v13 }
 0x1ff   : > { %3632 = vmatprep.subr.bf16.mxu1 %v4038_v14 }
 0x200   : > { %2371 = vmatmul.mubr.bf16.gmra.mrb[68].mxu1 %v4938_v0 }
 0x201   : > { %3512 = vmatpush3.bf16.msra.mxu0 %v4037_v16  ;;  %2378 = vmatprep.mubr.bf16.mxu1 %v4911_v34 }
 0x202   : > { %3633 = vmatpush3.bf16.msra.mxu1 %v4038_v14  ;;  %3513 = vmatprep.subr.bf16.mxu0 %v4039_v56 }
 0x203   : > { %3634 = vmatprep.subr.bf16.mxu1 %v4041_v50 }
 0x205   : > { %3514 = vmatpush3.bf16.msra.mxu0 %v4040_v19 }
 0x206   : > { %3635 = vmatpush3.bf16.msra.mxu1 %v4041_v50  ;;  %3515 = vmatprep.subr.bf16.mxu0 %v4042_v21 }
 0x207   : > { %3636 = vmatprep.subr.bf16.mxu1 %v4044_v24 }
 0x208   : > { %2379 = vmatmul.mubr.bf16.gmra.mrb[72].mxu1 %v4896_v25  ;;  %v4049_v25 = vld [vmem:[%s5324_s3 + $0x278] sm:$0xff]  }
 0x209   : > { %3516 = vmatpush3.bf16.msra.mxu0 %v4043_v10  ;;  %2386 = vmatprep.mubr.bf16.mxu1 %v4969_v12 }
 0x20a   : > { %3637 = vmatpush3.bf16.msra.mxu1 %v4044_v24  ;;  %3517 = vmatprep.subr.bf16.mxu0 %v4045_v11 }
 0x20b   : > { %3638 = vmatprep.subr.bf16.mxu1 %v4047_v40 }
 0x20d   : > { %3518 = vmatpush3.bf16.msra.mxu0 %v4046_v39 }
 0x20e   : > { %3639 = vmatpush3.bf16.msra.mxu1 %v4047_v40 }
 0x20f   : > { %3640 = vmatprep.subr.bf16.mxu1 %v4048_v60 }
 0x210   : > { %2428 = vmatmul.mubr.bf16.vlgmr.msra.gmra.mrb[72].mxu0 %v4911_v34  ;;  %2387 = vmatmul.mubr.bf16.gmra.mrb[76].mxu1 %v4945_v48  ;;  %v4050_v34 = vld [vmem:[%s5326_s5 + $0x40] sm:$0xff]  }
 0x211   : > { %2435 = vmatprep.mubr.bf16.mxu0 %v4976_v2  ;;  %3644 = vmatprep.mubr.bf16.mxu1 %v4938_v0 }
 0x212   : > { %3641 = vmatpush3.bf16.msra.mxu1 %v4048_v60  ;;  %3555 = vmatprep.subr.bf16.mxu0 %v4050_v34 }
 0x213   : > { %3642 = vmatprep.subr.bf16.mxu1 %v4049_v25 }
 0x216   : > { %3643 = vmatpush3.bf16.msra.mxu1 %v4049_v25 }
 0x217   : > { %3577 = vmatprep.subr.bf16.mxu1 %v4055_v26 }
 0x218   : > { %2436 = vmatmul.mubr.bf16.gmra.mrb[76].mxu0 %v4969_v12  ;;  %v4060_v12 = vld [vmem:[%s5326_s5 + $0x18] sm:$0xff]  }
 0x219   : > { %2443 = vmatprep.mubr.bf16.mxu0 %v4938_v0  ;;  %3645 = vmatmul.mubr.bf16.vlgmr.msra.gmra.mrb[80].mxu1 %v4999_v3  ;;  %v4051_v0 = vld [vmem:[%s5326_s5] sm:$0xff]  }
 0x21a   : > { %3648 = vmatprep.mubr.bf16.mxu1 %v4945_v48  ;;  %3556 = vmatpush3.bf16.msra.mxu0 %v4051_v0  ;;  %v4053_v48 = vld [vmem:[%s5326_s5 + $0x8] sm:$0xff]  }
 0x21b   : > { %3578 = vmatpush3.bf16.msra.mxu1 %v4057_v28 }
 0x21c   : > { %3579 = vmatprep.subr.bf16.mxu1 %v4059_v44 }
 0x21f   : > { %3580 = vmatpush3.bf16.msra.mxu1 %v4061_v31 }
 0x220   : > { %2444 = vmatmul.mubr.bf16.gmra.mrb[80].mxu0 %v4915_v42  ;;  %v4052_v42 = vld [vmem:[%s5326_s5 + $0x48] sm:$0xff]   ;;  %3581 = vmatprep.subr.bf16.mxu1 %v4063_v61 }
 0x221   : > { %2451 = vmatprep.mubr.bf16.mxu0 %v4999_v3  ;;  %3649 = vmatmul.mubr.bf16.gmra.mrb[84].mxu1 %v5007_v47 }
 0x222   : > { %3557 = vmatprep.subr.bf16.mxu0 %v4052_v42 }
 0x223   : > { %3558 = vmatpush3.bf16.msra.mxu0 %v4053_v48  ;;  %3582 = vmatpush3.bf16.msra.mxu1 %v4065_v33 }
 0x224   : > { %3559 = vmatprep.subr.bf16.mxu0 %v4054_v15  ;;  %3583 = vmatprep.subr.bf16.mxu1 %v4067_v35 }
 0x227   : > { %3560 = vmatpush3.bf16.msra.mxu0 %v4056_v27 }
 0x228   : > { %2452 = vmatmul.mubr.bf16.gmra.mrb[84].mxu0 %v4976_v2  ;;  %3561 = vmatprep.subr.bf16.mxu0 %v4058_v30  ;;  %v4069_v2 = vld [vmem:[%s5326_s5 + $0x98] sm:$0xff]  }
 0x229   : > { %3584 = vmatpush3.bf16.msra.mxu1 %v4069_v2 }
 0x22a   : > { %3585 = vmatprep.subr.bf16.mxu1 %v4071_v45 }
 0x22b   : > { %3562 = vmatpush3.bf16.msra.mxu0 %v4060_v12 }
 0x22c   : > { %3563 = vmatprep.subr.bf16.mxu0 %v4062_v32 }
 0x22d   : > { %3586 = vmatpush3.bf16.msra.mxu1 %v4073_v36 }
 0x22e   : > { %3587 = vmatprep.subr.bf16.mxu1 %v4075_v18 }
 0x22f   : > { %3564 = vmatpush3.bf16.msra.mxu0 %v4064_v62 }
 0x230   : > { %3565 = vmatprep.subr.bf16.mxu0 %v4066_v8 }
 0x231   : > { %3588 = vmatpush3.bf16.msra.mxu1 %v4077_v51 }
 0x232   : > { %3589 = vmatprep.subr.bf16.mxu1 %v4078_v22 }
 0x233   : > { %3566 = vmatpush3.bf16.msra.mxu0 %v4068_v29 }
 0x234   : > { %3567 = vmatprep.subr.bf16.mxu0 %v4070_v43 }
 0x235   : > { %3590 = vmatpush3.bf16.msra.mxu1 %v4079_v23 }
 0x236   : > { %3591 = vmatprep.subr.bf16.mxu1 %v4080_v54 }
 0x237   : > { %3568 = vmatpush3.bf16.msra.mxu0 %v4072_v41 }
 0x238   : > { %3569 = vmatprep.subr.bf16.mxu0 %v4074_v17 }
 0x239   : > { %3592 = vmatpush3.bf16.msra.mxu1 %v4081_v55 }
 0x23b   : > { %3570 = vmatpush3.bf16.msra.mxu0 %v4076_v49 }
 0x29b   : > { %v3387_v1 = vpop.f32.mrb[48].mxu0 }
 0x29c   : > { %v3388_v3 = vpop.f32.mrb[49].mxu0 }
 0x29d   : > { %v3389_v46 = vadd.f32 %v3388_v3, %v3387_v1  ;;  %v3390_v6 = vpop.f32.mrb[50].mxu0 }
 0x29e   : > { %v3391_v37 = vpop.f32.mrb[51].mxu0 }
 0x29f   : > { %v3392_v47 = vadd.f32 %v3391_v37, %v3390_v6 }
 0x2a3   : > { %v3427_v7 = vpop.f32.mrb[48].mxu1 }
 0x2a4   : > { %v3428_v57 = vpop.f32.mrb[49].mxu1 }
 0x2a5   : > { %v3429_v20 = vadd.f32 %v3428_v57, %v3427_v7  ;;  %v3430_v58 = vpop.f32.mrb[50].mxu1 }
 0x2a6   : > { %v3431_v59 = vpop.f32.mrb[51].mxu1 }
 0x2a7   : > { %v3432_v63 = vadd.f32 %v3431_v59, %v3430_v58  ;;  %v1910_v52 = vadd.f32 %v3429_v20, %v3389_v46 }
 0x2a9   : > { %v1913_v4 = vadd.f32 %v3432_v63, %v3392_v47 }
 0x2ab   : > { %v3393_v53 = vpop.f32.mrb[52].mxu0 }
 0x2ac   : > { %v3394_v5 = vpop.f32.mrb[53].mxu0 }
 0x2ad   : > { %v3395_v38 = vadd.f32 %v3394_v5, %v3393_v53  ;;  %v3396_v9 = vpop.f32.mrb[54].mxu0 }
 0x2ae   : > { %v3397_v13 = vpop.f32.mrb[55].mxu0 }
 0x2af   : > { %v3398_v14 = vadd.f32 %v3397_v13, %v3396_v9 }
 0x2b3   : > { %v3399_v16 = vpop.f32.mrb[56].mxu0  ;;  %v3433_v56 = vpop.f32.mrb[52].mxu1 }
 0x2b4   : > { %v3400_v50 = vpop.f32.mrb[57].mxu0  ;;  %v3434_v19 = vpop.f32.mrb[53].mxu1 }
 0x2b5   : > { %v3401_v21 = vadd.f32 %v3400_v50, %v3399_v16  ;;  %v3435_v24 = vadd.f32 %v3434_v19, %v3433_v56  ;;  %v3402_v10 = vpop.f32.mrb[58].mxu0  ;;  %v3436_v11 = vpop.f32.mrb[54].mxu1 }
 0x2b6   : > { %v3403_v40 = vpop.f32.mrb[59].mxu0  ;;  %v3437_v39 = vpop.f32.mrb[55].mxu1 }
 0x2b7   : > { %v3404_v60 = vadd.f32 %v3403_v40, %v3402_v10  ;;  %v3438_v25 = vadd.f32 %v3437_v39, %v3436_v11  ;;  %v1918_v34 = vadd.f32 %v3435_v24, %v3395_v38 }
 0x2b9   : > { %v1921_v0 = vadd.f32 %v3438_v25, %v3398_v14 }
 0x2bb   : > { %v3405_v42 = vpop.f32.mrb[60].mxu0  ;;  %v3439_v48 = vpop.f32.mrb[56].mxu1 }
 0x2bc   : > { %v3406_v15 = vpop.f32.mrb[61].mxu0  ;;  %v3440_v26 = vpop.f32.mrb[57].mxu1 }
 0x2bd   : > { %v3407_v27 = vadd.f32 %v3406_v15, %v3405_v42  ;;  %v3441_v28 = vadd.f32 %v3440_v26, %v3439_v48  ;;  %v3408_v30 = vpop.f32.mrb[62].mxu0  ;;  %v3442_v44 = vpop.f32.mrb[58].mxu1 }
 0x2be   : > { %v3409_v12 = vpop.f32.mrb[63].mxu0  ;;  %v3443_v31 = vpop.f32.mrb[59].mxu1 }
 0x2bf   : > { %v3410_v32 = vadd.f32 %v3409_v12, %v3408_v30  ;;  %v3444_v61 = vadd.f32 %v3443_v31, %v3442_v44  ;;  %v1926_v62 = vadd.f32 %v3441_v28, %v3401_v21 }
 0x2c1   : > { %v1929_v33 = vadd.f32 %v3444_v61, %v3404_v60 }
 0x2c3   : > { %v3445_v8 = vpop.f32.mrb[60].mxu1  ;;  %v3622_v35 = vpop.f32.mrb[64].mxu0 }
 0x2c4   : > { %v5211_v29 = vadd.f32 %v3622_v35, %v1918_v34  ;;  %v3446_v2 = vpop.f32.mrb[61].mxu1  ;;  %v1974_v43 = vpop.f32.mrb[65].mxu0 }
 0x2c5   : > { %v3447_v45 = vadd.f32 %v3446_v2, %v3445_v8  ;;  %v5213_v41 = vadd.f32 %v1974_v43, %v1910_v52  ;;  %v3448_v36 = vpop.f32.mrb[62].mxu1  ;;  %v3623_v17 = vpop.f32.mrb[66].mxu0 }
 0x2c6   : > { %v5215_v18 = vadd.f32 %v3623_v17, %v1921_v0  ;;  %v3449_v49 = vpop.f32.mrb[63].mxu1  ;;  %v1977_v51 = vpop.f32.mrb[67].mxu0 }
 0x2c7   : > { %v3450_v22 = vadd.f32 %v3449_v49, %v3448_v36  ;;  %v5217_v23 = vadd.f32 %v1977_v51, %v1913_v4  ;;  %v1934_v54 = vadd.f32 %v3447_v45, %v3407_v27 }
 0x2c9   : > { %v1937_v55 = vadd.f32 %v3450_v22, %v3410_v32 }
 0x2cb   : > { %v3626_v1 = vpop.f32.mrb[68].mxu0  ;;  %v3479_v3 = vpop.f32.mrb[64].mxu1 }
 0x2cc   : > { %v5219_v46 = vadd.f32 %v3626_v1, %v1934_v54  ;;  %v1990_v6 = vpop.f32.mrb[69].mxu0  ;;  %v3480_v37 = vpop.f32.mrb[65].mxu1 }
 0x2cd   : > { %v5221_v47 = vadd.f32 %v1990_v6, %v1926_v62  ;;  %v3481_v7 = vadd.f32 %v3480_v37, %v3479_v3  ;;  %v3627_v57 = vpop.f32.mrb[70].mxu0  ;;  %v3482_v20 = vpop.f32.mrb[66].mxu1 }
 0x2ce   : > { %v2007_v58 = vmax.f32 %v5211_v29, %v5219_v46  ;;  %v5225_v59 = vadd.f32 %v3627_v57, %v1937_v55  ;;  %v1993_v63 = vpop.f32.mrb[71].mxu0  ;;  %v3483_v52 = vpop.f32.mrb[67].mxu1  ;;  %v4082_v29 = vld [vmem:[%s5328_s7] sm:$0xff]   ;;  %v4171_v46 = vmov 0.0  }
 0x2cf   : > { %v2005_v4 = vmax.f32 %v5213_v41, %v5221_v47  ;;  %v5229_v53 = vadd.f32 %v1993_v63, %v1929_v33  ;;  %v3484_v5 = vadd.f32 %v3483_v52, %v3482_v20  ;;  %3652 = vmatprep.subr.bf16.mxu0 %v4171_v46 }
 0x2d0   : > { %v2008_v38 = vmax.f32 %v5215_v18, %v5225_v59  ;;  %v4083_v18 = vld [vmem:[%s5328_s7 + $0x8] sm:$0xff]   ;;  %v4085_v59 = vld [vmem:[%s5328_s7 + $0x18] sm:$0xff]  }
 0x2d1   : > { %v2006_v9 = vmax.f32 %v5217_v23, %v5229_v53 }
 0x2d3   : > { %v3485_v13 = vpop.f32.mrb[68].mxu1 }
 0x2d4   : > { %v3486_v14 = vpop.f32.mrb[69].mxu1 }
 0x2d5   : > { %v3487_v16 = vadd.f32 %v3486_v14, %v3485_v13  ;;  %v3488_v56 = vpop.f32.mrb[70].mxu1 }
 0x2d6   : > { %v3489_v50 = vpop.f32.mrb[71].mxu1 }
 0x2d7   : > { %v3490_v19 = vadd.f32 %v3489_v50, %v3488_v56 }
 0x2db   : > { %v3491_v21 = vpop.f32.mrb[72].mxu1 }
 0x2dc   : > { %v3492_v24 = vpop.f32.mrb[73].mxu1 }
 0x2dd   : > { %v3493_v10 = vadd.f32 %v3492_v24, %v3491_v21  ;;  %v3494_v11 = vpop.f32.mrb[74].mxu1 }
 0x2de   : > { %v3495_v40 = vpop.f32.mrb[75].mxu1 }
 0x2df   : > { %v3496_v39 = vadd.f32 %v3495_v40, %v3494_v11 }
 0x2e3   : > { %v3519_v60 = vpop.f32.mrb[72].mxu0  ;;  %v3497_v25 = vpop.f32.mrb[76].mxu1 }
 0x2e4   : > { %v3520_v34 = vpop.f32.mrb[73].mxu0  ;;  %v3498_v0 = vpop.f32.mrb[77].mxu1 }
 0x2e5   : > { %v3521_v42 = vadd.f32 %v3520_v34, %v3519_v60  ;;  %v3499_v48 = vadd.f32 %v3498_v0, %v3497_v25  ;;  %v3522_v15 = vpop.f32.mrb[74].mxu0  ;;  %v3500_v26 = vpop.f32.mrb[78].mxu1 }
 0x2e6   : > { %v3523_v27 = vpop.f32.mrb[75].mxu0  ;;  %v3501_v28 = vpop.f32.mrb[79].mxu1 }
 0x2e7   : > { %v3524_v30 = vadd.f32 %v3523_v27, %v3522_v15  ;;  %v3502_v44 = vadd.f32 %v3501_v28, %v3500_v26  ;;  %v2430_v12 = vadd.f32 %v3521_v42, %v3481_v7 }
 0x2e9   : > { %v2433_v31 = vadd.f32 %v3524_v30, %v3484_v5 }
 0x2eb   : > { %v3525_v32 = vpop.f32.mrb[76].mxu0 }
 0x2ec   : > { %v3526_v61 = vpop.f32.mrb[77].mxu0  ;;  %v3646_v62 = vpop.f32.mrb[80].mxu1 }
 0x2ed   : > { %v3527_v33 = vadd.f32 %v3526_v61, %v3525_v32  ;;  %v3528_v8 = vpop.f32.mrb[78].mxu0  ;;  %v2494_v35 = vpop.f32.mrb[81].mxu1 }
 0x2ee   : > { %v2495_v2 = vadd.f32 %v2494_v35, %v2430_v12  ;;  %v3529_v43 = vpop.f32.mrb[79].mxu0  ;;  %v3647_v45 = vpop.f32.mrb[82].mxu1 }
 0x2ef   : > { %v2438_v36 = vadd.f32 %v3527_v33, %v3487_v16  ;;  %v3530_v17 = vadd.f32 %v3529_v43, %v3528_v8  ;;  %v2497_v49 = vpop.f32.mrb[83].mxu1  ;;  %v3328_v43 = vld [vmem:[%s5327_s6] ss:$0 sm:$0xff] }
 0x2f0   : > { %v2498_v51 = vadd.f32 %v2497_v49, %v2433_v31 }
 0x2f1   : > { %v2503_v22 = vadd.f32 %v3646_v62, %v2438_v36  ;;  %v2441_v54 = vadd.f32 %v3530_v17, %v3490_v19  ;;  %v3327_v19 = vld [vmem:[%s5325_s4] ss:$0 sm:$0xff] }
 0x2f3   : > { %v2506_v55 = vadd.f32 %v3647_v45, %v2441_v54  ;;  %v3531_v1 = vpop.f32.mrb[80].mxu0 }
 0x2f4   : > { %v3532_v3 = vpop.f32.mrb[81].mxu0  ;;  %v3650_v6 = vpop.f32.mrb[84].mxu1 }
 0x2f5   : > { %v3533_v37 = vadd.f32 %v3532_v3, %v3531_v1  ;;  %v3534_v7 = vpop.f32.mrb[82].mxu0  ;;  %v2510_v57 = vpop.f32.mrb[85].mxu1  ;;  %v3361_v3 = vld [vmem:[%s5329_s8] ss:$0 sm:$0xff] }
 0x2f6   : > { %v3535_v20 = vpop.f32.mrb[83].mxu0  ;;  %v3651_v63 = vpop.f32.mrb[86].mxu1 }
 0x2f7   : > { %v2446_v52 = vadd.f32 %v3533_v37, %v3493_v10  ;;  %v3536_v5 = vadd.f32 %v3535_v20, %v3534_v7  ;;  %v2513_v13 = vpop.f32.mrb[87].mxu1 }
 0x2f9   : > { %v2511_v14 = vadd.f32 %v2510_v57, %v2446_v52  ;;  %v2449_v56 = vadd.f32 %v3536_v5, %v3496_v39 }
 0x2fb   : > { %v2525_v16 = vmax.f32 %v2495_v2, %v2511_v14  ;;  %v2514_v50 = vadd.f32 %v2513_v13, %v2449_v56  ;;  %v3537_v21 = vpop.f32.mrb[84].mxu0 }
 0x2fc   : > { %v3538_v24 = vpop.f32.mrb[85].mxu0 }
 0x2fd   : > { %v2529_v11 = vmax.f32 %v2005_v4, %v2525_v16  ;;  %v2526_v40 = vmax.f32 %v2498_v51, %v2514_v50  ;;  %v3539_v60 = vadd.f32 %v3538_v24, %v3537_v21  ;;  %v3540_v25 = vpop.f32.mrb[86].mxu0 }
 0x2fe   : > { %v3541_v10 = vpop.f32.mrb[87].mxu0 }
 0x2ff   : > { %v2540_v34 = vadd.f32 %v3327_v19, %v2529_v11  ;;  %v2530_v39 = vmax.f32 %v2006_v9, %v2526_v40  ;;  %v2454_v0 = vadd.f32 %v3539_v60, %v3499_v48  ;;  %v3542_v42 = vadd.f32 %v3541_v10, %v3540_v25 }
 0x301   : > { %v2519_v15 = vadd.f32 %v3650_v6, %v2454_v0  ;;  %v2457_v26 = vadd.f32 %v3542_v42, %v3502_v44  ;;  %v2541_v27 = vadd.f32 %v3327_v19, %v2530_v39  ;;  %v2544_v28 = vmax.f32 %v2540_v34, 0.0 }
 0x303   : > { %v2527_v30 = vmax.f32 %v2503_v22, %v2519_v15  ;;  %v2522_v12 = vadd.f32 %v3651_v63, %v2457_v26  ;;  %v2545_v31 = vmax.f32 %v2541_v27, 0.0  ;;  %v2548_v32 = vpack.c.bf16 %v2544_v28, %v2544_v28 }
 0x305   : > { %v2531_v41 = vmax.f32 %v2007_v58, %v2527_v30  ;;  %v2528_v47 = vmax.f32 %v2506_v55, %v2522_v12  ;;  %v2549_v4 = vpack.c.bf16 %v2545_v31, %v2545_v31  ;;  %v4084_v58 = vld [vmem:[%s5328_s7 + $0x10] sm:$0xff]  }
 0x307   : > { %v2542_v61 = vadd.f32 %v3327_v19, %v2531_v41  ;;  %2847 = vmatprep.mubr.bf16.mxu0 %v2549_v4  ;;  %v2532_v23 = vmax.f32 %v2008_v38, %v2528_v47 }
 0x308   : > { %2848 = vmatmul.mubr.bf16.vlgmr.msra.gmra.mrb[88].mxu0 %v2548_v32 }
 0x309   : > { %v2543_v53 = vadd.f32 %v3327_v19, %v2532_v23  ;;  %v2546_v9 = vmax.f32 %v2542_v61, 0.0  ;;  %3653 = vmatpush3.bf16.msra.mxu0 %v4082_v29  ;;  %3660 = vmatprep.mubr.msk.bf16.mxu0 %vm4172_vm6, %v4171_v46 }
 0x30a   : > { %3654 = vmatprep.subr.bf16.mxu0 %v4171_v46 }
 0x30b   : > { %v2547_v48 = vmax.f32 %v2543_v53, 0.0  ;;  %v2550_v62 = vpack.c.bf16 %v2546_v9, %v2546_v9 }
 0x30d   : > { %v2551_v44 = vpack.c.bf16 %v2547_v48, %v2547_v48  ;;  %3655 = vmatpush3.bf16.msra.mxu0 %v4083_v18 }
 0x30e   : > { %3656 = vmatprep.subr.bf16.mxu0 %v4171_v46 }
 0x30f   : > { %2887 = vmatprep.mubr.bf16.mxu1 %v2551_v44 }
 0x310   : > { %2888 = vmatmul.mubr.bf16.vlgmr.msra.gmra.mrb[88].mxu1 %v2550_v62 }
 0x311   : > { %3657 = vmatpush3.bf16.msra.mxu0 %v4084_v58 }
 0x312   : > { %3658 = vmatprep.subr.bf16.mxu0 %v4171_v46 }
 0x315   : > { %3659 = vmatpush3.bf16.msra.mxu0 %v4085_v59 }
 0x3db   : > { %v3571_v38 = vpop.f32.mrb[88].mxu0 }
 0x3dc   : > { %v3572_v33 = vpop.f32.mrb[89].mxu0 }
 0x3dd   : > { %v3573_v8 = vadd.f32 %v3572_v33, %v3571_v38  ;;  %v3574_v35 = vpop.f32.mrb[90].mxu0 }
 0x3de   : > { %v3575_v2 = vpop.f32.mrb[91].mxu0 }
 0x3df   : > { %v2850_v17 = vadd.f32 %v3573_v8, %v3328_v43 }
 0x3e3   : > { %v3593_v45 = vpop.f32.mrb[88].mxu1 }
 0x3e4   : > { %v3594_v36 = vpop.f32.mrb[89].mxu1 }
 0x3e5   : > { %v3595_v49 = vadd.f32 %v3594_v36, %v3593_v45  ;;  %v3596_v51 = vpop.f32.mrb[90].mxu1 }
 0x3e6   : > { %v3597_v22 = vpop.f32.mrb[91].mxu1 }
 0x3e7   : > { %v2890_v54 = vadd.f32 %v3595_v49, %v2850_v17 }
 0x3e9   : > { %v2895_v55 = vmax.f32 %v2890_v54, 0.0 }
 0x3eb   : > { %v2896_v1 = vpack.c.bf16 %v2895_v55, %v2895_v55 }
 0x3ed   : > { %3661 = vmatmul.mubr.msk.bf16.vlgmr.msra.gmra.mrb[92].mxu0 %vm2936_vm7, %v2896_v1 }
 0x4c0   : > { %v2974_v6 = vpop.f32.mrb[92].mxu0 }
 0x4c1   : > { %v2975_v37 = vadd.f32 %v3361_v3, %v2974_v6  ;;  %v3662_v7 = vpop.f32.mrb[93].mxu0 }
 0x4c2   : > { %v2977_v57 = vpop.f32.mrb[94].mxu0 }
 0x4c3   : > { %v3663_v20 = vpop.f32.mrb[95].mxu0  ;;  %v2981_v63 = vsel %vm2980_vm8, %v2975_v37, -inf }
 0x4c4   : > { %2982 = vmax.xlane.f32.xlu0 %v2981_v63 }
 0x551   : > { %v2983_v52 = vpop.xlane.xlu0 %2982 }
 0x552   : > { %v2984_v5 = vsub.f32 %v2975_v37, %v2983_v52 }
 0x554   : > { %v2985_v13 = vmul.f32 1.442695, %v2984_v5 }
 0x556   : > { %4086 = vpow2.f32 %v2985_v13 }
 0x560   : > { %v4087_v14 = vpop.eup %4086 }
 0x561   : > { %v2987_v56 = vsel %vm2980_vm8, %v4087_v14, 0.0 }
 0x562   : > { %2988 = vadd.xlane.f32.xlu1 %v2987_v56 }
 0x5ef   : > { %v2989_v16 = vpop.xlane.xlu1 %2988 }
 0x5f0   : > { %4088 = vlog2.f32 %v2989_v16 }
 0x5fa   : > { %v4089_v50 = vpop.eup %4088 }
 0x5fb   : > { %v2991_v21 = vmul.f32 0.6931472, %v4089_v50 }
 0x5fd   : > { %v2992_v19 = vsub.f32 %v2984_v5, %v2991_v21 }
 0x5ff   : > { %2993 = vst.msk [vmem:[%s472_s17] sm:$0xff] %vm2980_vm8, %v2992_v19 }
 0x600   : > { %4115 = shalt.err (!%p4112_p5)
}
 0x601   : > { %s4116_s28 = scalar_lea.hbm %s5276_s22, 128  ;;  %s4120_s17 = scalar_lea.hbm %s5330_s9, 256 }
 0x602   : > { %p4117_p7 = scmp.ne.s32.totalorder %s5276_s22, %s4116_s28  ;;  %p4121_p12 = scmp.lt.u32.totalorder %s5276_s22, %s5330_s9 }
 0x603   : > { %p4122_p13 = scmp.lt.u32.totalorder %s4120_s17, %s4116_s28  ;;  %p4124_p1 = scmp.lt.u32.totalorder %s4116_s28, %s5276_s22 }
 0x604   : > { %p4118_p10 = pnand %p4117_p7, %p4262_p6 }
 0x605   : > { %p4123_p0 = por %p4122_p13, %p4121_p12 }
 0x606   : > { %p4119_p11 = pneg %p4118_p10 }
 0x607   : > { %p4125_p2 = por %p4124_p1, %p4123_p0 }
 0x609   : > { %p4126_p3 = pnand %p4125_p2, %p4119_p11 }
 0x60b   : > { %4129 = shalt.err (!%p4126_p3)
}
 0x60c   : > { %3666 = dma.vmem_to_hbm [thread:$0]  (%p4262_p6), %s5278_s27, 128, %s5276_s22, %s2995_s21  }
 0x60d PF: > { %s3020_s23 = sand.u32 1, %s4152_s30   ;;  %p3669_p4 = pnand %p3075_p9, %p4266_p8 }
 0x60e   : > { %s3021_s24 = scalar_lea.sflag [#allocation4], %s3020_s23 }
 0x60f   : > { %4147 = dma.done.wait (!%p3669_p4), %s3021_s24, 128  }
 0x610   : > { %4149 = vsyncadd (!%p3669_p4), %s3021_s24, 4294967168  ;;  %p19_p5 = scmp.ge.s32.totalorder %s4247_s15, 4   ;;  %s5338_s30 = smov %s4156_s10 }
 0x611   : > { %s5339_s10 = smov %s4160_s11  ;;  %s5340_s11 = smov %s4260_s18 }
 0x612   : > { %s5341_s12 = smov %s4247_s15  ;;  %21 = sbr.rel (!%p19_p5) target bundleno = 3 (0x3), region = 163 }
 0x619   :  { %3026 = vsyncpa [#allocation4], 1 }
 0x61a   :  { %3028 = vsyncpa [#allocation4 + $0x1], 1 }

</bundles_post_ra>
